<compile_context>
chip_gen: v6e
topology: v6e:2x2x1
jax: 0.10.0
libtpu: 0.0.40
codegen_flags: <defaults>
</compile_context>

<pallas_src>
import jax
import jax.numpy as jnp
from jax.experimental import pallas as pl
from jax.experimental.pallas import tpu as pltpu

# Synthetic small sizes (stand-ins for user_num=52643, item_num=91599, factor=64)
USER_NUM = 64
ITEM_NUM = 96
FACTOR_NUM = 128
TOTAL = USER_NUM + ITEM_NUM          # 160
PAD = 256                            # lane-dense padded state/adjacency size

# Mixture weights from the torch forward: g = x0 + x1/2 + x2/3 + x3/4 + x4.
LAYER_WEIGHTS = (0.5, 1.0 / 3.0, 0.25, 1.0)


def bpr_kernel(adj0_ref, adjl_ref, ego_ref, d_ref, out_ref):
    """Single-invocation kernel; everything resident in VMEM.

    adj0_ref : (PAD, PAD)        bf16  zero-padded norm_adj (first propagation)
    adjl_ref : (PAD, PAD)        bf16  zero-padded [[0, UI], [IU, 0]] (layers 1..4)
    ego_ref  : (PAD, FACTOR_NUM) bf16  concat(embed_user, embed_item), zero rows pad
    d_ref    : (PAD, 1)          f32   concat(d_i, d_j), zero rows pad
    out_ref  : (PAD, FACTOR_NUM) f32   weighted sum of propagated embeddings
    """
    ego = ego_ref[...]
    d = d_ref[...]                                    # (PAD, 1) — VPU lane broadcast

    # Layer 0: state0 = norm_adj @ ego + ego   (bf16 operands, f32 accumulation)
    state = (jnp.dot(adj0_ref[...], ego, preferred_element_type=jnp.float32)
             + ego.astype(jnp.float32))
    out_ref[...] = state                              # weight 1.0 on layer 0

    adj_l = adjl_ref[...]
    # Layers 1..4:  state <- [[0,UI],[IU,0]] @ state + state * [d_i ; d_j]
    # (identical to the per-split torch recursion), accumulated into out_ref
    # so `state` is the only large live value between matmuls.
    for w in LAYER_WEIGHTS:
        state = (jnp.dot(adj_l, state.astype(jnp.bfloat16),
                         preferred_element_type=jnp.float32)
                 + state * d)
        out_ref[...] += state * w


def bpr_forward(norm_adj, user_item, item_user, embed_user, embed_item, d_i, d_j):
    # Concatenate embeddings (torch.cat) and zero-pad rows to the lane-dense size.
    ego = jnp.concatenate([embed_user, embed_item], axis=0)            # (TOTAL, F)
    ego_p = jnp.zeros((PAD, FACTOR_NUM), jnp.bfloat16)
    ego_p = ego_p.at[:TOTAL].set(ego.astype(jnp.bfloat16))

    # First-hop adjacency (kept separate so arbitrary norm_adj semantics hold).
    adj0 = jnp.zeros((PAD, PAD), jnp.bfloat16)
    adj0 = adj0.at[:TOTAL, :TOTAL].set(norm_adj.astype(jnp.bfloat16))

    # Layer adjacency encodes user_item / item_user as one block matrix.
    adj_l = jnp.zeros((PAD, PAD), jnp.bfloat16)
    adj_l = adj_l.at[:USER_NUM, USER_NUM:TOTAL].set(user_item.astype(jnp.bfloat16))
    adj_l = adj_l.at[USER_NUM:TOTAL, :USER_NUM].set(item_user.astype(jnp.bfloat16))

    # Degree normalizers stay a single (PAD, 1) f32 column (broadcast in-kernel).
    d_cat = jnp.zeros((PAD, 1), jnp.float32)
    d_cat = d_cat.at[:TOTAL].set(jnp.concatenate([d_i, d_j], axis=0))

    full = lambda shape: pl.BlockSpec(shape, lambda: tuple(0 for _ in shape))

    out = pl.pallas_call(
        bpr_kernel,
        out_shape=jax.ShapeDtypeStruct((PAD, FACTOR_NUM), jnp.float32),
        in_specs=[
            full((PAD, PAD)),
            full((PAD, PAD)),
            full((PAD, FACTOR_NUM)),
            full((PAD, 1)),
        ],
        out_specs=full((PAD, FACTOR_NUM)),
        compiler_params=pltpu.CompilerParams(vmem_limit_bytes=8 << 20),
    )(adj0, adj_l, ego_p, d_cat)

    return out[:USER_NUM], out[USER_NUM:TOTAL]


def bpr_forward_ref(norm_adj, user_item, item_user, embed_user, embed_item, d_i, d_j):
    # Pure-JAX f32 reference mirroring the torch forward exactly.
    ego = jnp.concatenate([embed_user, embed_item], axis=0)
    di = jnp.broadcast_to(d_i, (USER_NUM, FACTOR_NUM))
    dj = jnp.broadcast_to(d_j, (ITEM_NUM, FACTOR_NUM))
    prop = norm_adj @ ego + ego
    u, i = prop[:USER_NUM], prop[USER_NUM:]
    gu, gi = u, i
    for w in LAYER_WEIGHTS:
        u, i = user_item @ i + u * di, item_user @ u + i * dj
        gu = gu + u * w
        gi = gi + i * w
    return gu, gi


if __name__ == "__main__":
    key = jax.random.PRNGKey(0)
    k_adj, k_ui, k_eu, k_ei, k_mask = jax.random.split(key, 5)

    # Deterministic synthetic interaction matrix (0/1), sparse-ish.
    interact = (jax.random.uniform(k_ui, (USER_NUM, ITEM_NUM)) < 0.05).astype(jnp.float32)

    # d_i = 1 / (len(set) + 1), d_j likewise (readD semantics).
    d_i = 1.0 / (jnp.sum(interact, axis=1, keepdims=True) + 1.0)    # (USER_NUM, 1)
    d_j = 1.0 / (jnp.sum(interact, axis=0, keepdims=True).T + 1.0)  # (ITEM_NUM, 1)

    # Normalized user-item / item-user matrices and symmetric norm_adj.
    user_item = interact * d_i                   # (USER_NUM, ITEM_NUM)
    item_user = interact.T * d_j                 # (ITEM_NUM, USER_NUM)
    norm_adj = jnp.zeros((TOTAL, TOTAL), jnp.float32)
    norm_adj = norm_adj.at[:USER_NUM, USER_NUM:].set(user_item)
    norm_adj = norm_adj.at[USER_NUM:, :USER_NUM].set(item_user)

    # Embeddings ~ N(0, 0.01) like nn.init.normal_(std=0.01).
    embed_user = 0.01 * jax.random.normal(k_eu, (USER_NUM, FACTOR_NUM), jnp.float32)
    embed_item = 0.01 * jax.random.normal(k_ei, (ITEM_NUM, FACTOR_NUM), jnp.float32)

    gu, gi = bpr_forward(norm_adj, user_item, item_user, embed_user, embed_item,
                         d_i, d_j)
    jax.block_until_ready((gu, gi))

    gu_ref, gi_ref = bpr_forward_ref(norm_adj, user_item, item_user,
                                     embed_user, embed_item, d_i, d_j)
    assert gu.shape == (USER_NUM, FACTOR_NUM) and gi.shape == (ITEM_NUM, FACTOR_NUM)
    # bf16 matmul operands with f32 accumulation -> loosened tolerance vs f32 ref.
    assert jnp.allclose(gu, gu_ref, atol=2e-3, rtol=5e-2)
    assert jnp.allclose(gi, gi_ref, atol=2e-3, rtol=5e-2)
    print("KERNEL_OK")
</pallas_src>

<mosaic_0001>
module attributes {stable_mosaic.version = 11 : i64} {
  func.func @bpr_kernel(%arg0: memref<256x256xbf16, #tpu.memory_space<vmem>>, %arg1: memref<256x256xbf16, #tpu.memory_space<vmem>>, %arg2: memref<256x128xbf16, #tpu.memory_space<vmem>>, %arg3: memref<256x1xf32, #tpu.memory_space<vmem>>, %arg4: memref<256x128xf32, #tpu.memory_space<vmem>>) attributes {dimension_semantics = [], scalar_prefetch = 0 : i64, scratch_operands = 0 : i64, tpu.core_type = #tpu.core_type<tc>} {
    %c0 = arith.constant 0 : index
    %c0_0 = arith.constant 0 : index
    %0 = vector.load %arg2[%c0, %c0_0] : memref<256x128xbf16, #tpu.memory_space<vmem>>, vector<256x128xbf16>
    %c0_1 = arith.constant 0 : index
    %c0_2 = arith.constant 0 : index
    %1 = vector.load %arg3[%c0_1, %c0_2] : memref<256x1xf32, #tpu.memory_space<vmem>>, vector<256x1xf32>
    %c0_3 = arith.constant 0 : index
    %c0_4 = arith.constant 0 : index
    %2 = vector.load %arg0[%c0_3, %c0_4] : memref<256x256xbf16, #tpu.memory_space<vmem>>, vector<256x256xbf16>
    %cst = arith.constant dense<0.000000e+00> : vector<256x128xf32>
    %3 = tpu.matmul %2, %0, %cst {dimension_numbers = #tpu.dot_dimension_numbers<[1], [0], [0], [1], [0, 0, 1, 1], [], []>} : vector<256x256xbf16>, vector<256x128xbf16>, vector<256x128xf32> -> vector<256x128xf32>
    %4 = arith.extf %0 : vector<256x128xbf16> to vector<256x128xf32>
    %5 = arith.addf %3, %4 : vector<256x128xf32>
    %c0_5 = arith.constant 0 : index
    %c0_6 = arith.constant 0 : index
    %6 = vector.load %arg4[%c0_5, %c0_6] : memref<256x128xf32, #tpu.memory_space<vmem>>, vector<256x128xf32>
    tpu.vector_store %arg4[%c0_5, %c0_6], %5 {strides = array<i32>} : memref<256x128xf32, #tpu.memory_space<vmem>>, vector<256x128xf32>,
    %c0_7 = arith.constant 0 : index
    %c0_8 = arith.constant 0 : index
    %7 = vector.load %arg1[%c0_7, %c0_8] : memref<256x256xbf16, #tpu.memory_space<vmem>>, vector<256x256xbf16>
    %8 = arith.truncf %5 : vector<256x128xf32> to vector<256x128xbf16>
    %cst_9 = arith.constant dense<0.000000e+00> : vector<256x128xf32>
    %9 = tpu.matmul %7, %8, %cst_9 {dimension_numbers = #tpu.dot_dimension_numbers<[1], [0], [0], [1], [0, 0, 1, 1], [], []>} : vector<256x256xbf16>, vector<256x128xbf16>, vector<256x128xf32> -> vector<256x128xf32>
    %10 = vector.broadcast %1 : vector<256x1xf32> to vector<256x128xf32>
    %11 = arith.mulf %5, %10 : vector<256x128xf32>
    %12 = arith.addf %9, %11 : vector<256x128xf32>
    %c0_10 = arith.constant 0 : index
    %c0_11 = arith.constant 0 : index
    %13 = vector.load %arg4[%c0_10, %c0_11] : memref<256x128xf32, #tpu.memory_space<vmem>>, vector<256x128xf32>
    %cst_12 = arith.constant 5.000000e-01 : f32
    %14 = vector.broadcast %cst_12 : f32 to vector<256x128xf32>
    %15 = arith.mulf %12, %14 : vector<256x128xf32>
    %16 = arith.addf %13, %15 : vector<256x128xf32>
    %c0_13 = arith.constant 0 : index
    %c0_14 = arith.constant 0 : index
    %17 = vector.load %arg4[%c0_13, %c0_14] : memref<256x128xf32, #tpu.memory_space<vmem>>, vector<256x128xf32>
    tpu.vector_store %arg4[%c0_13, %c0_14], %16 {strides = array<i32>} : memref<256x128xf32, #tpu.memory_space<vmem>>, vector<256x128xf32>,
    %18 = arith.truncf %12 : vector<256x128xf32> to vector<256x128xbf16>
    %cst_15 = arith.constant dense<0.000000e+00> : vector<256x128xf32>
    %19 = tpu.matmul %7, %18, %cst_15 {dimension_numbers = #tpu.dot_dimension_numbers<[1], [0], [0], [1], [0, 0, 1, 1], [], []>} : vector<256x256xbf16>, vector<256x128xbf16>, vector<256x128xf32> -> vector<256x128xf32>
    %20 = vector.broadcast %1 : vector<256x1xf32> to vector<256x128xf32>
    %21 = arith.mulf %12, %20 : vector<256x128xf32>
    %22 = arith.addf %19, %21 : vector<256x128xf32>
    %c0_16 = arith.constant 0 : index
    %c0_17 = arith.constant 0 : index
    %23 = vector.load %arg4[%c0_16, %c0_17] : memref<256x128xf32, #tpu.memory_space<vmem>>, vector<256x128xf32>
    %cst_18 = arith.constant 0.333333343 : f32
    %24 = vector.broadcast %cst_18 : f32 to vector<256x128xf32>
    %25 = arith.mulf %22, %24 : vector<256x128xf32>
    %26 = arith.addf %23, %25 : vector<256x128xf32>
    %c0_19 = arith.constant 0 : index
    %c0_20 = arith.constant 0 : index
    %27 = vector.load %arg4[%c0_19, %c0_20] : memref<256x128xf32, #tpu.memory_space<vmem>>, vector<256x128xf32>
    tpu.vector_store %arg4[%c0_19, %c0_20], %26 {strides = array<i32>} : memref<256x128xf32, #tpu.memory_space<vmem>>, vector<256x128xf32>,
    %28 = arith.truncf %22 : vector<256x128xf32> to vector<256x128xbf16>
    %cst_21 = arith.constant dense<0.000000e+00> : vector<256x128xf32>
    %29 = tpu.matmul %7, %28, %cst_21 {dimension_numbers = #tpu.dot_dimension_numbers<[1], [0], [0], [1], [0, 0, 1, 1], [], []>} : vector<256x256xbf16>, vector<256x128xbf16>, vector<256x128xf32> -> vector<256x128xf32>
    %30 = vector.broadcast %1 : vector<256x1xf32> to vector<256x128xf32>
    %31 = arith.mulf %22, %30 : vector<256x128xf32>
    %32 = arith.addf %29, %31 : vector<256x128xf32>
    %c0_22 = arith.constant 0 : index
    %c0_23 = arith.constant 0 : index
    %33 = vector.load %arg4[%c0_22, %c0_23] : memref<256x128xf32, #tpu.memory_space<vmem>>, vector<256x128xf32>
    %cst_24 = arith.constant 2.500000e-01 : f32
    %34 = vector.broadcast %cst_24 : f32 to vector<256x128xf32>
    %35 = arith.mulf %32, %34 : vector<256x128xf32>
    %36 = arith.addf %33, %35 : vector<256x128xf32>
    %c0_25 = arith.constant 0 : index
    %c0_26 = arith.constant 0 : index
    %37 = vector.load %arg4[%c0_25, %c0_26] : memref<256x128xf32, #tpu.memory_space<vmem>>, vector<256x128xf32>
    tpu.vector_store %arg4[%c0_25, %c0_26], %36 {strides = array<i32>} : memref<256x128xf32, #tpu.memory_space<vmem>>, vector<256x128xf32>,
    %38 = arith.truncf %32 : vector<256x128xf32> to vector<256x128xbf16>
    %cst_27 = arith.constant dense<0.000000e+00> : vector<256x128xf32>
    %39 = tpu.matmul %7, %38, %cst_27 {dimension_numbers = #tpu.dot_dimension_numbers<[1], [0], [0], [1], [0, 0, 1, 1], [], []>} : vector<256x256xbf16>, vector<256x128xbf16>, vector<256x128xf32> -> vector<256x128xf32>
    %40 = vector.broadcast %1 : vector<256x1xf32> to vector<256x128xf32>
    %41 = arith.mulf %32, %40 : vector<256x128xf32>
    %42 = arith.addf %39, %41 : vector<256x128xf32>
    %c0_28 = arith.constant 0 : index
    %c0_29 = arith.constant 0 : index
    %43 = vector.load %arg4[%c0_28, %c0_29] : memref<256x128xf32, #tpu.memory_space<vmem>>, vector<256x128xf32>
    %cst_30 = arith.constant 1.000000e+00 : f32
    %44 = vector.broadcast %cst_30 : f32 to vector<256x128xf32>
    %45 = arith.mulf %42, %44 : vector<256x128xf32>
    %46 = arith.addf %43, %45 : vector<256x128xf32>
    %c0_31 = arith.constant 0 : index
    %c0_32 = arith.constant 0 : index
    %47 = vector.load %arg4[%c0_31, %c0_32] : memref<256x128xf32, #tpu.memory_space<vmem>>, vector<256x128xf32>
    tpu.vector_store %arg4[%c0_31, %c0_32], %46 {strides = array<i32>} : memref<256x128xf32, #tpu.memory_space<vmem>>, vector<256x128xf32>,
    return
  }
}

</mosaic_0001>

<bundles_post_ra>
// kernel: tpu_custom_call.1
= control target key start
LH: loop header
LB: loop body
LE: loop exit
PB: predicated region body
PF: predicated region fallthrough
CT: control target
= control target key end

     0   :  { %9 = vsyncpa [#allocation3], 0  ;;  %s5022_s0 = inlined_call_operand.vmem [shape: bf16[256,256], index: 0, kind: input, shape index: {}]   ;;  %s5023_s1 = inlined_call_operand.hbm [shape: bf16[256,256], index: 1, kind: input, shape index: {}]   ;;  %s5024_s2 = inlined_call_operand.hbm [shape: bf16[256,128], index: 2, kind: input, shape index: {}]   ;;  %s5025_s3 = inlined_call_operand.vmem [shape: f32[256,1], index: 3, kind: input, shape index: {}]   ;;  %s5026_s4 = inlined_call_operand.hbm [shape: f32[256,128], index: 4, kind: output, shape index: {}]  }
   0x1   :  { %10 = vsyncpa [#allocation6], 0 }
   0x2   :  { %11 = vsyncpa [#allocation4], 0  ;;  %s3202_s15 = smov [#allocation2]  }
   0x3   :  { %s19_s16 = sshll.u32 %s3202_s15, 4  ;;  %s20_s16 = int_to_ptr.vmem [resolvable:$true] %s19_s16 }
   0x4   :  { %s3144_s17 = scalar_lea.vmem %s20_s16, 4096  ;;  %p3149_p1 = scmp.lt.s32.totalorder %s20_s16, %s20_s16 }
   0x5   :  { %p3145_p0 = scmp.ne.s32.totalorder %s20_s16, %s3144_s17  ;;  %p3150_p2 = scmp.lt.s32.totalorder %s3144_s17, %s3144_s17 }
   0x7   :  { %p3151_p3 = por %p3150_p2, %p3149_p1 }
   0x9   :  { %p3152_p4 = pnand %p3151_p3, %p3145_p0 }
   0xb   :  { %3155 = shalt.err (!%p3152_p4)
}
   0xc   :  { %s3203_s18 = smov 128   ;;  %s3204_s19 = smov 8  }
   0xd   :  { %25 = dma.hbm_to_vmem [thread:$0]  %s5023_s1, 4096, %s20_s16, [#allocation3], %s3203_s18, %s3203_s18, %s3204_s19  }
   0xe   :  { %s3205_s22 = smov [#allocation5]  }
   0xf   :  { %s31_s23 = sshll.u32 %s3205_s22, 4  ;;  %s32_s23 = int_to_ptr.vmem [resolvable:$true] %s31_s23 }
  0x10   :  { %s3164_s24 = scalar_lea.vmem %s32_s23, 2048  ;;  %p3169_p6 = scmp.lt.s32.totalorder %s32_s23, %s32_s23 }
  0x11   :  { %p3165_p5 = scmp.ne.s32.totalorder %s32_s23, %s3164_s24  ;;  %p3170_p7 = scmp.lt.s32.totalorder %s3164_s24, %s3164_s24 }
  0x13   :  { %p3171_p8 = por %p3170_p7, %p3169_p6 }
  0x15   :  { %p3172_p9 = pnand %p3171_p8, %p3165_p5 }
  0x17   :  { %3175 = shalt.err (!%p3172_p9)
}
  0x18   :  { %s3206_s25 = smov 64   ;;  %s3207_s26 = smov 4  }
  0x19   :  { %37 = dma.hbm_to_vmem [thread:$0]  %s5024_s2, 2048, %s32_s23, [#allocation6], %s3206_s25, %s3206_s25, %s3207_s26  }
  0x1a   :  { %3196 = dma.done.wait [#allocation3], 4096  }
  0x1b   :  { %3197 = vsyncadd [#allocation3], 4294963200 }
  0x1c   :  { %3198 = dma.done.wait [#allocation6], 2048  }
  0x1d   :  { %3199 = vsyncadd [#allocation6], 4294965248  ;;  %v3208_v0 = vmov 0   ;;  %v3244_v1 = vld [vmem:[#allocation5 + $0x78] sm:$0xff]   ;;  %v3248_v3 = vld [vmem:[#allocation5 + $0x70] sm:$0xff]  }
  0x1e   :  { %2974 = vset.pattern.permute.xlu0 %v3208_v0  ;;  %2975 = vset.pattern.permute.xlu1 %v3208_v0  ;;  %v3246_v2 = vld [vmem:[#allocation5 + $0x38] sm:$0xff]   ;;  %v3250_v4 = vld [vmem:[#allocation5 + $0x30] sm:$0xff]   ;;  %v3252_v5 = vld [vmem:[#allocation5 + $0x68] sm:$0xff]  }
  0x1f   :  { %2390 = vmatprep.subr.bf16.mxu0 %v3244_v1  ;;  %2950 = vmatprep.subr.bf16.mxu1 %v3244_v1  ;;  %v3260_v6 = vld [vmem:[#allocation5 + $0x28] sm:$0xff]   ;;  %v3262_v7 = vld [vmem:[#allocation5 + $0x60] sm:$0xff]   ;;  %v3276_v11 = vld [vmem:[#allocation5 + $0x58] sm:$0xff]  }
  0x20   :  { %2391 = vmatpush3.bf16.msra.mxu0 %v3246_v2  ;;  %2958 = vmatpush3.bf16.msra.mxu1 %v3246_v2  ;;  %v2994_v8 = vld [vmem:[%s5022_s0 + $0x4] ss:$8 sps:$4 sm:$0xff]   ;;  %v109_v12 = vld [vmem:[%s5025_s3 + $0xf0] sm:$0xff]  ;;  %v3285_v13 = vld [vmem:[#allocation5 + $0x18] sm:$0xff]  }
  0x21   :  { %2392 = vmatprep.subr.bf16.mxu0 %v3248_v3  ;;  %2951 = vmatprep.subr.bf16.mxu1 %v3248_v3  ;;  %v2997_v9 = vld [vmem:[%s5022_s0 + $0x84] ss:$8 sps:$4 sm:$0xff]   ;;  %v110_v14 = vld [vmem:[%s5025_s3 + $0xf8] sm:$0xff]  ;;  %v3290_v15 = vld [vmem:[#allocation5 + $0x50] sm:$0xff]  }
  0x22   :  { %v3274_v10 = vld [vmem:[#allocation5 + $0x20] sm:$0xff]   ;;  %463 = vmatprep.mubr.bf16.mxu0 %v2994_v8  ;;  %527 = vmatprep.mubr.bf16.mxu1 %v2997_v9  ;;  %v93_v16 = vld [vmem:[%s5025_s3 + $0x70] sm:$0xff]  ;;  %v94_v18 = vld [vmem:[%s5025_s3 + $0x78] sm:$0xff] }
  0x23   :  { %824 = vperm.xlu0 %2974, %v109_v12   ;;  %744 = vperm.xlu1 %2975, %v93_v16   ;;  %v107_v17 = vld [vmem:[%s5025_s3 + $0xe0] sm:$0xff]  ;;  %v3305_v19 = vld [vmem:[#allocation5 + $0x10] sm:$0xff]   ;;  %v3307_v20 = vld [vmem:[#allocation5 + $0x48] sm:$0xff]  }
  0x24   :  { %2393 = vmatpush3.bf16.msra.mxu0 %v3250_v4  ;;  %2959 = vmatpush3.bf16.msra.mxu1 %v3250_v4  ;;  %5220 = vst [vmem:[#allocation11_spill] sm:$0xff] %v3305_v19  ;;  %5221 = vst [vmem:[#allocation12_spill] sm:$0xff] %v3307_v20  ;;  %v108_v21 = vld [vmem:[%s5025_s3 + $0xe8] sm:$0xff]  ;;  %v91_v22 = vld [vmem:[%s5025_s3 + $0x60] sm:$0xff] }
  0x25   :  { %2394 = vmatprep.subr.bf16.mxu0 %v3252_v5  ;;  %2952 = vmatprep.subr.bf16.mxu1 %v3252_v5  ;;  %v3319_v23 = vld [vmem:[#allocation5 + $0x8] sm:$0xff]   ;;  %v3321_v24 = vld [vmem:[#allocation5 + $0x40] sm:$0xff]   ;;  %v105_v26 = vld [vmem:[%s5025_s3 + $0xd0] sm:$0xff] }
  0x26   :  { %5222 = vst [vmem:[#allocation13_spill] sm:$0xff] %v3319_v23  ;;  %5223 = vst [vmem:[#allocation14_spill] sm:$0xff] %v3321_v24  ;;  %v92_v25 = vld [vmem:[%s5025_s3 + $0x68] sm:$0xff]  ;;  %v3333_v27 = vld [vmem:[#allocation5] sm:$0xff]  }
  0x27   :  { %829 = vperm.xlu0 %2974, %v110_v14   ;;  %749 = vperm.xlu1 %2975, %v94_v18   ;;  %5224 = vst [vmem:[#allocation15_spill] sm:$0xff] %v3333_v27  ;;  %v106_v28 = vld [vmem:[%s5025_s3 + $0xd8] sm:$0xff]  ;;  %v89_v29 = vld [vmem:[%s5025_s3 + $0x50] sm:$0xff]  ;;  %v2992_v30 = vld [vmem:[%s5022_s0] ss:$8 sps:$4 sm:$0xff]  }
  0x28   :  { %2395 = vmatpush3.bf16.msra.mxu0 %v3260_v6  ;;  %2960 = vmatpush3.bf16.msra.mxu1 %v3260_v6  ;;  %v2995_v31 = vld [vmem:[%s5022_s0 + $0x80] ss:$8 sps:$4 sm:$0xff]   ;;  %v2998_v32 = vld [vmem:[%s5022_s0 + $0x14] ss:$8 sps:$4 sm:$0xff]   ;;  %v3002_v37 = vld [vmem:[%s5022_s0 + $0x10] ss:$8 sps:$4 sm:$0xff]  }
  0x29   :  { %2396 = vmatprep.subr.bf16.mxu0 %v3262_v7  ;;  %2953 = vmatprep.subr.bf16.mxu1 %v3262_v7  ;;  %v3000_v33 = vld [vmem:[%s5022_s0 + $0x94] ss:$8 sps:$4 sm:$0xff]   ;;  %v103_v35 = vld [vmem:[%s5025_s3 + $0xc0] sm:$0xff]  ;;  %v104_v36 = vld [vmem:[%s5025_s3 + $0xc8] sm:$0xff] }
  0x2a   :  { %v90_v34 = vld [vmem:[%s5025_s3 + $0x58] sm:$0xff]  ;;  %v87_v39 = vld [vmem:[%s5025_s3 + $0x40] sm:$0xff]  ;;  %v88_v42 = vld [vmem:[%s5025_s3 + $0x48] sm:$0xff] }
  0x2b   :  { %814 = vperm.xlu0 %2974, %v107_v17   ;;  %819 = vperm.xlu1 %2975, %v108_v21   ;;  %v3003_v38 = vld [vmem:[%s5022_s0 + $0x90] ss:$8 sps:$4 sm:$0xff]   ;;  %v3004_v40 = vld [vmem:[%s5022_s0 + $0x24] ss:$8 sps:$4 sm:$0xff]   ;;  %v3008_v46 = vld [vmem:[%s5022_s0 + $0x20] ss:$8 sps:$4 sm:$0xff]  }
  0x2c   :  { %2397 = vmatpush3.bf16.msra.mxu0 %v3274_v10  ;;  %2961 = vmatpush3.bf16.msra.mxu1 %v3274_v10  ;;  %v3006_v41 = vld [vmem:[%s5022_s0 + $0xa4] ss:$8 sps:$4 sm:$0xff]   ;;  %v101_v43 = vld [vmem:[%s5025_s3 + $0xb0] sm:$0xff]  ;;  %v102_v44 = vld [vmem:[%s5025_s3 + $0xb8] sm:$0xff] }
  0x2d   :  { %2398 = vmatprep.subr.bf16.mxu0 %v3276_v11  ;;  %2954 = vmatprep.subr.bf16.mxu1 %v3276_v11  ;;  %v85_v45 = vld [vmem:[%s5025_s3 + $0x30] sm:$0xff]  ;;  %v3009_v47 = vld [vmem:[%s5022_s0 + $0xa0] ss:$8 sps:$4 sm:$0xff]   ;;  %v86_v50 = vld [vmem:[%s5025_s3 + $0x38] sm:$0xff] }
  0x2e   :  { %v3010_v48 = vld [vmem:[%s5022_s0 + $0x34] ss:$8 sps:$4 sm:$0xff]   ;;  %v99_v51 = vld [vmem:[%s5025_s3 + $0xa0] sm:$0xff]  ;;  %v100_v52 = vld [vmem:[%s5025_s3 + $0xa8] sm:$0xff] }
  0x2f   :  { %734 = vperm.xlu0 %2974, %v91_v22   ;;  %739 = vperm.xlu1 %2975, %v92_v25   ;;  %v3012_v49 = vld [vmem:[%s5022_s0 + $0xb4] ss:$8 sps:$4 sm:$0xff]   ;;  %v83_v53 = vld [vmem:[%s5025_s3 + $0x20] sm:$0xff]  ;;  %v3014_v54 = vld [vmem:[%s5022_s0 + $0x30] ss:$8 sps:$4 sm:$0xff]  }
  0x30   :  { %2399 = vmatpush3.bf16.msra.mxu0 %v3285_v13  ;;  %2962 = vmatpush3.bf16.msra.mxu1 %v3285_v13  ;;  %v3015_v55 = vld [vmem:[%s5022_s0 + $0xb0] ss:$8 sps:$4 sm:$0xff]   ;;  %v3016_v56 = vld [vmem:[%s5022_s0 + $0x44] ss:$8 sps:$4 sm:$0xff]   ;;  %v3020_v62 = vld [vmem:[%s5022_s0 + $0x40] ss:$8 sps:$4 sm:$0xff]  }
  0x31   :  { %2400 = vmatprep.subr.bf16.mxu0 %v3290_v15  ;;  %2955 = vmatprep.subr.bf16.mxu1 %v3290_v15  ;;  %v3018_v57 = vld [vmem:[%s5022_s0 + $0xc4] ss:$8 sps:$4 sm:$0xff]   ;;  %v97_v59 = vld [vmem:[%s5025_s3 + $0x90] sm:$0xff]  ;;  %v98_v60 = vld [vmem:[%s5025_s3 + $0x98] sm:$0xff] }
  0x32   :  { %v84_v58 = vld [vmem:[%s5025_s3 + $0x28] sm:$0xff]  ;;  %v81_v61 = vld [vmem:[%s5025_s3 + $0x10] sm:$0xff]  ;;  %v82_v9 = vld [vmem:[%s5025_s3 + $0x18] sm:$0xff] }
  0x33   :  { %804 = vperm.xlu0 %2974, %v105_v26   ;;  %809 = vperm.xlu1 %2975, %v106_v28   ;;  %v3021_v63 = vld [vmem:[%s5022_s0 + $0xc0] ss:$8 sps:$4 sm:$0xff]   ;;  %v3022_v0 = vld [vmem:[%s5022_s0 + $0x54] ss:$8 sps:$4 sm:$0xff]   ;;  %v3026_v17 = vld [vmem:[%s5022_s0 + $0x50] ss:$8 sps:$4 sm:$0xff]  }
  0x34   :  { %2401 = vmatpush3.bf16.msra.mxu0 %v3305_v19  ;;  %2963 = vmatpush3.bf16.msra.mxu1 %v3305_v19  ;;  %v3024_v8 = vld [vmem:[%s5022_s0 + $0xd4] ss:$8 sps:$4 sm:$0xff]   ;;  %v95_v12 = vld [vmem:[%s5025_s3 + $0x80] sm:$0xff]  ;;  %v96_v14 = vld [vmem:[%s5025_s3 + $0x88] sm:$0xff] }
  0x35   :  { %2402 = vmatprep.subr.bf16.mxu0 %v3307_v20  ;;  %2956 = vmatprep.subr.bf16.mxu1 %v3307_v20  ;;  %v79_v16 = vld [vmem:[%s5025_s3] sm:$0xff]  ;;  %v3027_v18 = vld [vmem:[%s5022_s0 + $0xd0] ss:$8 sps:$4 sm:$0xff]   ;;  %v80_v25 = vld [vmem:[%s5025_s3 + $0x8] sm:$0xff] }
  0x36   :  { %v3028_v21 = vld [vmem:[%s5022_s0 + $0x64] ss:$8 sps:$4 sm:$0xff]   ;;  %v3032_v26 = vld [vmem:[%s5022_s0 + $0x60] ss:$8 sps:$4 sm:$0xff]  }
  0x37   :  { %724 = vperm.xlu0 %2974, %v89_v29   ;;  %729 = vperm.xlu1 %2975, %v90_v34   ;;  %v3030_v22 = vld [vmem:[%s5022_s0 + $0xe4] ss:$8 sps:$4 sm:$0xff]   ;;  %v3033_v28 = vld [vmem:[%s5022_s0 + $0xe0] ss:$8 sps:$4 sm:$0xff]   ;;  %v3034_v29 = vld [vmem:[%s5022_s0 + $0x74] ss:$8 sps:$4 sm:$0xff]  }
  0x38   :  { %2403 = vmatpush3.bf16.msra.mxu0 %v3319_v23  ;;  %2964 = vmatpush3.bf16.msra.mxu1 %v3319_v23  ;;  %v157_v23 = vunpack.c.l.bf16 %v3246_v2 }
  0x39   :  { %2404 = vmatprep.subr.bf16.mxu0 %v3321_v24  ;;  %2957 = vmatprep.subr.bf16.mxu1 %v3321_v24 }
  0x3b   :  { %794 = vperm.xlu0 %2974, %v103_v35   ;;  %799 = vperm.xlu1 %2975, %v104_v36  }
  0x3c   :  { %2405 = vmatpush3.bf16.msra.mxu0 %v3333_v27  ;;  %2965 = vmatpush3.bf16.msra.mxu1 %v3333_v27 }
  0x3f   :  { %464 = vmatmul.mubr.bf16.vlgmr.msra.gmra.mxu0 %v2992_v30  ;;  %528 = vmatmul.mubr.bf16.vlgmr.msra.gmra.mxu1 %v2995_v31  ;;  %v3036_v30 = vld [vmem:[%s5022_s0 + $0xf4] ss:$8 sps:$4 sm:$0xff]   ;;  %v3038_v31 = vld [vmem:[%s5022_s0 + $0x70] ss:$8 sps:$4 sm:$0xff]  }
  0x40   :  { %471 = vmatprep.mubr.bf16.mxu0 %v2998_v32  ;;  %535 = vmatprep.mubr.bf16.mxu1 %v3000_v33  ;;  %v3039_v32 = vld [vmem:[%s5022_s0 + $0xf0] ss:$8 sps:$4 sm:$0xff]   ;;  %v3500_v33 = vld [vmem:[#allocation2 + $0x4] ss:$8 sps:$4 sm:$0xff]   ;;  %s3209_s0 = smov [#allocation7]  }
  0x41   :  { %714 = vperm.xlu0 %2974, %v87_v39   ;;  %719 = vperm.xlu1 %2975, %v88_v42   ;;  %5225 = vst [vmem:[#allocation16_spill] sm:$0xff] %v3500_v33  ;;  %s2297_s26 = sshll.u32 %s3209_s0, 4  ;;  %s2298_s26 = int_to_ptr.vmem [resolvable:$true] %s2297_s26 }
  0x42   :  { %s3176_s27 = scalar_lea.vmem %s2298_s26, 4096  ;;  %p3181_p11 = scmp.lt.s32.totalorder %s2298_s26, %s2298_s26 }
  0x43   :  { %p3177_p10 = scmp.ne.s32.totalorder %s2298_s26, %s3176_s27  ;;  %p3182_p12 = scmp.lt.s32.totalorder %s3176_s27, %s3176_s27 }
  0x45   :  { %784 = vperm.xlu0 %2974, %v101_v43   ;;  %789 = vperm.xlu1 %2975, %v102_v44   ;;  %p3183_p13 = por %p3182_p12, %p3181_p11 }
  0x47   :  { %472 = vmatmul.mubr.bf16.gmra.mxu0 %v3002_v37  ;;  %536 = vmatmul.mubr.bf16.gmra.mxu1 %v3003_v38  ;;  %p3184_p0 = pnand %p3183_p13, %p3177_p10 }
  0x48   :  { %479 = vmatprep.mubr.bf16.mxu0 %v3004_v40  ;;  %543 = vmatprep.mubr.bf16.mxu1 %v3006_v41 }
  0x49   :  { %704 = vperm.xlu0 %2974, %v85_v45   ;;  %709 = vperm.xlu1 %2975, %v86_v50  }
  0x4d   :  { %774 = vperm.xlu0 %2974, %v99_v51   ;;  %779 = vperm.xlu1 %2975, %v100_v52  }
  0x4f   :  { %480 = vmatmul.mubr.bf16.gmra.mxu0 %v3008_v46  ;;  %544 = vmatmul.mubr.bf16.gmra.mxu1 %v3009_v47 }
  0x50   :  { %487 = vmatprep.mubr.bf16.mxu0 %v3010_v48  ;;  %551 = vmatprep.mubr.bf16.mxu1 %v3012_v49 }
  0x51   :  { %694 = vperm.xlu0 %2974, %v83_v53   ;;  %699 = vperm.xlu1 %2975, %v84_v58  }
  0x55   :  { %764 = vperm.xlu0 %2974, %v97_v59   ;;  %769 = vperm.xlu1 %2975, %v98_v60  }
  0x57   :  { %488 = vmatmul.mubr.bf16.gmra.mxu0 %v3014_v54  ;;  %552 = vmatmul.mubr.bf16.gmra.mxu1 %v3015_v55 }
  0x58   :  { %495 = vmatprep.mubr.bf16.mxu0 %v3016_v56  ;;  %559 = vmatprep.mubr.bf16.mxu1 %v3018_v57 }
  0x59   :  { %684 = vperm.xlu0 %2974, %v81_v61   ;;  %689 = vperm.xlu1 %2975, %v82_v9  }
  0x5d   :  { %754 = vperm.xlu0 %2974, %v95_v12   ;;  %759 = vperm.xlu1 %2975, %v96_v14  }
  0x5f   :  { %496 = vmatmul.mubr.bf16.gmra.mxu0 %v3020_v62  ;;  %560 = vmatmul.mubr.bf16.gmra.mxu1 %v3021_v63 }
  0x60   :  { %503 = vmatprep.mubr.bf16.mxu0 %v3022_v0  ;;  %567 = vmatprep.mubr.bf16.mxu1 %v3024_v8 }
  0x61   :  { %674 = vperm.xlu0 %2974, %v79_v16   ;;  %679 = vperm.xlu1 %2975, %v80_v25  }
  0x67   :  { %504 = vmatmul.mubr.bf16.gmra.mxu0 %v3026_v17  ;;  %568 = vmatmul.mubr.bf16.gmra.mxu1 %v3027_v18 }
  0x68   :  { %511 = vmatprep.mubr.bf16.mxu0 %v3028_v21  ;;  %575 = vmatprep.mubr.bf16.mxu1 %v3030_v22 }
  0x6f   :  { %512 = vmatmul.mubr.bf16.gmra.mxu0 %v3032_v26  ;;  %576 = vmatmul.mubr.bf16.gmra.mxu1 %v3033_v28 }
  0x70   :  { %519 = vmatprep.mubr.bf16.mxu0 %v3034_v29  ;;  %583 = vmatprep.mubr.bf16.mxu1 %v3036_v30 }
  0x77   :  { %520 = vmatmul.mubr.bf16.gmra.mxu0 %v3038_v31  ;;  %584 = vmatmul.mubr.bf16.gmra.mxu1 %v3039_v32 }
  0x78   :  { %1056 = vmatprep.mubr.bf16.mxu1 %v3500_v33  ;;  %1393 = vmatprep.mubr.bf16.mxu0 %v3500_v33 }
  0xff   :  { %v2406_v34 = vpop.f32.mrf.mxu0  ;;  %v2454_v35 = vpop.f32.mrf.mxu1 }
 0x101   :  { %v2407_v36 = vpop.f32.mrf.mxu0  ;;  %v2455_v37 = vpop.f32.mrf.mxu1 }
 0x102   :  { %v3504_v38 = vadd.f32 %v2407_v36, %v2406_v34  ;;  %v3506_v39 = vadd.f32 %v2455_v37, %v2454_v35 }
 0x103   :  { %v3508_v40 = vpop.f32.mrf.mxu0  ;;  %v3510_v41 = vpop.f32.mrf.mxu1 }
 0x104   :  { %5226 = vst [vmem:[#allocation17_spill] sm:$0xff] %v3504_v38  ;;  %5227 = vst [vmem:[#allocation18_spill] sm:$0xff] %v3506_v39 }
 0x105   :  { %5228 = vst [vmem:[#allocation19_spill] sm:$0xff] %v3508_v40  ;;  %5229 = vst [vmem:[#allocation20_spill] sm:$0xff] %v3510_v41  ;;  %v3512_v42 = vpop.f32.mrf.mxu0  ;;  %v3514_v43 = vpop.f32.mrf.mxu1  ;;  %v172_v41 = vunpack.c.h.bf16 %v3248_v3 }
 0x106   :  { %5230 = vst [vmem:[#allocation21_spill] sm:$0xff] %v3512_v42  ;;  %5231 = vst [vmem:[#allocation22_spill] sm:$0xff] %v3514_v43  ;;  %v174_v43 = vunpack.c.h.bf16 %v3244_v1 }
 0x107   :  { %v2412_v44 = vpop.f32.mrf.mxu0  ;;  %v2460_v45 = vpop.f32.mrf.mxu1 }
 0x109   :  { %v2413_v46 = vpop.f32.mrf.mxu0  ;;  %v2461_v47 = vpop.f32.mrf.mxu1 }
 0x10a   :  { %v3516_v48 = vadd.f32 %v2413_v46, %v2412_v44  ;;  %v3518_v49 = vadd.f32 %v2461_v47, %v2460_v45 }
 0x10b   :  { %v3520_v50 = vpop.f32.mrf.mxu0  ;;  %v3522_v51 = vpop.f32.mrf.mxu1 }
 0x10c   :  { %5232 = vst [vmem:[#allocation23_spill] sm:$0xff] %v3516_v48  ;;  %5233 = vst [vmem:[#allocation24_spill] sm:$0xff] %v3518_v49 }
 0x10d   :  { %5234 = vst [vmem:[#allocation25_spill] sm:$0xff] %v3520_v50  ;;  %5235 = vst [vmem:[#allocation26_spill] sm:$0xff] %v3522_v51  ;;  %v3524_v52 = vpop.f32.mrf.mxu0  ;;  %v3526_v53 = vpop.f32.mrf.mxu1 }
 0x10e   :  { %5236 = vst [vmem:[#allocation27_spill] sm:$0xff] %v3524_v52  ;;  %5237 = vst [vmem:[#allocation28_spill] sm:$0xff] %v3526_v53  ;;  %v158_v53 = vunpack.c.h.bf16 %v3246_v2 }
 0x10f   :  { %v2418_v54 = vpop.f32.mrf.mxu0  ;;  %v3528_v55 = vpop.f32.mrf.mxu1 }
 0x110   :  { %5238 = vst [vmem:[#allocation29_spill] sm:$0xff] %v3528_v55 }
 0x111   :  { %v2419_v56 = vpop.f32.mrf.mxu0  ;;  %v3530_v57 = vpop.f32.mrf.mxu1 }
 0x112   :  { %5239 = vst [vmem:[#allocation30_spill] sm:$0xff] %v3530_v57  ;;  %v3532_v58 = vadd.f32 %v2419_v56, %v2418_v54  ;;  %v171_v57 = vunpack.c.l.bf16 %v3248_v3  ;;  %v155_v3 = vunpack.c.l.bf16 %v3250_v4 }
 0x113   :  { %v3534_v59 = vpop.f32.mrf.mxu0  ;;  %v3536_v60 = vpop.f32.mrf.mxu1 }
 0x114   :  { %5240 = vst [vmem:[#allocation31_spill] sm:$0xff] %v3532_v58  ;;  %5241 = vst [vmem:[#allocation32_spill] sm:$0xff] %v3534_v59  ;;  %v173_v58 = vunpack.c.l.bf16 %v3244_v1 }
 0x115   :  { %5242 = vst [vmem:[#allocation33_spill] sm:$0xff] %v3536_v60  ;;  %v3538_v61 = vpop.f32.mrf.mxu0  ;;  %v3540_v62 = vpop.f32.mrf.mxu1 }
 0x116   :  { %5243 = vst [vmem:[#allocation34_spill] sm:$0xff] %v3538_v61  ;;  %5244 = vst [vmem:[#allocation35_spill] sm:$0xff] %v3540_v62  ;;  %v170_v61 = vunpack.c.h.bf16 %v3252_v5 }
 0x117   :  { %v3542_v63 = vpop.f32.mrf.mxu0  ;;  %v3544_v0 = vpop.f32.mrf.mxu1 }
 0x118   :  { %5245 = vst [vmem:[#allocation36_spill] sm:$0xff] %v3542_v63 }
 0x119   :  { %v3546_v8 = vpop.f32.mrf.mxu0  ;;  %v3548_v9 = vpop.f32.mrf.mxu1 }
 0x11a   :  { %5246 = vst [vmem:[#allocation37_spill] sm:$0xff] %v3546_v8 }
 0x11b   :  { %v3550_v12 = vpop.f32.mrf.mxu0  ;;  %v3552_v14 = vpop.f32.mrf.mxu1 }
 0x11d   :  { %v3554_v16 = vpop.f32.mrf.mxu0  ;;  %v3556_v17 = vpop.f32.mrf.mxu1 }
 0x11f   :  { %v3558_v18 = vpop.f32.mrf.mxu0  ;;  %v3560_v21 = vpop.f32.mrf.mxu1 }
 0x121   :  { %v3562_v22 = vpop.f32.mrf.mxu0  ;;  %v3564_v25 = vpop.f32.mrf.mxu1 }
 0x123   :  { %v3566_v26 = vpop.f32.mrf.mxu0  ;;  %v2481_v28 = vpop.f32.mrf.mxu1 }
 0x125   :  { %v3568_v29 = vpop.f32.mrf.mxu0  ;;  %v2482_v30 = vpop.f32.mrf.mxu1 }
 0x127   :  { %v2436_v31 = vpop.f32.mrf.mxu0  ;;  %v2484_v32 = vpop.f32.mrf.mxu1 }
 0x129   :  { %v2437_v34 = vpop.f32.mrf.mxu0  ;;  %v2485_v35 = vpop.f32.mrf.mxu1 }
 0x12b   :  { %v2439_v36 = vpop.f32.mrf.mxu0  ;;  %v2487_v37 = vpop.f32.mrf.mxu1 }
 0x12d   :  { %v2440_v44 = vpop.f32.mrf.mxu0  ;;  %v2488_v45 = vpop.f32.mrf.mxu1 }
 0x12e   :  { %v2489_v63 = vadd.f32 %v2488_v45, %v2487_v37  ;;  %v5264_v37 = vld [vmem:[#allocation36_spill] sm:$0xff]  ;;  %v163_v45 = vunpack.c.l.bf16 %v3290_v15 }
 0x12f   :  { %v2442_v46 = vpop.f32.mrf.mxu0  ;;  %v2490_v47 = vpop.f32.mrf.mxu1 }
 0x131   :  { %v2443_v54 = vpop.f32.mrf.mxu0  ;;  %v2491_v56 = vpop.f32.mrf.mxu1 }
 0x132   :  { %v2492_v55 = vadd.f32 %v2491_v56, %v2490_v47  ;;  %v5268_v47 = vld [vmem:[#allocation30_spill] sm:$0xff] }
 0x133   :  { %v2445_v33 = vpop.f32.mrf.mxu0  ;;  %v2493_v38 = vpop.f32.mrf.mxu1 }
 0x135   :  { %v2446_v39 = vpop.f32.mrf.mxu0  ;;  %v2494_v48 = vpop.f32.mrf.mxu1 }
 0x136   :  { %v2495_v24 = vadd.f32 %v2494_v48, %v2493_v38  ;;  %v156_v38 = vunpack.c.h.bf16 %v3250_v4  ;;  %v2447_v48 = vadd.f32 %v2446_v39, %v2445_v33  ;;  %v2441_v33 = vadd.f32 %v2440_v44, %v2439_v36  ;;  %v5265_v44 = vld [vmem:[#allocation37_spill] sm:$0xff] }
 0x137   :  { %v2448_v42 = vpop.f32.mrf.mxu0  ;;  %v2496_v40 = vpop.f32.mrf.mxu1 }
 0x138   :  { %v3578_v62 = vadd.f32 %v2495_v24, %v172_v41  ;;  %v3597_v39 = vadd.f32 %v2447_v48, %v156_v38  ;;  %v168_v41 = vunpack.c.h.bf16 %v3262_v7  ;;  %v5271_v48 = vld [vmem:[#allocation32_spill] sm:$0xff] }
 0x139   :  { %v2449_v27 = vpop.f32.mrf.mxu0  ;;  %v2497_v49 = vpop.f32.mrf.mxu1 }
 0x13a   :  { %v2450_v51 = vadd.f32 %v2449_v27, %v2448_v42  ;;  %v2498_v20 = vadd.f32 %v2497_v49, %v2496_v40  ;;  %5247 = vst [vmem:[#allocation38_spill] sm:$0xff] %v3578_v62  ;;  %v169_v42 = vunpack.c.l.bf16 %v3252_v5  ;;  %v2444_v49 = vadd.f32 %v2443_v54, %v2442_v46  ;;  %5253 = vst [vmem:[#allocation44_spill] sm:$0xff] %v3597_v39  ;;  %v5267_v46 = vld [vmem:[#allocation29_spill] sm:$0xff] }
 0x13b   :  { %v2451_v52 = vpop.f32.mrf.mxu0  ;;  %v2499_v50 = vpop.f32.mrf.mxu1  ;;  %v2483_v5 = vadd.f32 %v2482_v30, %v2481_v28  ;;  %v165_v30 = vunpack.c.l.bf16 %v3276_v11  ;;  %v2468_v54 = vadd.f32 %v5268_v47, %v5267_v46 }
 0x13c   :  { %v3580_v60 = vadd.f32 %v2450_v51, %v157_v23  ;;  %v3582_v2 = vadd.f32 %v2498_v20, %v173_v58  ;;  %v154_v20 = vunpack.c.h.bf16 %v3260_v6  ;;  %v153_v51 = vunpack.c.l.bf16 %v3260_v6 }
 0x13d   :  { %v2452_v59 = vpop.f32.mrf.mxu0  ;;  %v2500_v19 = vpop.f32.mrf.mxu1  ;;  %v3622_v28 = vadd.f32 %v2483_v5, %v168_v41 }
 0x13e   :  { %v2453_v8 = vadd.f32 %v2452_v59, %v2451_v52  ;;  %v2501_v1 = vadd.f32 %v2500_v19, %v2499_v50  ;;  %5248 = vst [vmem:[#allocation39_spill] sm:$0xff] %v3580_v60  ;;  %5249 = vst [vmem:[#allocation40_spill] sm:$0xff] %v3582_v2  ;;  %v2486_v19 = vadd.f32 %v2485_v35, %v2484_v32  ;;  %v152_v59 = vunpack.c.h.bf16 %v3274_v10 }
 0x13f   :  { %v3590_v50 = vadd.f32 %v2492_v55, %v171_v57  ;;  %v2438_v52 = vadd.f32 %v2437_v34, %v2436_v31  ;;  %v167_v55 = vunpack.c.l.bf16 %v3262_v7  ;;  %v2480_v57 = vadd.f32 %v3564_v25, %v3560_v21  ;;  %5257 = vst [vmem:[#allocation48_spill] sm:$0xff] %v3622_v28  ;;  %v5261_v34 = vld [vmem:[#allocation33_spill] sm:$0xff] }
 0x140   :  { %v3584_v27 = vadd.f32 %v2453_v8, %v158_v53  ;;  %v3586_v40 = vadd.f32 %v2501_v1, %v174_v43  ;;  %v3600_v43 = vadd.f32 %v2489_v63, %v170_v61  ;;  %v3605_v53 = vadd.f32 %v2444_v49, %v155_v3  ;;  %v5270_v1 = vld [vmem:[#allocation11_spill] sm:$0xff] }
 0x141   :  { %5252 = vst [vmem:[#allocation43_spill] sm:$0xff] %v3590_v50  ;;  %v670_v4 = vpack.c.bf16 %v3578_v62, %v3590_v50  ;;  %v3610_v58 = vadd.f32 %v2486_v19, %v169_v42  ;;  %v2435_v61 = vadd.f32 %v3568_v29, %v3566_v26  ;;  %v3615_v63 = vadd.f32 %v2441_v33, %v154_v20  ;;  %v5272_v42 = vld [vmem:[#allocation34_spill] sm:$0xff]  ;;  %v5274_v19 = vld [vmem:[#allocation12_spill] sm:$0xff] }
 0x142   :  { %5250 = vst [vmem:[#allocation41_spill] sm:$0xff] %v3584_v27  ;;  %5251 = vst [vmem:[#allocation42_spill] sm:$0xff] %v3586_v40  ;;  %v671_v24 = vpack.c.bf16 %v3586_v40, %v3582_v2  ;;  %v663_v23 = vpack.c.bf16 %v3584_v27, %v3580_v60  ;;  %v662_v6 = vpack.c.bf16 %v3597_v39, %v3605_v53  ;;  %v166_v8 = vunpack.c.h.bf16 %v3276_v11  ;;  %v5262_v11 = vld [vmem:[#allocation35_spill] sm:$0xff] }
 0x143   :  { %5254 = vst [vmem:[#allocation45_spill] sm:$0xff] %v3605_v53  ;;  %5255 = vst [vmem:[#allocation46_spill] sm:$0xff] %v3610_v58  ;;  %v2477_v7 = vadd.f32 %v3556_v17, %v3552_v14  ;;  %v669_v21 = vpack.c.bf16 %v3600_v43, %v3610_v58  ;;  %v151_v25 = vunpack.c.l.bf16 %v3274_v10  ;;  %v2432_v26 = vadd.f32 %v3562_v22, %v3558_v18 }
 0x144   :  { %2502 = vmatprep.subr.bf16.mxu1 %v671_v24  ;;  %5256 = vst [vmem:[#allocation47_spill] sm:$0xff] %v3615_v63  ;;  %v3629_v29 = vadd.f32 %v2438_v52, %v153_v51  ;;  %v2474_v31 = vadd.f32 %v3548_v9, %v3544_v0  ;;  %v3634_v32 = vadd.f32 %v2480_v57, %v167_v55  ;;  %v150_v14 = vunpack.c.h.bf16 %v3285_v13  ;;  %v5280_v55 = vld [vmem:[#allocation13_spill] sm:$0xff] }
 0x145   :  { %2503 = vmatpush3.bf16.msra.mxu1 %v663_v23  ;;  %v2429_v17 = vadd.f32 %v3554_v16, %v3550_v12  ;;  %v3639_v10 = vadd.f32 %v2435_v61, %v152_v59  ;;  %v164_v22 = vunpack.c.h.bf16 %v3290_v15  ;;  %v2471_v35 = vadd.f32 %v5262_v11, %v5261_v34  ;;  %v5275_v23 = vld [vmem:[#allocation26_spill] sm:$0xff]  ;;  %v5276_v15 = vld [vmem:[#allocation28_spill] sm:$0xff]  ;;  %v5281_v59 = vld [vmem:[#allocation25_spill] sm:$0xff] }
 0x146   :  { %2504 = vmatprep.subr.bf16.mxu1 %v670_v4  ;;  %5258 = vst [vmem:[#allocation49_spill] sm:$0xff] %v3629_v29  ;;  %5259 = vst [vmem:[#allocation50_spill] sm:$0xff] %v3634_v32  ;;  %v661_v18 = vpack.c.bf16 %v3615_v63, %v3629_v29  ;;  %v3646_v36 = vadd.f32 %v2477_v7, %v166_v8  ;;  %v668_v0 = vpack.c.bf16 %v3622_v28, %v3634_v32  ;;  %v5282_v61 = vld [vmem:[#allocation27_spill] sm:$0xff] }
 0x147   :  { %5260 = vst [vmem:[#allocation51_spill] sm:$0xff] %v3639_v10  ;;  %v149_v9 = vunpack.c.l.bf16 %v3285_v13  ;;  %v2426_v12 = vadd.f32 %v5265_v44, %v5264_v37  ;;  %v3653_v16 = vadd.f32 %v2432_v26, %v151_v25  ;;  %v3658_v56 = vadd.f32 %v2474_v31, %v165_v30  ;;  %v5285_v26 = vld [vmem:[#allocation20_spill] sm:$0xff]  ;;  %v5286_v30 = vld [vmem:[#allocation22_spill] sm:$0xff]  ;;  %v5293_v44 = vld [vmem:[#allocation19_spill] sm:$0xff] }
 0x148   :  { %5263 = vst [vmem:[#allocation33_spill] sm:$0xff] %v3646_v36  ;;  %v148_v38 = vunpack.c.h.bf16 %v5270_v1  ;;  %v2423_v3 = vadd.f32 %v5272_v42, %v5271_v48  ;;  %v3663_v13 = vadd.f32 %v2429_v17, %v150_v14  ;;  %v162_v24 = vunpack.c.h.bf16 %v5274_v19  ;;  %v5297_v48 = vld [vmem:[#allocation23_spill] sm:$0xff] }
 0x149   :  { %2505 = vmatpush3.bf16.msra.mxu1 %v662_v6  ;;  %5266 = vst [vmem:[#allocation35_spill] sm:$0xff] %v3653_v16  ;;  %5269 = vst [vmem:[#allocation36_spill] sm:$0xff] %v3658_v56  ;;  %v660_v49 = vpack.c.bf16 %v3639_v10, %v3653_v16  ;;  %v2465_v20 = vadd.f32 %v5276_v15, %v5275_v23  ;;  %v3670_v33 = vadd.f32 %v2471_v35, %v164_v22  ;;  %v5288_v22 = vld [vmem:[#allocation31_spill] sm:$0xff]  ;;  %v5290_v35 = vld [vmem:[#allocation24_spill] sm:$0xff] }
 0x14a   :  { %2506 = vmatprep.subr.bf16.mxu1 %v669_v21  ;;  %5273 = vst [vmem:[#allocation37_spill] sm:$0xff] %v3663_v13  ;;  %v667_v41 = vpack.c.bf16 %v3646_v36, %v3658_v56  ;;  %v147_v5 = vunpack.c.l.bf16 %v5270_v1  ;;  %v3675_v4 = vadd.f32 %v2426_v12, %v149_v9  ;;  %v161_v51 = vunpack.c.l.bf16 %v5274_v19  ;;  %v5284_v21 = vld [vmem:[#allocation14_spill] sm:$0xff]  ;;  %v5292_v9 = vld [vmem:[#allocation15_spill] sm:$0xff]  ;;  %v5294_v12 = vld [vmem:[#allocation21_spill] sm:$0xff] }
 0x14b   :  { %5277 = vst [vmem:[#allocation29_spill] sm:$0xff] %v3670_v33  ;;  %v3678_v52 = vadd.f32 %v2468_v54, %v163_v45  ;;  %v146_v57 = vunpack.c.h.bf16 %v5280_v55  ;;  %v2417_v6 = vadd.f32 %v5282_v61, %v5281_v59  ;;  %v3683_v8 = vadd.f32 %v2423_v3, %v148_v38  ;;  %v5299_v3 = vld [vmem:[#allocation18_spill] sm:$0xff]  ;;  %v5302_v15 = vld [vmem:[#allocation17_spill] sm:$0xff]  ;;  %v3743_v59 = vld [vmem:[#allocation2 + $0x20] ss:$8 sps:$4 sm:$0xff]  }
 0x14c   :  { %5278 = vst [vmem:[#allocation30_spill] sm:$0xff] %v3675_v4  ;;  %v659_v7 = vpack.c.bf16 %v3663_v13, %v3675_v4  ;;  %v160_v25 = vunpack.c.h.bf16 %v5284_v21  ;;  %v2459_v31 = vadd.f32 %v5286_v30, %v5285_v26  ;;  %v3690_v14 = vadd.f32 %v2465_v20, %v162_v24  ;;  %5308 = vst [vmem:[#allocation19_spill] sm:$0xff] %v3743_v59  ;;  %v3745_v61 = vld [vmem:[#allocation2 + $0x34] ss:$8 sps:$4 sm:$0xff]   ;;  %v3761_v26 = vld [vmem:[#allocation2 + $0x50] ss:$8 sps:$4 sm:$0xff]  }
 0x14d   :  { %2507 = vmatpush3.bf16.msra.mxu1 %v661_v18  ;;  %5279 = vst [vmem:[#allocation11_spill] sm:$0xff] %v3678_v52  ;;  %5283 = vst [vmem:[#allocation32_spill] sm:$0xff] %v3683_v8  ;;  %v666_v17 = vpack.c.bf16 %v3670_v33, %v3678_v52  ;;  %v145_v18 = vunpack.c.l.bf16 %v5280_v55  ;;  %v3696_v34 = vadd.f32 %v5288_v22, %v147_v5  ;;  %v159_v11 = vunpack.c.l.bf16 %v5284_v21  ;;  %v3731_v5 = vld [vmem:[#allocation2] ss:$8 sps:$4 sm:$0xff]   ;;  %v3737_v55 = vld [vmem:[#allocation2 + $0x10] ss:$8 sps:$4 sm:$0xff]  }
 0x14e   :  { %2508 = vmatprep.subr.bf16.mxu1 %v668_v0  ;;  %5287 = vst [vmem:[#allocation34_spill] sm:$0xff] %v3690_v14  ;;  %v3700_v0 = vadd.f32 %v5290_v35, %v161_v51  ;;  %v144_v37 = vunpack.c.h.bf16 %v5292_v9  ;;  %v2411_v45 = vadd.f32 %v5294_v12, %v5293_v44  ;;  %v3705_v46 = vadd.f32 %v2417_v6, %v146_v57  ;;  %v3733_v51 = vld [vmem:[#allocation2 + $0x14] ss:$8 sps:$4 sm:$0xff]   ;;  %v3739_v57 = vld [vmem:[#allocation2 + $0x24] ss:$8 sps:$4 sm:$0xff]  }
 0x14f   :  { %5289 = vst [vmem:[#allocation12_spill] sm:$0xff] %v3696_v34  ;;  %v658_v47 = vpack.c.bf16 %v3683_v8, %v3696_v34  ;;  %v3709_v54 = vadd.f32 %v2459_v31, %v160_v25  ;;  %v143_v38 = vunpack.c.l.bf16 %v5292_v9  ;;  %v3715_v42 = vadd.f32 %v5297_v48, %v145_v18  ;;  %5304 = vst [vmem:[#allocation22_spill] sm:$0xff] %v3731_v5  ;;  %v3749_v6 = vld [vmem:[#allocation2 + $0x30] ss:$8 sps:$4 sm:$0xff]   ;;  %v3755_v21 = vld [vmem:[#allocation2 + $0x40] ss:$8 sps:$4 sm:$0xff]  }
 0x150   :  { %5291 = vst [vmem:[#allocation26_spill] sm:$0xff] %v3700_v0  ;;  %5295 = vst [vmem:[#allocation28_spill] sm:$0xff] %v3705_v46  ;;  %v665_v1 = vpack.c.bf16 %v3690_v14, %v3700_v0  ;;  %v3720_v19 = vadd.f32 %v2411_v45, %v144_v37  ;;  %v3757_v25 = vld [vmem:[#allocation2 + $0x54] ss:$8 sps:$4 sm:$0xff]   ;;  %v3763_v30 = vld [vmem:[#allocation2 + $0x64] ss:$8 sps:$4 sm:$0xff]  }
 0x151   :  { %2509 = vmatpush3.bf16.msra.mxu1 %v660_v49  ;;  %5296 = vst [vmem:[#allocation13_spill] sm:$0xff] %v3709_v54  ;;  %5298 = vst [vmem:[#allocation25_spill] sm:$0xff] %v3715_v42  ;;  %v3718_v49 = vadd.f32 %v5299_v3, %v159_v11  ;;  %v657_v24 = vpack.c.bf16 %v3705_v46, %v3715_v42  ;;  %v3727_v20 = vadd.f32 %v5302_v15, %v143_v38  ;;  %v3767_v31 = vld [vmem:[#allocation2 + $0x60] ss:$8 sps:$4 sm:$0xff]   ;;  %v3773_v18 = vld [vmem:[#allocation2 + $0x70] ss:$8 sps:$4 sm:$0xff]  }
 0x152   :  { %2510 = vmatprep.subr.bf16.mxu1 %v667_v41  ;;  %5301 = vst [vmem:[#allocation14_spill] sm:$0xff] %v3720_v19  ;;  %5305 = vst [vmem:[#allocation31_spill] sm:$0xff] %v3733_v51  ;;  %v3775_v22 = vld [vmem:[#allocation2 + $0x84] ss:$8 sps:$4 sm:$0xff]   ;;  %v3779_v11 = vld [vmem:[#allocation2 + $0x80] ss:$8 sps:$4 sm:$0xff]  }
 0x153   :  { %5300 = vst [vmem:[#allocation27_spill] sm:$0xff] %v3718_v49  ;;  %v664_v23 = vpack.c.bf16 %v3709_v54, %v3718_v49  ;;  %5303 = vst [vmem:[#allocation20_spill] sm:$0xff] %v3727_v20  ;;  %v656_v41 = vpack.c.bf16 %v3720_v19, %v3727_v20  ;;  %v3781_v35 = vld [vmem:[#allocation2 + $0x94] ss:$8 sps:$4 sm:$0xff]   ;;  %v3785_v9 = vld [vmem:[#allocation2 + $0x90] ss:$8 sps:$4 sm:$0xff]  }
 0x154   :  { %5306 = vst [vmem:[#allocation24_spill] sm:$0xff] %v3737_v55  ;;  %5307 = vst [vmem:[#allocation15_spill] sm:$0xff] %v3739_v57  ;;  %v3787_v37 = vld [vmem:[#allocation2 + $0xa4] ss:$8 sps:$4 sm:$0xff]   ;;  %v3791_v44 = vld [vmem:[#allocation2 + $0xa0] ss:$8 sps:$4 sm:$0xff]  }
 0x155   :  { %2511 = vmatpush3.bf16.msra.mxu1 %v659_v7  ;;  %5309 = vst [vmem:[#allocation21_spill] sm:$0xff] %v3745_v61  ;;  %5310 = vst [vmem:[#allocation23_spill] sm:$0xff] %v3749_v6  ;;  %v3751_v7 = vld [vmem:[#allocation2 + $0x44] ss:$8 sps:$4 sm:$0xff]   ;;  %v3793_v12 = vld [vmem:[#allocation2 + $0xb4] ss:$8 sps:$4 sm:$0xff]  }
 0x156   :  { %2512 = vmatprep.subr.bf16.mxu1 %v666_v17  ;;  %5311 = vst [vmem:[#allocation18_spill] sm:$0xff] %v3751_v7  ;;  %5312 = vst [vmem:[#allocation17_spill] sm:$0xff] %v3755_v21  ;;  %v3769_v17 = vld [vmem:[#allocation2 + $0x74] ss:$8 sps:$4 sm:$0xff]   ;;  %v3797_v45 = vld [vmem:[#allocation2 + $0xb0] ss:$8 sps:$4 sm:$0xff]  }
 0x157   :  { %5313 = vst [vmem:[#allocation52_spill] sm:$0xff] %v3757_v25  ;;  %5314 = vst [vmem:[#allocation53_spill] sm:$0xff] %v3761_v26  ;;  %v3805_v38 = vld [vmem:[#allocation2 + $0xd4] ss:$8 sps:$4 sm:$0xff]   ;;  %v3809_v48 = vld [vmem:[#allocation2 + $0xd0] ss:$8 sps:$4 sm:$0xff]  }
 0x158   :  { %5315 = vst [vmem:[#allocation54_spill] sm:$0xff] %v3763_v30  ;;  %5316 = vst [vmem:[#allocation55_spill] sm:$0xff] %v3767_v31  ;;  %v3811_v3 = vld [vmem:[#allocation2 + $0xe4] ss:$8 sps:$4 sm:$0xff]   ;;  %v3819_v15 = vld [vmem:[#allocation2 + $0xe0] ss:$8 sps:$4 sm:$0xff]  }
 0x159   :  { %2513 = vmatpush3.bf16.msra.mxu1 %v658_v47  ;;  %5317 = vst [vmem:[#allocation56_spill] sm:$0xff] %v3769_v17  ;;  %5318 = vst [vmem:[#allocation57_spill] sm:$0xff] %v3773_v18  ;;  %v3799_v47 = vld [vmem:[#allocation2 + $0xc4] ss:$8 sps:$4 sm:$0xff]  }
 0x15a   :  { %2514 = vmatprep.subr.bf16.mxu1 %v665_v1  ;;  %5319 = vst [vmem:[#allocation58_spill] sm:$0xff] %v3775_v22  ;;  %5320 = vst [vmem:[#allocation59_spill] sm:$0xff] %v3779_v11  ;;  %v3803_v1 = vld [vmem:[#allocation2 + $0xc0] ss:$8 sps:$4 sm:$0xff]  }
 0x15b   :  { %5321 = vst [vmem:[#allocation60_spill] sm:$0xff] %v3781_v35  ;;  %5322 = vst [vmem:[#allocation61_spill] sm:$0xff] %v3785_v9 }
 0x15c   :  { %5323 = vst [vmem:[#allocation62_spill] sm:$0xff] %v3787_v37  ;;  %5324 = vst [vmem:[#allocation63_spill] sm:$0xff] %v3791_v44 }
 0x15d   :  { %2515 = vmatpush3.bf16.msra.mxu1 %v657_v24  ;;  %5325 = vst [vmem:[#allocation64_spill] sm:$0xff] %v3793_v12  ;;  %5326 = vst [vmem:[#allocation65_spill] sm:$0xff] %v3797_v45  ;;  %v3814_v24 = vpop.permute.xlu0 %824 }
 0x15e   :  { %2516 = vmatprep.subr.bf16.mxu1 %v664_v23  ;;  %5327 = vst [vmem:[#allocation66_spill] sm:$0xff] %v3799_v47  ;;  %5328 = vst [vmem:[#allocation67_spill] sm:$0xff] %v3803_v1  ;;  %v3817_v23 = vpop.permute.xlu1 %744 }
 0x15f   :  { %5329 = vst [vmem:[#allocation68_spill] sm:$0xff] %v3805_v38  ;;  %5330 = vst [vmem:[#allocation69_spill] sm:$0xff] %v3809_v48 }
 0x160   :  { %5331 = vst [vmem:[#allocation70_spill] sm:$0xff] %v3811_v3  ;;  %5332 = vst [vmem:[#allocation71_spill] sm:$0xff] %v3814_v24 }
 0x161   :  { %2517 = vmatpush3.bf16.msra.mxu1 %v656_v41  ;;  %5333 = vst [vmem:[#allocation72_spill] sm:$0xff] %v3817_v23  ;;  %5334 = vst [vmem:[#allocation73_spill] sm:$0xff] %v3819_v15  ;;  %v3821_v41 = vld [vmem:[#allocation2 + $0xf4] ss:$8 sps:$4 sm:$0xff]  }
 0x162   :  { %5335 = vst [vmem:[#allocation74_spill] sm:$0xff] %v3821_v41 }
 0x164   :  { %1057 = vmatmul.mubr.bf16.vlgmr.msra.gmra.mxu1 %v3731_v5 }
 0x165   :  { %1064 = vmatprep.mubr.bf16.mxu1 %v3733_v51 }
 0x16c   :  { %1065 = vmatmul.mubr.bf16.gmra.mxu1 %v3737_v55 }
 0x16d   :  { %1072 = vmatprep.mubr.bf16.mxu1 %v3739_v57 }
 0x174   :  { %1073 = vmatmul.mubr.bf16.gmra.mxu1 %v3743_v59 }
 0x175   :  { %1080 = vmatprep.mubr.bf16.mxu1 %v3745_v61 }
 0x17c   :  { %1081 = vmatmul.mubr.bf16.gmra.mxu1 %v3749_v6 }
 0x17d   :  { %1088 = vmatprep.mubr.bf16.mxu1 %v3751_v7 }
 0x184   :  { %1089 = vmatmul.mubr.bf16.gmra.mxu1 %v3755_v21 }
 0x185   :  { %1096 = vmatprep.mubr.bf16.mxu1 %v3757_v25 }
 0x18c   :  { %1097 = vmatmul.mubr.bf16.gmra.mxu1 %v3761_v26 }
 0x18d   :  { %1104 = vmatprep.mubr.bf16.mxu1 %v3763_v30 }
 0x194   :  { %1105 = vmatmul.mubr.bf16.gmra.mxu1 %v3767_v31 }
 0x195   :  { %1112 = vmatprep.mubr.bf16.mxu1 %v3769_v17 }
 0x19c   :  { %1113 = vmatmul.mubr.bf16.gmra.mxu1 %v3773_v18 }
 0x19d   :  { %1120 = vmatprep.mubr.bf16.mxu1 %v3775_v22 }
 0x1a4   :  { %1121 = vmatmul.mubr.bf16.gmra.mxu1 %v3779_v11 }
 0x1a5   :  { %1128 = vmatprep.mubr.bf16.mxu1 %v3781_v35 }
 0x1ac   :  { %1129 = vmatmul.mubr.bf16.gmra.mxu1 %v3785_v9 }
 0x1ad   :  { %1136 = vmatprep.mubr.bf16.mxu1 %v3787_v37 }
 0x1b4   :  { %1137 = vmatmul.mubr.bf16.gmra.mxu1 %v3791_v44 }
 0x1b5   :  { %1144 = vmatprep.mubr.bf16.mxu1 %v3793_v12 }
 0x1bc   :  { %1145 = vmatmul.mubr.bf16.gmra.mxu1 %v3797_v45 }
 0x1bd   :  { %1152 = vmatprep.mubr.bf16.mxu1 %v3799_v47  ;;  %v3823_v47 = vpop.permute.xlu0 %829 }
 0x1be   :  { %5336 = vst [vmem:[#allocation75_spill] sm:$0xff] %v3823_v47 }
 0x1c4   :  { %1153 = vmatmul.mubr.bf16.gmra.mxu1 %v3803_v1  ;;  %v3825_v1 = vpop.permute.xlu1 %749 }
 0x1c5   :  { %1160 = vmatprep.mubr.bf16.mxu1 %v3805_v38  ;;  %5337 = vst [vmem:[#allocation76_spill] sm:$0xff] %v3825_v1  ;;  %v3829_v38 = vld [vmem:[#allocation2 + $0xf0] ss:$8 sps:$4 sm:$0xff]  }
 0x1c6   :  { %5338 = vst [vmem:[#allocation77_spill] sm:$0xff] %v3829_v38 }
 0x1c8   :  { %v3833_v45 = vpop.permute.xlu1 %819 }
 0x1c9   :  { %5340 = vst [vmem:[#allocation79_spill] sm:$0xff] %v3833_v45 }
 0x1cc   :  { %1161 = vmatmul.mubr.bf16.gmra.mxu1 %v3809_v48  ;;  %v3831_v48 = vpop.permute.xlu0 %814  ;;  %v3839_v44 = vpop.permute.xlu1 %739 }
 0x1cd   :  { %1168 = vmatprep.mubr.bf16.mxu1 %v3811_v3  ;;  %5339 = vst [vmem:[#allocation78_spill] sm:$0xff] %v3831_v48  ;;  %v5341_v3 = vld [vmem:[#allocation16_spill] sm:$0xff]  ;;  %5343 = vst [vmem:[#allocation80_spill] sm:$0xff] %v3839_v44 }
 0x1d0   :  { %v3837_v12 = vpop.permute.xlu0 %734  ;;  %v3843_v9 = vpop.permute.xlu1 %809 }
 0x1d1   :  { %5342 = vst [vmem:[#allocation16_spill] sm:$0xff] %v3837_v12  ;;  %5345 = vst [vmem:[#allocation82_spill] sm:$0xff] %v3843_v9 }
 0x1d4   :  { %1169 = vmatmul.mubr.bf16.gmra.mxu1 %v3819_v15  ;;  %v3841_v37 = vpop.permute.xlu0 %804 }
 0x1d5   :  { %1176 = vmatprep.mubr.bf16.mxu1 %v3821_v41  ;;  %5344 = vst [vmem:[#allocation81_spill] sm:$0xff] %v3841_v37  ;;  %v3847_v41 = vpop.permute.xlu1 %729 }
 0x1d6   :  { %5347 = vst [vmem:[#allocation84_spill] sm:$0xff] %v3847_v41 }
 0x1d8   :  { %v3845_v15 = vpop.permute.xlu0 %724 }
 0x1d9   :  { %5346 = vst [vmem:[#allocation83_spill] sm:$0xff] %v3845_v15  ;;  %v3851_v11 = vpop.permute.xlu1 %799 }
 0x1da   :  { %5349 = vst [vmem:[#allocation86_spill] sm:$0xff] %v3851_v11 }
 0x1dc   :  { %1177 = vmatmul.mubr.bf16.gmra.mxu1 %v3829_v38  ;;  %v3849_v35 = vpop.permute.xlu0 %794 }
 0x1dd   :  { %1730 = vmatprep.mubr.bf16.mxu1 %v5341_v3  ;;  %5348 = vst [vmem:[#allocation85_spill] sm:$0xff] %v3849_v35  ;;  %v3855_v38 = vpop.permute.xlu1 %719 }
 0x1de   :  { %5351 = vst [vmem:[#allocation88_spill] sm:$0xff] %v3855_v38 }
 0x1e0   :  { %v3853_v22 = vpop.permute.xlu0 %714 }
 0x1e1   :  { %5350 = vst [vmem:[#allocation87_spill] sm:$0xff] %v3853_v22  ;;  %v3859_v18 = vpop.permute.xlu1 %789 }
 0x1e2   :  { %5353 = vst [vmem:[#allocation90_spill] sm:$0xff] %v3859_v18 }
 0x1e4   :  { %v3857_v3 = vpop.permute.xlu0 %784 }
 0x1e5   :  { %5352 = vst [vmem:[#allocation89_spill] sm:$0xff] %v3857_v3  ;;  %v3863_v31 = vpop.permute.xlu1 %709 }
 0x1e6   :  { %5355 = vst [vmem:[#allocation92_spill] sm:$0xff] %v3863_v31 }
 0x1e8   :  { %v3861_v17 = vpop.permute.xlu0 %704 }
 0x1e9   :  { %5354 = vst [vmem:[#allocation91_spill] sm:$0xff] %v3861_v17  ;;  %v3867_v26 = vpop.permute.xlu1 %779 }
 0x1ea   :  { %5357 = vst [vmem:[#allocation94_spill] sm:$0xff] %v3867_v26 }
 0x1ec   :  { %v3865_v30 = vpop.permute.xlu0 %774 }
 0x1ed   :  { %5356 = vst [vmem:[#allocation93_spill] sm:$0xff] %v3865_v30  ;;  %v3871_v21 = vpop.permute.xlu1 %699 }
 0x1ee   :  { %5359 = vst [vmem:[#allocation96_spill] sm:$0xff] %v3871_v21 }
 0x1f0   :  { %v3869_v25 = vpop.permute.xlu0 %694 }
 0x1f1   :  { %5358 = vst [vmem:[#allocation95_spill] sm:$0xff] %v3869_v25  ;;  %v3875_v6 = vpop.permute.xlu1 %769 }
 0x1f2   :  { %5361 = vst [vmem:[#allocation98_spill] sm:$0xff] %v3875_v6 }
 0x1f4   :  { %v3873_v7 = vpop.permute.xlu0 %764 }
 0x1f5   :  { %5360 = vst [vmem:[#allocation97_spill] sm:$0xff] %v3873_v7  ;;  %v3879_v59 = vpop.permute.xlu1 %689 }
 0x1f6   :  { %5363 = vst [vmem:[#allocation100_spill] sm:$0xff] %v3879_v59 }
 0x1f8   :  { %v3877_v61 = vpop.permute.xlu0 %684 }
 0x1f9   :  { %5362 = vst [vmem:[#allocation99_spill] sm:$0xff] %v3877_v61  ;;  %v3883_v55 = vpop.permute.xlu1 %759  ;;  %v834_v9 = vmul.f32 %v3877_v61, %v3715_v42  ;;  %v837_v42 = vmul.f32 %v3871_v21, %v3683_v8  ;;  %v863_v21 = vmul.f32 %v3823_v47, %v3586_v40  ;;  %v5373_v47 = vld [vmem:[#allocation81_spill] sm:$0xff] }
 0x1fa   :  { %5365 = vst [vmem:[#allocation102_spill] sm:$0xff] %v3883_v55 }
 0x1fc   :  { %v3881_v57 = vpop.permute.xlu0 %754 }
 0x1fd   :  { %5364 = vst [vmem:[#allocation101_spill] sm:$0xff] %v3881_v57  ;;  %v3887_v26 = vpop.permute.xlu1 %679 }
 0x1fe   :  { %5367 = vst [vmem:[#allocation104_spill] sm:$0xff] %v3887_v26  ;;  %v833_v18 = vmul.f32 %v3887_v26, %v3720_v19 }
 0x200   :  { %v3885_v30 = vpop.permute.xlu0 %674 }
 0x201   :  { %5366 = vst [vmem:[#allocation103_spill] sm:$0xff] %v3885_v30  ;;  %v832_v56 = vmul.f32 %v3885_v30, %v3727_v20  ;;  %v835_v20 = vmul.f32 %v3879_v59, %v3705_v46  ;;  %v860_v59 = vmul.f32 %v3831_v48, %v3590_v50 }
 0x224   :  { %v2518_v51 = vpop.f32.mrf.mxu1 }
 0x226   :  { %v2519_v5 = vpop.f32.mrf.mxu1 }
 0x227   :  { %v2520_v52 = vadd.f32 %v2519_v5, %v2518_v51  ;;  %v836_v5 = vmul.f32 %v3869_v25, %v3696_v34  ;;  %v839_v34 = vmul.f32 %v3863_v31, %v3663_v13 }
 0x228   :  { %v2521_v33 = vpop.f32.mrf.mxu1 }
 0x229   :  { %v3893_v32 = vadd.f32 %v2520_v52, %v832_v56 }
 0x22a   :  { %v2522_v3 = vpop.f32.mrf.mxu1 }
 0x22b   :  { %v2523_v36 = vadd.f32 %v2522_v3, %v2521_v33 }
 0x22c   :  { %v2524_v35 = vpop.f32.mrf.mxu1 }
 0x22d   :  { %v3895_v11 = vadd.f32 %v2523_v36, %v833_v18 }
 0x22e   :  { %v2525_v28 = vpop.f32.mrf.mxu1 }
 0x22f   :  { %v2526_v37 = vadd.f32 %v2525_v28, %v2524_v35  ;;  %v838_v28 = vmul.f32 %v3861_v17, %v3675_v4  ;;  %v841_v4 = vmul.f32 %v3855_v38, %v3639_v10  ;;  %v861_v38 = vmul.f32 %v3833_v45, %v3578_v62  ;;  %v5429_v62 = vld [vmem:[#allocation104_spill] sm:$0xff] }
 0x230   :  { %v2527_v51 = vpop.f32.mrf.mxu1  ;;  %v862_v17 = vmul.f32 %v3814_v24, %v3582_v2 }
 0x231   :  { %v3903_v3 = vadd.f32 %v2526_v37, %v834_v9  ;;  %v840_v37 = vmul.f32 %v3853_v22, %v3653_v16  ;;  %v843_v16 = vmul.f32 %v3847_v41, %v3615_v63 }
 0x232   :  { %v2528_v58 = vpop.f32.mrf.mxu1 }
 0x233   :  { %v2529_v19 = vadd.f32 %v2528_v58, %v2527_v51 }
 0x234   :  { %v2530_v33 = vpop.f32.mrf.mxu1 }
 0x235   :  { %v3905_v56 = vadd.f32 %v2529_v19, %v835_v20 }
 0x236   :  { %v2531_v36 = vpop.f32.mrf.mxu1 }
 0x237   :  { %v2532_v52 = vadd.f32 %v2531_v36, %v2530_v33 }
 0x238   :  { %v2533_v18 = vpop.f32.mrf.mxu1 }
 0x239   :  { %v3913_v51 = vadd.f32 %v2532_v52, %v836_v5  ;;  %v842_v52 = vmul.f32 %v3845_v15, %v3629_v29  ;;  %v845_v29 = vmul.f32 %v3839_v44, %v3597_v39 }
 0x23a   :  { %v2534_v35 = vpop.f32.mrf.mxu1 }
 0x23b   :  { %v2535_v46 = vadd.f32 %v2534_v35, %v2533_v18 }
 0x23c   :  { %v2536_v58 = vpop.f32.mrf.mxu1 }
 0x23d   :  { %v3915_v9 = vadd.f32 %v2535_v46, %v837_v42 }
 0x23e   :  { %v2537_v19 = vpop.f32.mrf.mxu1 }
 0x23f   :  { %v2538_v20 = vadd.f32 %v2537_v19, %v2536_v58 }
 0x240   :  { %v2539_v33 = vpop.f32.mrf.mxu1 }
 0x241   :  { %v3923_v35 = vadd.f32 %v2538_v20, %v838_v28 }
 0x242   :  { %v2540_v36 = vpop.f32.mrf.mxu1 }
 0x243   :  { %v2541_v8 = vadd.f32 %v2540_v36, %v2539_v33 }
 0x244   :  { %v2542_v18 = vpop.f32.mrf.mxu1 }
 0x245   :  { %v3925_v5 = vadd.f32 %v2541_v8, %v839_v34  ;;  %v844_v34 = vmul.f32 %v3837_v12, %v3605_v53  ;;  %v847_v53 = vmul.f32 %v3825_v1, %v3584_v27 }
 0x246   :  { %v2543_v46 = vpop.f32.mrf.mxu1 }
 0x247   :  { %v2544_v42 = vadd.f32 %v2543_v46, %v2542_v18 }
 0x248   :  { %v2545_v58 = vpop.f32.mrf.mxu1 }
 0x249   :  { %v3933_v36 = vadd.f32 %v2544_v42, %v840_v37 }
 0x24a   :  { %v2546_v19 = vpop.f32.mrf.mxu1 }
 0x24b   :  { %v2547_v13 = vadd.f32 %v2546_v19, %v2545_v58 }
 0x24c   :  { %v2548_v33 = vpop.f32.mrf.mxu1 }
 0x24d   :  { %v3935_v28 = vadd.f32 %v2547_v13, %v841_v4  ;;  %v846_v4 = vmul.f32 %v3817_v23, %v3580_v60  ;;  %v849_v60 = vmul.f32 %v3883_v55, %v3709_v54 }
 0x24e   :  { %v2549_v8 = vpop.f32.mrf.mxu1 }
 0x24f   :  { %v2550_v20 = vadd.f32 %v2549_v8, %v2548_v33 }
 0x250   :  { %v2551_v18 = vpop.f32.mrf.mxu1 }
 0x251   :  { %v3943_v19 = vadd.f32 %v2550_v20, %v842_v52 }
 0x252   :  { %v2552_v46 = vpop.f32.mrf.mxu1 }
 0x253   :  { %v2553_v10 = vadd.f32 %v2552_v46, %v2551_v18 }
 0x254   :  { %v2554_v58 = vpop.f32.mrf.mxu1 }
 0x255   :  { %v3945_v37 = vadd.f32 %v2553_v10, %v843_v16  ;;  %v848_v16 = vmul.f32 %v3881_v57, %v3718_v49  ;;  %v851_v49 = vmul.f32 %v3875_v6, %v3690_v14 }
 0x256   :  { %v2555_v13 = vpop.f32.mrf.mxu1 }
 0x257   :  { %v2556_v42 = vadd.f32 %v2555_v13, %v2554_v58 }
 0x258   :  { %v2557_v33 = vpop.f32.mrf.mxu1 }
 0x259   :  { %v3953_v46 = vadd.f32 %v2556_v42, %v844_v34 }
 0x25a   :  { %v2558_v8 = vpop.f32.mrf.mxu1 }
 0x25b   :  { %v2559_v63 = vadd.f32 %v2558_v8, %v2557_v33 }
 0x25c   :  { %v2560_v18 = vpop.f32.mrf.mxu1 }
 0x25d   :  { %v3955_v52 = vadd.f32 %v2559_v63, %v845_v29  ;;  %v850_v29 = vmul.f32 %v3873_v7, %v3700_v0 }
 0x25e   :  { %v2561_v10 = vpop.f32.mrf.mxu1 }
 0x25f   :  { %v2562_v20 = vadd.f32 %v2561_v10, %v2560_v18 }
 0x260   :  { %v2563_v58 = vpop.f32.mrf.mxu1 }
 0x261   :  { %v3963_v8 = vadd.f32 %v2562_v20, %v846_v4 }
 0x262   :  { %v2564_v13 = vpop.f32.mrf.mxu1 }
 0x263   :  { %v2565_v39 = vadd.f32 %v2564_v13, %v2563_v58 }
 0x264   :  { %v2566_v33 = vpop.f32.mrf.mxu1 }
 0x265   :  { %v3965_v34 = vadd.f32 %v2565_v39, %v847_v53 }
 0x266   :  { %v2567_v63 = vpop.f32.mrf.mxu1 }
 0x267   :  { %v2568_v42 = vadd.f32 %v2567_v63, %v2566_v33 }
 0x268   :  { %v2569_v18 = vpop.f32.mrf.mxu1 }
 0x269   :  { %v3973_v13 = vadd.f32 %v2568_v42, %v848_v16 }
 0x26a   :  { %v2570_v10 = vpop.f32.mrf.mxu1 }
 0x26b   :  { %v2571_v27 = vadd.f32 %v2570_v10, %v2569_v18 }
 0x26c   :  { %v2572_v58 = vpop.f32.mrf.mxu1 }
 0x26d   :  { %v3975_v4 = vadd.f32 %v2571_v27, %v849_v60 }
 0x26e   :  { %v2573_v39 = vpop.f32.mrf.mxu1 }
 0x26f   :  { %v2574_v53 = vadd.f32 %v2573_v39, %v2572_v58 }
 0x270   :  { %v2575_v33 = vpop.f32.mrf.mxu1 }
 0x271   :  { %v3985_v16 = vadd.f32 %v2574_v53, %v850_v29 }
 0x272   :  { %v2576_v63 = vpop.f32.mrf.mxu1 }
 0x273   :  { %v2577_v54 = vadd.f32 %v2576_v63, %v2575_v33 }
 0x274   :  { %v3983_v18 = vpop.f32.mrf.mxu1 }
 0x275   :  { %v3987_v60 = vadd.f32 %v2577_v54, %v851_v49 }
 0x276   :  { %v3989_v27 = vpop.f32.mrf.mxu1 }
 0x278   :  { %v2581_v10 = vpop.f32.mrf.mxu1 }
 0x27a   :  { %v2582_v58 = vpop.f32.mrf.mxu1 }
 0x27c   :  { %v2584_v39 = vpop.f32.mrf.mxu1 }
 0x27e   :  { %v2585_v20 = vpop.f32.mrf.mxu1 }
 0x280   :  { %v2587_v0 = vpop.f32.mrf.mxu1 }
 0x282   :  { %v2588_v7 = vpop.f32.mrf.mxu1 }
 0x284   :  { %v2590_v55 = vpop.f32.mrf.mxu1 }
 0x286   :  { %v2591_v14 = vpop.f32.mrf.mxu1 }
 0x288   :  { %v2593_v33 = vpop.f32.mrf.mxu1 }
 0x28a   :  { %v2594_v63 = vpop.f32.mrf.mxu1 }
 0x28c   :  { %v2596_v6 = vpop.f32.mrf.mxu1 }
 0x28e   :  { %v2597_v29 = vpop.f32.mrf.mxu1 }
 0x290   :  { %v2599_v53 = vpop.f32.mrf.mxu1 }
 0x292   :  { %v2600_v54 = vpop.f32.mrf.mxu1 }
 0x293   :  { %v2601_v61 = vadd.f32 %v2600_v54, %v2599_v53  ;;  %v5381_v54 = vld [vmem:[#allocation90_spill] sm:$0xff] }
 0x294   :  { %v2602_v49 = vpop.f32.mrf.mxu1 }
 0x296   :  { %v2603_v57 = vpop.f32.mrf.mxu1 }
 0x297   :  { %v2604_v31 = vadd.f32 %v2603_v57, %v2602_v49  ;;  %v5371_v57 = vld [vmem:[#allocation82_spill] sm:$0xff] }
 0x298   :  { %v2605_v1 = vpop.f32.mrf.mxu1 }
 0x299   :  { %v4009_v49 = vadd.f32 %v2604_v31, %v860_v59  ;;  %v5375_v59 = vld [vmem:[#allocation48_spill] sm:$0xff]  ;;  %v5376_v31 = vld [vmem:[#allocation86_spill] sm:$0xff] }
 0x29a   :  { %v2606_v23 = vpop.f32.mrf.mxu1 }
 0x29b   :  { %v2607_v41 = vadd.f32 %v2606_v23, %v2605_v1  ;;  %v2598_v23 = vadd.f32 %v2597_v29, %v2596_v6  ;;  %v5374_v6 = vpack.c.bf16 %v3965_v34, %v3963_v8  ;;  %v5379_v29 = vpack.c.bf16 %v3955_v52, %v3953_v46 }
 0x29c   :  { %v2608_v44 = vpop.f32.mrf.mxu1 }
 0x29d   :  { %v4001_v26 = vadd.f32 %v2607_v41, %v861_v38  ;;  %v5377_v41 = vld [vmem:[#allocation50_spill] sm:$0xff] }
 0x29e   :  { %v2609_v42 = vpop.f32.mrf.mxu1 }
 0x29f   :  { %v2610_v15 = vadd.f32 %v2609_v42, %v2608_v44  ;;  %5368 = vst [vmem:[#allocation105_spill] sm:$0xff] %v4001_v26  ;;  %v859_v42 = vmul.f32 %v5371_v57, %v3600_v43 }
 0x2a0   :  { %v2611_v12 = vpop.f32.mrf.mxu1 }
 0x2a1   :  { %v4003_v1 = vadd.f32 %v2610_v15, %v862_v17  ;;  %v4015_v53 = vadd.f32 %v2601_v61, %v859_v42  ;;  %v857_v17 = vmul.f32 %v5376_v31, %v5375_v59  ;;  %v2589_v15 = vadd.f32 %v2588_v7, %v2587_v0  ;;  %v5382_v7 = vld [vmem:[#allocation36_spill] sm:$0xff] }
 0x2a2   :  { %v2612_v22 = vpop.f32.mrf.mxu1  ;;  %v2583_v0 = vadd.f32 %v2582_v58, %v2581_v10  ;;  %v5387_v10 = vld [vmem:[#allocation11_spill] sm:$0xff]  ;;  %v5388_v58 = vld [vmem:[#allocation93_spill] sm:$0xff] }
 0x2a3   :  { %v2613_v25 = vadd.f32 %v2612_v22, %v2611_v12  ;;  %5369 = vst [vmem:[#allocation106_spill] sm:$0xff] %v4003_v1  ;;  %v2595_v22 = vadd.f32 %v2594_v63, %v2593_v33  ;;  %v5372_v12 = vld [vmem:[#allocation46_spill] sm:$0xff]  ;;  %v5378_v33 = vld [vmem:[#allocation85_spill] sm:$0xff] }
 0x2a4   :  { %v858_v2 = vmul.f32 %v5373_v47, %v5372_v12  ;;  %v856_v61 = vmul.f32 %v5378_v33, %v5377_v41 }
 0x2a5   :  { %v4005_v44 = vadd.f32 %v2613_v25, %v863_v21  ;;  %v1327_v21 = vpack.c.bf16 %v4001_v26, %v4009_v49  ;;  %v2592_v25 = vadd.f32 %v2591_v14, %v2590_v55  ;;  %v4028_v63 = vadd.f32 %v2595_v22, %v857_v17  ;;  %v5380_v55 = vld [vmem:[#allocation33_spill] sm:$0xff] }
 0x2a6   :  { %v4024_v38 = vadd.f32 %v2598_v23, %v858_v2  ;;  %v2586_v14 = vadd.f32 %v2585_v20, %v2584_v39  ;;  %v855_v42 = vmul.f32 %v5381_v54, %v5380_v55  ;;  %v5383_v23 = vld [vmem:[#allocation89_spill] sm:$0xff]  ;;  %v5384_v17 = vpack.c.bf16 %v3945_v37, %v3943_v19 }
 0x2a7   :  { %5370 = vst [vmem:[#allocation107_spill] sm:$0xff] %v4005_v44  ;;  %v1328_v40 = vpack.c.bf16 %v4005_v44, %v4003_v1  ;;  %v4037_v2 = vadd.f32 %v2592_v25, %v856_v61  ;;  %v2580_v20 = vadd.f32 %v3989_v27, %v3983_v18  ;;  %v5385_v39 = vld [vmem:[#allocation29_spill] sm:$0xff]  ;;  %v5386_v25 = vld [vmem:[#allocation94_spill] sm:$0xff]  ;;  %v5390_v27 = vpack.c.bf16 %v3925_v5, %v3923_v35  ;;  %v5428_v1 = vld [vmem:[#allocation20_spill] sm:$0xff] }
 0x2a8   :  { %v4041_v22 = vadd.f32 %v2589_v15, %v855_v42  ;;  %v853_v61 = vmul.f32 %v5386_v25, %v5385_v39  ;;  %v852_v15 = vmul.f32 %v5388_v58, %v5387_v10 }
 0x2a9   :  { %2614 = vmatprep.subr.bf16.mxu0 %v1328_v40  ;;  %v1326_v40 = vpack.c.bf16 %v4015_v53, %v4024_v38 }
 0x2aa   :  { %2615 = vmatpush3.bf16.msra.mxu0 %v5374_v6  ;;  %v1325_v6 = vpack.c.bf16 %v4028_v63, %v4037_v2  ;;  %v4063_v44 = vadd.f32 %v2580_v20, %v852_v15  ;;  %v5395_v20 = vpack.c.bf16 %v3895_v11, %v3893_v32  ;;  %v5397_v15 = vld [vmem:[#allocation31_spill] sm:$0xff] }
 0x2ab   :  { %2616 = vmatprep.subr.bf16.mxu0 %v1327_v21  ;;  %v854_v21 = vmul.f32 %v5383_v23, %v5382_v7 }
 0x2ae   :  { %2617 = vmatpush3.bf16.msra.mxu0 %v5379_v29  ;;  %v4056_v29 = vadd.f32 %v2583_v0, %v853_v61  ;;  %v5392_v0 = vpack.c.bf16 %v3987_v60, %v3985_v16  ;;  %v5396_v61 = vld [vmem:[#allocation22_spill] sm:$0xff] }
 0x2af   :  { %2618 = vmatprep.subr.bf16.mxu0 %v1326_v40  ;;  %v4052_v40 = vadd.f32 %v2586_v14, %v854_v21  ;;  %v5391_v14 = vpack.c.bf16 %v3915_v9, %v3913_v51  ;;  %v5393_v21 = vpack.c.bf16 %v3905_v56, %v3903_v3 }
 0x2b0   :  { %v1323_v18 = vpack.c.bf16 %v4056_v29, %v4063_v44 }
 0x2b1   :  { %v1324_v42 = vpack.c.bf16 %v4041_v22, %v4052_v40 }
 0x2b2   :  { %2619 = vmatpush3.bf16.msra.mxu0 %v5384_v17  ;;  %v5389_v17 = vpack.c.bf16 %v3935_v28, %v3933_v36 }
 0x2b3   :  { %2620 = vmatprep.subr.bf16.mxu0 %v1325_v6  ;;  %v5394_v6 = vpack.c.bf16 %v3975_v4, %v3973_v13 }
 0x2b6   :  { %2621 = vmatpush3.bf16.msra.mxu0 %v5389_v17  ;;  %v5399_v17 = vld [vmem:[#allocation15_spill] sm:$0xff] }
 0x2b7   :  { %2622 = vmatprep.subr.bf16.mxu0 %v1324_v42  ;;  %v5398_v42 = vld [vmem:[#allocation24_spill] sm:$0xff] }
 0x2ba   :  { %2623 = vmatpush3.bf16.msra.mxu0 %v5390_v27  ;;  %v5401_v27 = vld [vmem:[#allocation21_spill] sm:$0xff] }
 0x2bb   :  { %2624 = vmatprep.subr.bf16.mxu0 %v1323_v18  ;;  %v5400_v18 = vld [vmem:[#allocation19_spill] sm:$0xff] }
 0x2be   :  { %2625 = vmatpush3.bf16.msra.mxu0 %v5391_v14  ;;  %v5402_v14 = vld [vmem:[#allocation23_spill] sm:$0xff] }
 0x2bf   :  { %2626 = vmatprep.subr.bf16.mxu0 %v5392_v0  ;;  %v5403_v0 = vld [vmem:[#allocation18_spill] sm:$0xff] }
 0x2c2   :  { %2627 = vmatpush3.bf16.msra.mxu0 %v5393_v21  ;;  %v5404_v21 = vld [vmem:[#allocation17_spill] sm:$0xff] }
 0x2c3   :  { %2628 = vmatprep.subr.bf16.mxu0 %v5394_v6  ;;  %v5405_v6 = vld [vmem:[#allocation52_spill] sm:$0xff] }
 0x2c6   :  { %2629 = vmatpush3.bf16.msra.mxu0 %v5395_v20  ;;  %v5406_v20 = vld [vmem:[#allocation53_spill] sm:$0xff] }
 0x2c9   :  { %1394 = vmatmul.mubr.bf16.vlgmr.msra.gmra.mxu0 %v5396_v61  ;;  %v5407_v61 = vld [vmem:[#allocation54_spill] sm:$0xff] }
 0x2ca   :  { %1401 = vmatprep.mubr.bf16.mxu0 %v5397_v15  ;;  %v5408_v15 = vld [vmem:[#allocation55_spill] sm:$0xff] }
 0x2d1   :  { %1402 = vmatmul.mubr.bf16.gmra.mxu0 %v5398_v42  ;;  %v5409_v42 = vld [vmem:[#allocation56_spill] sm:$0xff] }
 0x2d2   :  { %1409 = vmatprep.mubr.bf16.mxu0 %v5399_v17  ;;  %v5410_v17 = vld [vmem:[#allocation57_spill] sm:$0xff] }
 0x2d9   :  { %1410 = vmatmul.mubr.bf16.gmra.mxu0 %v5400_v18  ;;  %v5411_v18 = vld [vmem:[#allocation58_spill] sm:$0xff] }
 0x2da   :  { %1417 = vmatprep.mubr.bf16.mxu0 %v5401_v27  ;;  %v5412_v27 = vld [vmem:[#allocation59_spill] sm:$0xff] }
 0x2e1   :  { %1418 = vmatmul.mubr.bf16.gmra.mxu0 %v5402_v14  ;;  %v5413_v14 = vld [vmem:[#allocation60_spill] sm:$0xff] }
 0x2e2   :  { %1425 = vmatprep.mubr.bf16.mxu0 %v5403_v0  ;;  %v5414_v0 = vld [vmem:[#allocation61_spill] sm:$0xff] }
 0x2e9   :  { %1426 = vmatmul.mubr.bf16.gmra.mxu0 %v5404_v21  ;;  %v5415_v21 = vld [vmem:[#allocation62_spill] sm:$0xff] }
 0x2ea   :  { %1433 = vmatprep.mubr.bf16.mxu0 %v5405_v6  ;;  %v5416_v6 = vld [vmem:[#allocation63_spill] sm:$0xff] }
 0x2f1   :  { %1434 = vmatmul.mubr.bf16.gmra.mxu0 %v5406_v20  ;;  %v5417_v20 = vld [vmem:[#allocation64_spill] sm:$0xff] }
 0x2f2   :  { %1441 = vmatprep.mubr.bf16.mxu0 %v5407_v61  ;;  %v5418_v61 = vld [vmem:[#allocation65_spill] sm:$0xff] }
 0x2f9   :  { %1442 = vmatmul.mubr.bf16.gmra.mxu0 %v5408_v15  ;;  %v5419_v15 = vld [vmem:[#allocation66_spill] sm:$0xff] }
 0x2fa   :  { %1449 = vmatprep.mubr.bf16.mxu0 %v5409_v42  ;;  %v5420_v42 = vld [vmem:[#allocation67_spill] sm:$0xff] }
 0x301   :  { %1450 = vmatmul.mubr.bf16.gmra.mxu0 %v5410_v17  ;;  %v5421_v17 = vld [vmem:[#allocation68_spill] sm:$0xff] }
 0x302   :  { %1457 = vmatprep.mubr.bf16.mxu0 %v5411_v18  ;;  %v5422_v18 = vld [vmem:[#allocation69_spill] sm:$0xff] }
 0x309   :  { %1458 = vmatmul.mubr.bf16.gmra.mxu0 %v5412_v27  ;;  %v5423_v27 = vld [vmem:[#allocation70_spill] sm:$0xff] }
 0x30a   :  { %1465 = vmatprep.mubr.bf16.mxu0 %v5413_v14  ;;  %v5424_v14 = vld [vmem:[#allocation73_spill] sm:$0xff] }
 0x311   :  { %1466 = vmatmul.mubr.bf16.gmra.mxu0 %v5414_v0  ;;  %v5425_v0 = vld [vmem:[#allocation74_spill] sm:$0xff] }
 0x312   :  { %1473 = vmatprep.mubr.bf16.mxu0 %v5415_v21  ;;  %v5426_v21 = vld [vmem:[#allocation77_spill] sm:$0xff] }
 0x319   :  { %1474 = vmatmul.mubr.bf16.gmra.mxu0 %v5416_v6  ;;  %v3104_v6 = vld [vmem:[#allocation2 + $0x4] ss:$8 sps:$4 sm:$0xff]  }
 0x31a   :  { %1481 = vmatprep.mubr.bf16.mxu0 %v5417_v20 }
 0x321   :  { %1482 = vmatmul.mubr.bf16.gmra.mxu0 %v5418_v61 }
 0x322   :  { %1489 = vmatprep.mubr.bf16.mxu0 %v5419_v15  ;;  %v1217_v15 = vmul.f32 0.5, %v3893_v32 }
 0x329   :  { %1490 = vmatmul.mubr.bf16.gmra.mxu0 %v5420_v42  ;;  %v1329_v42 = vmul.f32 %v3893_v32, %v3885_v30  ;;  %v5432_v32 = vld [vmem:[#allocation14_spill] sm:$0xff]  ;;  %v5433_v30 = vld [vmem:[#allocation99_spill] sm:$0xff] }
 0x32a   :  { %1497 = vmatprep.mubr.bf16.mxu0 %v5421_v17 }
 0x331   :  { %1498 = vmatmul.mubr.bf16.gmra.mxu0 %v5422_v18 }
 0x332   :  { %1505 = vmatprep.mubr.bf16.mxu0 %v5423_v27  ;;  %v1218_v27 = vmul.f32 0.5, %v3895_v11 }
 0x339   :  { %1506 = vmatmul.mubr.bf16.gmra.mxu0 %v5424_v14 }
 0x33a   :  { %1513 = vmatprep.mubr.bf16.mxu0 %v5425_v0  ;;  %v1249_v0 = vadd.f32 %v1217_v15, %v5428_v1  ;;  %v1331_v1 = vmul.f32 %v3903_v3, %v5433_v30  ;;  %v5439_v30 = vld [vmem:[#allocation95_spill] sm:$0xff] }
 0x341   :  { %1514 = vmatmul.mubr.bf16.gmra.mxu0 %v5426_v21 }
 0x342   :  { %2067 = vmatprep.mubr.bf16.mxu0 %v3104_v6  ;;  %v1330_v6 = vmul.f32 %v3895_v11, %v5429_v62 }
 0x389   :  { %v2630_v20 = vpop.f32.mrf.mxu0 }
 0x38b   :  { %v2631_v61 = vpop.f32.mrf.mxu0 }
 0x38c   :  { %v2632_v17 = vadd.f32 %v2631_v61, %v2630_v20  ;;  %v1250_v20 = vadd.f32 %v1218_v27, %v5432_v32  ;;  %v1219_v61 = vmul.f32 0.5, %v3903_v3 }
 0x38d   :  { %v2633_v24 = vpop.f32.mrf.mxu0 }
 0x38e   :  { %v4119_v18 = vadd.f32 %v2632_v17, %v1329_v42 }
 0x38f   :  { %v2634_v14 = vpop.f32.mrf.mxu0 }
 0x390   :  { %5427 = vst [vmem:[#allocation46_spill] sm:$0xff] %v4119_v18  ;;  %v1554_v21 = vmul.f32 0.33333334, %v4119_v18  ;;  %v2635_v45 = vadd.f32 %v2634_v14, %v2633_v24 }
 0x391   :  { %v2636_v50 = vpop.f32.mrf.mxu0 }
 0x392   :  { %v4126_v26 = vadd.f32 %v1554_v21, %v1249_v0  ;;  %v4128_v48 = vadd.f32 %v2635_v45, %v1330_v6  ;;  %v1220_v45 = vmul.f32 0.5, %v3905_v56  ;;  %v5435_v21 = vld [vmem:[#allocation25_spill] sm:$0xff] }
 0x393   :  { %v2637_v42 = vpop.f32.mrf.mxu0  ;;  %v1251_v6 = vadd.f32 %v1219_v61, %v5435_v21  ;;  %v1333_v61 = vmul.f32 %v3913_v51, %v5439_v30  ;;  %v5445_v30 = vld [vmem:[#allocation91_spill] sm:$0xff] }
 0x394   :  { %5430 = vst [vmem:[#allocation48_spill] sm:$0xff] %v4126_v26  ;;  %5431 = vst [vmem:[#allocation50_spill] sm:$0xff] %v4128_v48  ;;  %v1555_v17 = vmul.f32 0.33333334, %v4128_v48  ;;  %v2638_v15 = vadd.f32 %v2637_v42, %v2636_v50  ;;  %v5436_v26 = vld [vmem:[#allocation100_spill] sm:$0xff] }
 0x395   :  { %v2639_v24 = vpop.f32.mrf.mxu0  ;;  %v1332_v62 = vmul.f32 %v3905_v56, %v5436_v26 }
 0x396   :  { %v4137_v14 = vadd.f32 %v1555_v17, %v1250_v20  ;;  %v4139_v0 = vadd.f32 %v2638_v15, %v1331_v1  ;;  %v5438_v20 = vld [vmem:[#allocation28_spill] sm:$0xff]  ;;  %v1221_v1 = vmul.f32 0.5, %v3913_v51 }
 0x397   :  { %v2640_v27 = vpop.f32.mrf.mxu0  ;;  %v1252_v17 = vadd.f32 %v1220_v45, %v5438_v20 }
 0x398   :  { %5434 = vst [vmem:[#allocation33_spill] sm:$0xff] %v4137_v14  ;;  %v1556_v32 = vmul.f32 0.33333334, %v4139_v0  ;;  %v2641_v3 = vadd.f32 %v2640_v27, %v2639_v24 }
 0x399   :  { %v2642_v50 = vpop.f32.mrf.mxu0 }
 0x39a   :  { %v4146_v42 = vadd.f32 %v1556_v32, %v1251_v6  ;;  %v4148_v11 = vadd.f32 %v2641_v3, %v1332_v62  ;;  %v1222_v62 = vmul.f32 0.5, %v3915_v9  ;;  %v5441_v32 = vld [vmem:[#allocation12_spill] sm:$0xff] }
 0x39b   :  { %v2643_v15 = vpop.f32.mrf.mxu0  ;;  %v1253_v3 = vadd.f32 %v1221_v1, %v5441_v32  ;;  %v1335_v1 = vmul.f32 %v3923_v35, %v5445_v30  ;;  %v5451_v30 = vld [vmem:[#allocation87_spill] sm:$0xff] }
 0x39c   :  { %5437 = vst [vmem:[#allocation36_spill] sm:$0xff] %v4146_v42  ;;  %v1557_v14 = vmul.f32 0.33333334, %v4148_v11  ;;  %v2644_v21 = vadd.f32 %v2643_v15, %v2642_v50  ;;  %v5442_v42 = vld [vmem:[#allocation96_spill] sm:$0xff] }
 0x39d   :  { %v2645_v24 = vpop.f32.mrf.mxu0  ;;  %v1334_v26 = vmul.f32 %v3915_v9, %v5442_v42 }
 0x39e   :  { %v4157_v27 = vadd.f32 %v1557_v14, %v1252_v17  ;;  %v4159_v6 = vadd.f32 %v2644_v21, %v1333_v61  ;;  %v5444_v14 = vld [vmem:[#allocation32_spill] sm:$0xff]  ;;  %v1223_v61 = vmul.f32 0.5, %v3923_v35 }
 0x39f   :  { %v2646_v45 = vpop.f32.mrf.mxu0  ;;  %v1254_v17 = vadd.f32 %v1222_v62, %v5444_v14 }
 0x3a0   :  { %5440 = vst [vmem:[#allocation29_spill] sm:$0xff] %v4157_v27  ;;  %v1558_v20 = vmul.f32 0.33333334, %v4159_v6  ;;  %v2647_v51 = vadd.f32 %v2646_v45, %v2645_v24 }
 0x3a1   :  { %v2648_v50 = vpop.f32.mrf.mxu0 }
 0x3a2   :  { %v4166_v15 = vadd.f32 %v1558_v20, %v1253_v3  ;;  %v4168_v56 = vadd.f32 %v2647_v51, %v1334_v26  ;;  %v1224_v26 = vmul.f32 0.5, %v3925_v5  ;;  %v5447_v20 = vld [vmem:[#allocation30_spill] sm:$0xff] }
 0x3a3   :  { %v2649_v21 = vpop.f32.mrf.mxu0  ;;  %v1255_v51 = vadd.f32 %v1223_v61, %v5447_v20  ;;  %v1337_v61 = vmul.f32 %v3933_v36, %v5451_v30 }
 0x3a4   :  { %5443 = vst [vmem:[#allocation94_spill] sm:$0xff] %v4166_v15  ;;  %v1559_v27 = vmul.f32 0.33333334, %v4168_v56  ;;  %v2650_v32 = vadd.f32 %v2649_v21, %v2648_v50  ;;  %v5448_v15 = vld [vmem:[#allocation92_spill] sm:$0xff] }
 0x3a5   :  { %v2651_v24 = vpop.f32.mrf.mxu0  ;;  %v1336_v42 = vmul.f32 %v3925_v5, %v5448_v15 }
 0x3a6   :  { %v4177_v45 = vadd.f32 %v1559_v27, %v1254_v17  ;;  %v4179_v3 = vadd.f32 %v2650_v32, %v1335_v1  ;;  %v5450_v27 = vld [vmem:[#allocation37_spill] sm:$0xff]  ;;  %v1225_v1 = vmul.f32 0.5, %v3933_v36 }
 0x3a7   :  { %v2652_v62 = vpop.f32.mrf.mxu0  ;;  %v1256_v17 = vadd.f32 %v1224_v26, %v5450_v27 }
 0x3a8   :  { %5446 = vst [vmem:[#allocation11_spill] sm:$0xff] %v4177_v45  ;;  %v1560_v14 = vmul.f32 0.33333334, %v4179_v3  ;;  %v2653_v35 = vadd.f32 %v2652_v62, %v2651_v24 }
 0x3a9   :  { %v2654_v50 = vpop.f32.mrf.mxu0 }
 0x3aa   :  { %v4186_v21 = vadd.f32 %v1560_v14, %v1255_v51  ;;  %v4188_v9 = vadd.f32 %v2653_v35, %v1336_v42  ;;  %v1226_v42 = vmul.f32 0.5, %v3935_v28  ;;  %v5453_v14 = vld [vmem:[#allocation35_spill] sm:$0xff] }
 0x3ab   :  { %v2655_v32 = vpop.f32.mrf.mxu0  ;;  %v1257_v35 = vadd.f32 %v1225_v1, %v5453_v14  ;;  %v5457_v14 = vld [vmem:[#allocation83_spill] sm:$0xff] }
 0x3ac   :  { %5449 = vst [vmem:[#allocation93_spill] sm:$0xff] %v4186_v21  ;;  %v1561_v45 = vmul.f32 0.33333334, %v4188_v9  ;;  %v2656_v20 = vadd.f32 %v2655_v32, %v2654_v50  ;;  %v5454_v21 = vld [vmem:[#allocation88_spill] sm:$0xff]  ;;  %v1339_v30 = vmul.f32 %v3943_v19, %v5457_v14 }
 0x3ad   :  { %v2657_v24 = vpop.f32.mrf.mxu0  ;;  %v1338_v15 = vmul.f32 %v3935_v28, %v5454_v21 }
 0x3ae   :  { %v4197_v62 = vadd.f32 %v1561_v45, %v1256_v17  ;;  %v4199_v51 = vadd.f32 %v2656_v20, %v1337_v61  ;;  %v5456_v45 = vld [vmem:[#allocation51_spill] sm:$0xff]  ;;  %v1227_v61 = vmul.f32 0.5, %v3943_v19 }
 0x3af   :  { %v2658_v26 = vpop.f32.mrf.mxu0  ;;  %v1258_v17 = vadd.f32 %v1226_v42, %v5456_v45 }
 0x3b0   :  { %5452 = vst [vmem:[#allocation22_spill] sm:$0xff] %v4197_v62  ;;  %v1562_v27 = vmul.f32 0.33333334, %v4199_v51  ;;  %v2659_v36 = vadd.f32 %v2658_v26, %v2657_v24 }
 0x3b1   :  { %v2660_v50 = vpop.f32.mrf.mxu0 }
 0x3b2   :  { %v4206_v32 = vadd.f32 %v1562_v27, %v1257_v35  ;;  %v4208_v5 = vadd.f32 %v2659_v36, %v1338_v15  ;;  %v1228_v15 = vmul.f32 0.5, %v3945_v37  ;;  %v5459_v27 = vld [vmem:[#allocation49_spill] sm:$0xff] }
 0x3b3   :  { %v2661_v20 = vpop.f32.mrf.mxu0  ;;  %v1259_v36 = vadd.f32 %v1227_v61, %v5459_v27 }
 0x3b4   :  { %5455 = vst [vmem:[#allocation31_spill] sm:$0xff] %v4206_v32  ;;  %v1563_v62 = vmul.f32 0.33333334, %v4208_v5  ;;  %v2662_v28 = vadd.f32 %v2661_v20, %v2660_v50  ;;  %v5460_v32 = vld [vmem:[#allocation84_spill] sm:$0xff] }
 0x3b5   :  { %v2663_v24 = vpop.f32.mrf.mxu0  ;;  %v1340_v21 = vmul.f32 %v3945_v37, %v5460_v32 }
 0x3b6   :  { %v4217_v26 = vadd.f32 %v1563_v62, %v1258_v17  ;;  %v4219_v35 = vadd.f32 %v2662_v28, %v1339_v30  ;;  %v5462_v62 = vld [vmem:[#allocation47_spill] sm:$0xff]  ;;  %v1229_v30 = vmul.f32 0.5, %v3953_v46  ;;  %v5463_v28 = vld [vmem:[#allocation16_spill] sm:$0xff] }
 0x3b7   :  { %v2664_v42 = vpop.f32.mrf.mxu0  ;;  %v1260_v50 = vadd.f32 %v1228_v15, %v5462_v62  ;;  %v1341_v27 = vmul.f32 %v3953_v46, %v5463_v28  ;;  %v5465_v15 = vld [vmem:[#allocation45_spill] sm:$0xff] }
 0x3b8   :  { %5458 = vst [vmem:[#allocation24_spill] sm:$0xff] %v4217_v26  ;;  %v1564_v45 = vmul.f32 0.33333334, %v4219_v35  ;;  %v2665_v1 = vadd.f32 %v2664_v42, %v2663_v24 }
 0x3b9   :  { %v2666_v18 = vpop.f32.mrf.mxu0 }
 0x3ba   :  { %v4226_v48 = vadd.f32 %v1564_v45, %v1259_v36  ;;  %v4228_v19 = vadd.f32 %v2665_v1, %v1340_v21  ;;  %v1230_v21 = vmul.f32 0.5, %v3955_v52  ;;  %v1261_v45 = vadd.f32 %v1229_v30, %v5465_v15 }
 0x3bb   :  { %v2667_v17 = vpop.f32.mrf.mxu0 }
 0x3bc   :  { %5461 = vst [vmem:[#allocation15_spill] sm:$0xff] %v4226_v48  ;;  %v1565_v20 = vmul.f32 0.33333334, %v4228_v19  ;;  %v2668_v37 = vadd.f32 %v2667_v17, %v2666_v18  ;;  %v5466_v48 = vld [vmem:[#allocation80_spill] sm:$0xff]  ;;  %v1231_v17 = vmul.f32 0.5, %v3963_v8 }
 0x3bd   :  { %v2669_v24 = vpop.f32.mrf.mxu0  ;;  %v1342_v32 = vmul.f32 %v3955_v52, %v5466_v48  ;;  %v5468_v18 = vld [vmem:[#allocation44_spill] sm:$0xff] }
 0x3be   :  { %v4237_v42 = vadd.f32 %v1565_v20, %v1260_v50  ;;  %v4239_v36 = vadd.f32 %v2668_v37, %v1341_v27  ;;  %v1262_v50 = vadd.f32 %v1230_v21, %v5468_v18  ;;  %v5469_v37 = vld [vmem:[#allocation72_spill] sm:$0xff]  ;;  %v5471_v21 = vld [vmem:[#allocation39_spill] sm:$0xff] }
 0x3bf   :  { %v2670_v1 = vpop.f32.mrf.mxu0  ;;  %v1343_v15 = vmul.f32 %v3963_v8, %v5469_v37 }
 0x3c0   :  { %5464 = vst [vmem:[#allocation19_spill] sm:$0xff] %v4237_v42  ;;  %v1566_v62 = vmul.f32 0.33333334, %v4239_v36  ;;  %v2671_v61 = vadd.f32 %v2670_v1, %v2669_v24 }
 0x3c1   :  { %v2672_v26 = vpop.f32.mrf.mxu0 }
 0x3c2   :  { %v4246_v14 = vadd.f32 %v1566_v62, %v1261_v45  ;;  %v4248_v46 = vadd.f32 %v2671_v61, %v1342_v32  ;;  %v1232_v32 = vmul.f32 0.5, %v3965_v34  ;;  %v1263_v62 = vadd.f32 %v1231_v17, %v5471_v21 }
 0x3c3   :  { %v2673_v20 = vpop.f32.mrf.mxu0 }
 0x3c4   :  { %5467 = vst [vmem:[#allocation21_spill] sm:$0xff] %v4246_v14  ;;  %v1567_v27 = vmul.f32 0.33333334, %v4248_v46  ;;  %v2674_v52 = vadd.f32 %v2673_v20, %v2672_v26  ;;  %v5472_v14 = vld [vmem:[#allocation76_spill] sm:$0xff]  ;;  %v5474_v26 = vld [vmem:[#allocation41_spill] sm:$0xff]  ;;  %v1233_v20 = vmul.f32 0.5, %v3973_v13 }
 0x3c5   :  { %v2675_v24 = vpop.f32.mrf.mxu0  ;;  %v1344_v48 = vmul.f32 %v3965_v34, %v5472_v14 }
 0x3c6   :  { %v4257_v1 = vadd.f32 %v1567_v27, %v1262_v50  ;;  %v4259_v45 = vadd.f32 %v2674_v52, %v1343_v15  ;;  %v1264_v50 = vadd.f32 %v1232_v32, %v5474_v26  ;;  %v5475_v52 = vld [vmem:[#allocation101_spill] sm:$0xff]  ;;  %v5476_v32 = vld [vmem:[#allocation27_spill] sm:$0xff] }
 0x3c7   :  { %v2676_v61 = vpop.f32.mrf.mxu0  ;;  %v1345_v21 = vmul.f32 %v3973_v13, %v5475_v52 }
 0x3c8   :  { %5470 = vst [vmem:[#allocation23_spill] sm:$0xff] %v4257_v1  ;;  %v1568_v18 = vmul.f32 0.33333334, %v4259_v45  ;;  %v2677_v30 = vadd.f32 %v2676_v61, %v2675_v24 }
 0x3c9   :  { %v2678_v42 = vpop.f32.mrf.mxu0 }
 0x3ca   :  { %v4266_v28 = vadd.f32 %v1568_v18, %v1263_v62  ;;  %v4268_v8 = vadd.f32 %v2677_v30, %v1344_v48  ;;  %v1234_v48 = vmul.f32 0.5, %v3975_v4  ;;  %v1265_v18 = vadd.f32 %v1233_v20, %v5476_v32 }
 0x3cb   :  { %v2679_v27 = vpop.f32.mrf.mxu0 }
 0x3cc   :  { %5473 = vst [vmem:[#allocation18_spill] sm:$0xff] %v4266_v28  ;;  %v1569_v15 = vmul.f32 0.33333334, %v4268_v8  ;;  %v2680_v34 = vadd.f32 %v2679_v27, %v2678_v42  ;;  %v5477_v28 = vld [vmem:[#allocation102_spill] sm:$0xff]  ;;  %v5479_v42 = vld [vmem:[#allocation13_spill] sm:$0xff]  ;;  %v1235_v27 = vmul.f32 0.5, %v3985_v16 }
 0x3cd   :  { %v2681_v24 = vpop.f32.mrf.mxu0  ;;  %v1346_v14 = vmul.f32 %v3975_v4, %v5477_v28 }
 0x3ce   :  { %v4277_v61 = vadd.f32 %v1569_v15, %v1264_v50  ;;  %v4279_v62 = vadd.f32 %v2680_v34, %v1345_v21  ;;  %v1266_v50 = vadd.f32 %v1234_v48, %v5479_v42  ;;  %v5480_v34 = vld [vmem:[#allocation97_spill] sm:$0xff]  ;;  %v5482_v48 = vld [vmem:[#allocation26_spill] sm:$0xff] }
 0x3cf   :  { %v2682_v30 = vpop.f32.mrf.mxu0  ;;  %v1347_v20 = vmul.f32 %v3985_v16, %v5480_v34 }
 0x3d0   :  { %v1570_v26 = vmul.f32 0.33333334, %v4279_v62  ;;  %v2683_v17 = vadd.f32 %v2682_v30, %v2681_v24 }
 0x3d1   :  { %v2684_v1 = vpop.f32.mrf.mxu0 }
 0x3d2   :  { %v4286_v37 = vadd.f32 %v1570_v26, %v1265_v18  ;;  %v4288_v13 = vadd.f32 %v2683_v17, %v1346_v14  ;;  %v1236_v14 = vmul.f32 0.5, %v3987_v60  ;;  %v1267_v26 = vadd.f32 %v1235_v27, %v5482_v48 }
 0x3d3   :  { %v2685_v15 = vpop.f32.mrf.mxu0  ;;  %v1349_v27 = vmul.f32 %v4063_v44, %v5388_v58 }
 0x3d4   :  { %5478 = vst [vmem:[#allocation17_spill] sm:$0xff] %v4286_v37  ;;  %v1571_v21 = vmul.f32 0.33333334, %v4288_v13  ;;  %v2686_v32 = vadd.f32 %v2685_v15, %v2684_v1  ;;  %v5483_v37 = vld [vmem:[#allocation98_spill] sm:$0xff] }
 0x3d5   :  { %v2687_v24 = vpop.f32.mrf.mxu0  ;;  %v1348_v28 = vmul.f32 %v3987_v60, %v5483_v37 }
 0x3d6   :  { %v4297_v30 = vadd.f32 %v1571_v21, %v1266_v50  ;;  %v4299_v18 = vadd.f32 %v2686_v32, %v1347_v20  ;;  %v5484_v50 = vld [vmem:[#allocation34_spill] sm:$0xff]  ;;  %v1237_v20 = vmul.f32 0.5, %v4063_v44 }
 0x3d7   :  { %v2688_v17 = vpop.f32.mrf.mxu0  ;;  %v1268_v21 = vadd.f32 %v1236_v14, %v5484_v50  ;;  %v1350_v50 = vmul.f32 %v4056_v29, %v5386_v25 }
 0x3d8   :  { %5481 = vst [vmem:[#allocation52_spill] sm:$0xff] %v4297_v30  ;;  %v1572_v42 = vmul.f32 0.33333334, %v4299_v18  ;;  %v2689_v16 = vadd.f32 %v2688_v17, %v2687_v24 }
 0x3d9   :  { %v2690_v1 = vpop.f32.mrf.mxu0 }
 0x3da   :  { %v4306_v15 = vadd.f32 %v1572_v42, %v1267_v26  ;;  %v4308_v4 = vadd.f32 %v2689_v16, %v1348_v28  ;;  %v1238_v28 = vmul.f32 0.5, %v4056_v29  ;;  %v1269_v42 = vadd.f32 %v1237_v20, %v5387_v10 }
 0x3db   :  { %v2691_v32 = vpop.f32.mrf.mxu0  ;;  %v1351_v10 = vmul.f32 %v4052_v40, %v5383_v23 }
 0x3dc   :  { %v1573_v30 = vmul.f32 0.33333334, %v4308_v4  ;;  %v2692_v48 = vadd.f32 %v2691_v32, %v2690_v1 }
 0x3dd   :  { %v2693_v24 = vpop.f32.mrf.mxu0 }
 0x3de   :  { %v4317_v17 = vadd.f32 %v1573_v30, %v1268_v21  ;;  %v4319_v26 = vadd.f32 %v2692_v48, %v1349_v27  ;;  %v1270_v30 = vadd.f32 %v1238_v28, %v5385_v39  ;;  %v1239_v21 = vmul.f32 0.5, %v4052_v40 }
 0x3df   :  { %v2694_v14 = vpop.f32.mrf.mxu0 }
 0x3e0   :  { %v1574_v16 = vmul.f32 0.33333334, %v4319_v26  ;;  %v2695_v44 = vadd.f32 %v2694_v14, %v2693_v24  ;;  %v1271_v28 = vadd.f32 %v1239_v21, %v5382_v7  ;;  %v1353_v7 = vmul.f32 %v4037_v2, %v5378_v33 }
 0x3e1   :  { %v2696_v1 = vpop.f32.mrf.mxu0 }
 0x3e2   :  { %v4326_v32 = vadd.f32 %v1574_v16, %v1269_v42  ;;  %v4328_v60 = vadd.f32 %v2695_v44, %v1350_v50  ;;  %v1240_v16 = vmul.f32 0.5, %v4041_v22  ;;  %v1352_v44 = vmul.f32 %v4041_v22, %v5381_v54 }
 0x3e3   :  { %v2697_v27 = vpop.f32.mrf.mxu0 }
 0x3e4   :  { %v1575_v48 = vmul.f32 0.33333334, %v4328_v60  ;;  %v2698_v20 = vadd.f32 %v2697_v27, %v2696_v1 }
 0x3e5   :  { %v2699_v24 = vpop.f32.mrf.mxu0 }
 0x3e6   :  { %v4337_v14 = vadd.f32 %v1575_v48, %v1270_v30  ;;  %v4339_v42 = vadd.f32 %v2698_v20, %v1351_v10  ;;  %v1272_v30 = vadd.f32 %v1240_v16, %v5380_v55  ;;  %v1241_v48 = vmul.f32 0.5, %v4037_v2 }
 0x3e7   :  { %v2700_v39 = vpop.f32.mrf.mxu0 }
 0x3e8   :  { %v1576_v50 = vmul.f32 0.33333334, %v4339_v42  ;;  %v2701_v40 = vadd.f32 %v2700_v39, %v2699_v24  ;;  %v1273_v16 = vadd.f32 %v1241_v48, %v5377_v41  ;;  %v1355_v41 = vmul.f32 %v4024_v38, %v5373_v47 }
 0x3e9   :  { %v2702_v1 = vpop.f32.mrf.mxu0 }
 0x3ea   :  { %v4346_v27 = vadd.f32 %v1576_v50, %v1271_v28  ;;  %v4348_v29 = vadd.f32 %v2701_v40, %v1352_v44  ;;  %v1242_v50 = vmul.f32 0.5, %v4028_v63  ;;  %v1354_v40 = vmul.f32 %v4028_v63, %v5376_v31 }
 0x3eb   :  { %v2703_v10 = vpop.f32.mrf.mxu0 }
 0x3ec   :  { %v1577_v20 = vmul.f32 0.33333334, %v4348_v29  ;;  %v2704_v21 = vadd.f32 %v2703_v10, %v2702_v1 }
 0x3ed   :  { %v2705_v24 = vpop.f32.mrf.mxu0 }
 0x3ee   :  { %v4357_v39 = vadd.f32 %v1577_v20, %v1272_v30  ;;  %v4359_v28 = vadd.f32 %v2704_v21, %v1353_v7  ;;  %v1274_v30 = vadd.f32 %v1242_v50, %v5375_v59  ;;  %v1243_v20 = vmul.f32 0.5, %v4024_v38 }
 0x3ef   :  { %v2706_v55 = vpop.f32.mrf.mxu0 }
 0x3f0   :  { %v1578_v44 = vmul.f32 0.33333334, %v4359_v28  ;;  %v2707_v2 = vadd.f32 %v2706_v55, %v2705_v24  ;;  %v1275_v50 = vadd.f32 %v1243_v20, %v5372_v12 }
 0x3f1   :  { %v2708_v1 = vpop.f32.mrf.mxu0 }
 0x3f2   :  { %v4366_v10 = vadd.f32 %v1578_v44, %v1273_v16  ;;  %v4368_v22 = vadd.f32 %v2707_v2, %v1354_v40  ;;  %v1244_v44 = vmul.f32 0.5, %v4015_v53  ;;  %v1356_v2 = vmul.f32 %v4015_v53, %v5371_v57  ;;  %v5495_v57 = vld [vmem:[#allocation79_spill] sm:$0xff] }
 0x3f3   :  { %v2709_v7 = vpop.f32.mrf.mxu0 }
 0x3f4   :  { %5485 = vst [vmem:[#allocation53_spill] sm:$0xff] %v4366_v10  ;;  %5486 = vst [vmem:[#allocation54_spill] sm:$0xff] %v4368_v22  ;;  %v1579_v21 = vmul.f32 0.33333334, %v4368_v22  ;;  %v2710_v48 = vadd.f32 %v2709_v7, %v2708_v1  ;;  %v1662_v63 = vpack.c.bf16 %v4368_v22, %v4359_v28 }
 0x3f5   :  { %v2711_v24 = vpop.f32.mrf.mxu0 }
 0x3f6   :  { %v4377_v55 = vadd.f32 %v1579_v21, %v1274_v30  ;;  %v4379_v16 = vadd.f32 %v2710_v48, %v1355_v41  ;;  %v1276_v30 = vadd.f32 %v1244_v44, %v3600_v43  ;;  %v1245_v21 = vmul.f32 0.5, %v4009_v49  ;;  %v5494_v44 = vld [vmem:[#allocation43_spill] sm:$0xff] }
 0x3f7   :  { %v2712_v59 = vpop.f32.mrf.mxu0 }
 0x3f8   :  { %5487 = vst [vmem:[#allocation55_spill] sm:$0xff] %v4377_v55  ;;  %5488 = vst [vmem:[#allocation56_spill] sm:$0xff] %v4379_v16  ;;  %v1580_v40 = vmul.f32 0.33333334, %v4379_v16  ;;  %v2713_v38 = vadd.f32 %v2712_v59, %v2711_v24  ;;  %v5491_v55 = vld [vmem:[#allocation78_spill] sm:$0xff] }
 0x3f9   :  { %v2714_v1 = vpop.f32.mrf.mxu0  ;;  %v1357_v12 = vmul.f32 %v4009_v49, %v5491_v55 }
 0x3fa   :  { %v4386_v7 = vadd.f32 %v1580_v40, %v1275_v50  ;;  %v4388_v47 = vadd.f32 %v2713_v38, %v1356_v2  ;;  %v5493_v40 = vld [vmem:[#allocation105_spill] sm:$0xff]  ;;  %v1277_v38 = vadd.f32 %v1245_v21, %v5494_v44 }
 0x3fb   :  { %v2715_v41 = vpop.f32.mrf.mxu0  ;;  %v1246_v2 = vmul.f32 0.5, %v5493_v40  ;;  %v1358_v10 = vmul.f32 %v5493_v40, %v5495_v57  ;;  %v5502_v57 = vld [vmem:[#allocation75_spill] sm:$0xff] }
 0x3fc   :  { %5489 = vst [vmem:[#allocation57_spill] sm:$0xff] %v4386_v7  ;;  %5490 = vst [vmem:[#allocation58_spill] sm:$0xff] %v4388_v47  ;;  %v1581_v48 = vmul.f32 0.33333334, %v4388_v47  ;;  %v2716_v20 = vadd.f32 %v2715_v41, %v2714_v1  ;;  %v1663_v53 = vpack.c.bf16 %v4388_v47, %v4379_v16  ;;  %v5499_v16 = vld [vmem:[#allocation71_spill] sm:$0xff] }
 0x3fd   :  { %v2717_v24 = vpop.f32.mrf.mxu0 }
 0x3fe   :  { %v4397_v59 = vadd.f32 %v1581_v48, %v1276_v30  ;;  %v4399_v50 = vadd.f32 %v2716_v20, %v1357_v12  ;;  %v5497_v30 = vld [vmem:[#allocation38_spill] sm:$0xff] }
 0x3ff   :  { %v2718_v43 = vpop.f32.mrf.mxu0  ;;  %v1278_v48 = vadd.f32 %v1246_v2, %v5497_v30  ;;  %v5498_v12 = vld [vmem:[#allocation106_spill] sm:$0xff] }
 0x400   :  { %5492 = vst [vmem:[#allocation59_spill] sm:$0xff] %v4397_v59  ;;  %v1582_v7 = vmul.f32 0.33333334, %v4399_v50  ;;  %v2719_v49 = vadd.f32 %v2718_v43, %v2717_v24  ;;  %v1247_v20 = vmul.f32 0.5, %v5498_v12  ;;  %v1359_v21 = vmul.f32 %v5498_v12, %v5499_v16  ;;  %v5505_v16 = vld [vmem:[#allocation42_spill] sm:$0xff] }
 0x401   :  { %v2720_v1 = vpop.f32.mrf.mxu0 }
 0x402   :  { %v4406_v41 = vadd.f32 %v1582_v7, %v1277_v38  ;;  %v4408_v55 = vadd.f32 %v2719_v49, %v1358_v10  ;;  %v5500_v10 = vld [vmem:[#allocation40_spill] sm:$0xff]  ;;  %v5501_v49 = vld [vmem:[#allocation107_spill] sm:$0xff] }
 0x403   :  { %v2721_v59 = vpop.f32.mrf.mxu0  ;;  %v1279_v38 = vadd.f32 %v1247_v20, %v5500_v10  ;;  %v1248_v30 = vmul.f32 0.5, %v5501_v49  ;;  %v1360_v22 = vmul.f32 %v5501_v49, %v5502_v57  ;;  %v5514_v10 = vpack.c.bf16 %v4168_v56, %v4159_v6  ;;  %v5518_v49 = vld [vmem:[#allocation50_spill] sm:$0xff] }
 0x404   :  { %5496 = vst [vmem:[#allocation60_spill] sm:$0xff] %v4406_v41  ;;  %v1583_v47 = vmul.f32 0.33333334, %v4408_v55  ;;  %v2722_v44 = vadd.f32 %v2721_v59, %v2720_v1  ;;  %v1664_v40 = vpack.c.bf16 %v4408_v55, %v4399_v50 }
 0x405   :  { %v2723_v24 = vpop.f32.mrf.mxu0 }
 0x406   :  { %v4417_v43 = vadd.f32 %v1583_v47, %v1278_v48  ;;  %v4419_v7 = vadd.f32 %v2722_v44, %v1359_v21  ;;  %v1280_v47 = vadd.f32 %v1248_v30, %v5505_v16  ;;  %v5507_v44 = vpack.c.bf16 %v4268_v8, %v4259_v45  ;;  %v5519_v30 = vld [vmem:[#allocation46_spill] sm:$0xff] }
 0x407   :  { %v2724_v2 = vpop.f32.mrf.mxu0  ;;  %v5510_v16 = vpack.c.bf16 %v4208_v5, %v4199_v51 }
 0x408   :  { %v1584_v41 = vmul.f32 0.33333334, %v4419_v7  ;;  %v2725_v12 = vadd.f32 %v2724_v2, %v2723_v24  ;;  %v5511_v24 = vpack.c.bf16 %v4348_v29, %v4339_v42  ;;  %v5517_v2 = vpack.c.bf16 %v4288_v13, %v4279_v62 }
 0x40a   :  { %v4426_v59 = vadd.f32 %v1584_v41, %v1279_v38  ;;  %v4428_v1 = vadd.f32 %v2725_v12, %v1360_v22  ;;  %v5508_v41 = vpack.c.bf16 %v4248_v46, %v4239_v36  ;;  %v5509_v22 = vpack.c.bf16 %v4228_v19, %v4219_v35 }
 0x40b   :  { %v5516_v38 = vpack.c.bf16 %v4148_v11, %v4139_v0  ;;  %v5520_v12 = vpack.c.bf16 %v5518_v49, %v5519_v30 }
 0x40c   :  { %5503 = vst [vmem:[#allocation61_spill] sm:$0xff] %v4426_v59  ;;  %5504 = vst [vmem:[#allocation62_spill] sm:$0xff] %v4428_v1  ;;  %v1585_v48 = vmul.f32 0.33333334, %v4428_v1  ;;  %v1665_v20 = vpack.c.bf16 %v4428_v1, %v4419_v7  ;;  %v5558_v1 = vld [vmem:[#allocation33_spill] sm:$0xff] }
 0x40e   :  { %v4434_v21 = vadd.f32 %v1585_v48, %v1280_v47  ;;  %2726 = vmatprep.subr.bf16.mxu1 %v1665_v20  ;;  %v4472_v47 = vld [vmem:[#allocation2] ss:$8 sps:$4 sm:$0xff]   ;;  %v4475_v48 = vld [vmem:[#allocation2 + $0x14] ss:$8 sps:$4 sm:$0xff]   ;;  %v4478_v20 = vld [vmem:[#allocation2 + $0x10] ss:$8 sps:$4 sm:$0xff]  }
 0x40f   :  { %2727 = vmatpush3.bf16.msra.mxu1 %v5507_v44  ;;  %5521 = vst [vmem:[#allocation64_spill] sm:$0xff] %v4472_v47  ;;  %5522 = vst [vmem:[#allocation65_spill] sm:$0xff] %v4475_v48  ;;  %v4481_v44 = vld [vmem:[#allocation2 + $0x24] ss:$8 sps:$4 sm:$0xff]  }
 0x410   :  { %5506 = vst [vmem:[#allocation63_spill] sm:$0xff] %v4434_v21  ;;  %2728 = vmatprep.subr.bf16.mxu1 %v1664_v40  ;;  %v5512_v40 = vpack.c.bf16 %v4188_v9, %v4179_v3  ;;  %5523 = vst [vmem:[#allocation66_spill] sm:$0xff] %v4478_v20 }
 0x411   :  { %5524 = vst [vmem:[#allocation67_spill] sm:$0xff] %v4481_v44 }
 0x413   :  { %2729 = vmatpush3.bf16.msra.mxu1 %v5508_v41  ;;  %v4484_v41 = vld [vmem:[#allocation2 + $0x20] ss:$8 sps:$4 sm:$0xff]  }
 0x414   :  { %2730 = vmatprep.subr.bf16.mxu1 %v1663_v53  ;;  %v5513_v53 = vpack.c.bf16 %v4328_v60, %v4319_v26  ;;  %5525 = vst [vmem:[#allocation68_spill] sm:$0xff] %v4484_v41 }
 0x417   :  { %2731 = vmatpush3.bf16.msra.mxu1 %v5509_v22  ;;  %v4487_v22 = vld [vmem:[#allocation2 + $0x34] ss:$8 sps:$4 sm:$0xff]  }
 0x418   :  { %2732 = vmatprep.subr.bf16.mxu1 %v1662_v63  ;;  %v5515_v63 = vpack.c.bf16 %v4308_v4, %v4299_v18  ;;  %5526 = vst [vmem:[#allocation69_spill] sm:$0xff] %v4487_v22 }
 0x41b   :  { %2733 = vmatpush3.bf16.msra.mxu1 %v5510_v16  ;;  %v4490_v16 = vld [vmem:[#allocation2 + $0x30] ss:$8 sps:$4 sm:$0xff]  }
 0x41c   :  { %2734 = vmatprep.subr.bf16.mxu1 %v5511_v24  ;;  %5527 = vst [vmem:[#allocation70_spill] sm:$0xff] %v4490_v16  ;;  %v4493_v24 = vld [vmem:[#allocation2 + $0x44] ss:$8 sps:$4 sm:$0xff]  }
 0x41d   :  { %5528 = vst [vmem:[#allocation73_spill] sm:$0xff] %v4493_v24 }
 0x41f   :  { %2735 = vmatpush3.bf16.msra.mxu1 %v5512_v40  ;;  %v4496_v40 = vld [vmem:[#allocation2 + $0x40] ss:$8 sps:$4 sm:$0xff]  }
 0x420   :  { %2736 = vmatprep.subr.bf16.mxu1 %v5513_v53  ;;  %5529 = vst [vmem:[#allocation74_spill] sm:$0xff] %v4496_v40  ;;  %v4499_v53 = vld [vmem:[#allocation2 + $0x54] ss:$8 sps:$4 sm:$0xff]  }
 0x421   :  { %5530 = vst [vmem:[#allocation77_spill] sm:$0xff] %v4499_v53 }
 0x423   :  { %2737 = vmatpush3.bf16.msra.mxu1 %v5514_v10  ;;  %v4502_v10 = vld [vmem:[#allocation2 + $0x50] ss:$8 sps:$4 sm:$0xff]  }
 0x424   :  { %2738 = vmatprep.subr.bf16.mxu1 %v5515_v63  ;;  %5531 = vst [vmem:[#allocation20_spill] sm:$0xff] %v4502_v10  ;;  %v4505_v63 = vld [vmem:[#allocation2 + $0x64] ss:$8 sps:$4 sm:$0xff]  }
 0x425   :  { %5532 = vst [vmem:[#allocation14_spill] sm:$0xff] %v4505_v63 }
 0x427   :  { %2739 = vmatpush3.bf16.msra.mxu1 %v5516_v38  ;;  %v4508_v38 = vld [vmem:[#allocation2 + $0x60] ss:$8 sps:$4 sm:$0xff]  }
 0x428   :  { %2740 = vmatprep.subr.bf16.mxu1 %v5517_v2  ;;  %5533 = vst [vmem:[#allocation25_spill] sm:$0xff] %v4508_v38  ;;  %v4511_v2 = vld [vmem:[#allocation2 + $0x74] ss:$8 sps:$4 sm:$0xff]  }
 0x429   :  { %5534 = vst [vmem:[#allocation28_spill] sm:$0xff] %v4511_v2 }
 0x42b   :  { %2741 = vmatpush3.bf16.msra.mxu1 %v5520_v12  ;;  %v4514_v12 = vld [vmem:[#allocation2 + $0x70] ss:$8 sps:$4 sm:$0xff]  }
 0x42c   :  { %5535 = vst [vmem:[#allocation12_spill] sm:$0xff] %v4514_v12 }
 0x42e   :  { %1731 = vmatmul.mubr.bf16.vlgmr.msra.gmra.mxu1 %v4472_v47  ;;  %v5555_v47 = vld [vmem:[#allocation48_spill] sm:$0xff] }
 0x42f   :  { %1738 = vmatprep.mubr.bf16.mxu1 %v4475_v48 }
 0x436   :  { %1739 = vmatmul.mubr.bf16.gmra.mxu1 %v4478_v20 }
 0x437   :  { %1746 = vmatprep.mubr.bf16.mxu1 %v4481_v44  ;;  %v5554_v44 = vld [vmem:[#allocation104_spill] sm:$0xff] }
 0x438   :  { %v1667_v20 = vmul.f32 %v5518_v49, %v5554_v44 }
 0x43e   :  { %1747 = vmatmul.mubr.bf16.gmra.mxu1 %v4484_v41 }
 0x43f   :  { %1754 = vmatprep.mubr.bf16.mxu1 %v4487_v22 }
 0x446   :  { %1755 = vmatmul.mubr.bf16.gmra.mxu1 %v4490_v16 }
 0x447   :  { %1762 = vmatprep.mubr.bf16.mxu1 %v4493_v24  ;;  %v5552_v24 = vld [vmem:[#allocation103_spill] sm:$0xff] }
 0x44e   :  { %1763 = vmatmul.mubr.bf16.gmra.mxu1 %v4496_v40 }
 0x44f   :  { %1770 = vmatprep.mubr.bf16.mxu1 %v4499_v53  ;;  %v4517_v53 = vld [vmem:[#allocation2 + $0x84] ss:$8 sps:$4 sm:$0xff]  }
 0x450   :  { %5536 = vst [vmem:[#allocation32_spill] sm:$0xff] %v4517_v53 }
 0x456   :  { %1771 = vmatmul.mubr.bf16.gmra.mxu1 %v4502_v10  ;;  %v4520_v10 = vld [vmem:[#allocation2 + $0x80] ss:$8 sps:$4 sm:$0xff]  }
 0x457   :  { %1778 = vmatprep.mubr.bf16.mxu1 %v4505_v63  ;;  %5537 = vst [vmem:[#allocation30_spill] sm:$0xff] %v4520_v10  ;;  %v4523_v63 = vld [vmem:[#allocation2 + $0x94] ss:$8 sps:$4 sm:$0xff]  }
 0x458   :  { %5538 = vst [vmem:[#allocation37_spill] sm:$0xff] %v4523_v63 }
 0x45e   :  { %1779 = vmatmul.mubr.bf16.gmra.mxu1 %v4508_v38  ;;  %v4526_v38 = vld [vmem:[#allocation2 + $0x90] ss:$8 sps:$4 sm:$0xff]  }
 0x45f   :  { %1786 = vmatprep.mubr.bf16.mxu1 %v4511_v2  ;;  %5539 = vst [vmem:[#allocation35_spill] sm:$0xff] %v4526_v38  ;;  %v4529_v2 = vld [vmem:[#allocation2 + $0xa4] ss:$8 sps:$4 sm:$0xff]  }
 0x460   :  { %5540 = vst [vmem:[#allocation51_spill] sm:$0xff] %v4529_v2 }
 0x466   :  { %1787 = vmatmul.mubr.bf16.gmra.mxu1 %v4514_v12  ;;  %v4532_v12 = vld [vmem:[#allocation2 + $0xa0] ss:$8 sps:$4 sm:$0xff]  }
 0x467   :  { %1794 = vmatprep.mubr.bf16.mxu1 %v4517_v53  ;;  %5541 = vst [vmem:[#allocation49_spill] sm:$0xff] %v4532_v12  ;;  %v4535_v53 = vld [vmem:[#allocation2 + $0xb4] ss:$8 sps:$4 sm:$0xff]  }
 0x468   :  { %5542 = vst [vmem:[#allocation47_spill] sm:$0xff] %v4535_v53 }
 0x46e   :  { %1795 = vmatmul.mubr.bf16.gmra.mxu1 %v4520_v10  ;;  %v4538_v10 = vld [vmem:[#allocation2 + $0xb0] ss:$8 sps:$4 sm:$0xff]  }
 0x46f   :  { %1802 = vmatprep.mubr.bf16.mxu1 %v4523_v63  ;;  %5543 = vst [vmem:[#allocation45_spill] sm:$0xff] %v4538_v10  ;;  %v4541_v63 = vld [vmem:[#allocation2 + $0xc4] ss:$8 sps:$4 sm:$0xff]  }
 0x470   :  { %5544 = vst [vmem:[#allocation44_spill] sm:$0xff] %v4541_v63 }
 0x476   :  { %1803 = vmatmul.mubr.bf16.gmra.mxu1 %v4526_v38  ;;  %v4544_v38 = vld [vmem:[#allocation2 + $0xc0] ss:$8 sps:$4 sm:$0xff]  }
 0x477   :  { %1810 = vmatprep.mubr.bf16.mxu1 %v4529_v2  ;;  %5545 = vst [vmem:[#allocation39_spill] sm:$0xff] %v4544_v38  ;;  %v4547_v2 = vld [vmem:[#allocation2 + $0xd4] ss:$8 sps:$4 sm:$0xff]  }
 0x478   :  { %5546 = vst [vmem:[#allocation41_spill] sm:$0xff] %v4547_v2 }
 0x47e   :  { %1811 = vmatmul.mubr.bf16.gmra.mxu1 %v4532_v12  ;;  %v4550_v12 = vld [vmem:[#allocation2 + $0xd0] ss:$8 sps:$4 sm:$0xff]  }
 0x47f   :  { %1818 = vmatprep.mubr.bf16.mxu1 %v4535_v53  ;;  %5547 = vst [vmem:[#allocation101_spill] sm:$0xff] %v4550_v12  ;;  %v4553_v53 = vld [vmem:[#allocation2 + $0xe4] ss:$8 sps:$4 sm:$0xff]  }
 0x480   :  { %5548 = vst [vmem:[#allocation27_spill] sm:$0xff] %v4553_v53 }
 0x486   :  { %1819 = vmatmul.mubr.bf16.gmra.mxu1 %v4538_v10  ;;  %v4556_v10 = vld [vmem:[#allocation2 + $0xe0] ss:$8 sps:$4 sm:$0xff]  }
 0x487   :  { %1826 = vmatprep.mubr.bf16.mxu1 %v4541_v63  ;;  %5549 = vst [vmem:[#allocation13_spill] sm:$0xff] %v4556_v10  ;;  %v4559_v63 = vld [vmem:[#allocation2 + $0xf4] ss:$8 sps:$4 sm:$0xff]  }
 0x488   :  { %5550 = vst [vmem:[#allocation97_spill] sm:$0xff] %v4559_v63 }
 0x48e   :  { %1827 = vmatmul.mubr.bf16.gmra.mxu1 %v4544_v38  ;;  %v4562_v38 = vld [vmem:[#allocation2 + $0xf0] ss:$8 sps:$4 sm:$0xff]  }
 0x48f   :  { %1834 = vmatprep.mubr.bf16.mxu1 %v4547_v2  ;;  %5551 = vst [vmem:[#allocation26_spill] sm:$0xff] %v4562_v38 }
 0x496   :  { %1835 = vmatmul.mubr.bf16.gmra.mxu1 %v4550_v12  ;;  %v1666_v12 = vmul.f32 %v5519_v30, %v5552_v24 }
 0x497   :  { %1842 = vmatprep.mubr.bf16.mxu1 %v4553_v53 }
 0x49e   :  { %1843 = vmatmul.mubr.bf16.gmra.mxu1 %v4556_v10 }
 0x49f   :  { %1850 = vmatprep.mubr.bf16.mxu1 %v4559_v63 }
 0x4a6   :  { %1851 = vmatmul.mubr.bf16.gmra.mxu1 %v4562_v38 }
 0x4ee   :  { %v2742_v2 = vpop.f32.mrf.mxu1 }
 0x4f0   :  { %v2743_v40 = vpop.f32.mrf.mxu1 }
 0x4f1   :  { %v2744_v16 = vadd.f32 %v2743_v40, %v2742_v2  ;;  %v5557_v40 = vld [vmem:[#allocation99_spill] sm:$0xff] }
 0x4f2   :  { %v2745_v22 = vpop.f32.mrf.mxu1  ;;  %v1668_v2 = vmul.f32 %v4139_v0, %v5557_v40  ;;  %v5564_v40 = vld [vmem:[#allocation29_spill] sm:$0xff] }
 0x4f3   :  { %v4567_v53 = vadd.f32 %v2744_v16, %v1666_v12 }
 0x4f4   :  { %v2746_v41 = vpop.f32.mrf.mxu1 }
 0x4f5   :  { %5553 = vst [vmem:[#allocation98_spill] sm:$0xff] %v4567_v53  ;;  %v1891_v10 = vmul.f32 0.25, %v4567_v53  ;;  %v2747_v63 = vadd.f32 %v2746_v41, %v2745_v22  ;;  %v5560_v22 = vld [vmem:[#allocation100_spill] sm:$0xff] }
 0x4f6   :  { %v2748_v48 = vpop.f32.mrf.mxu1 }
 0x4f7   :  { %v4573_v21 = vadd.f32 %v1891_v10, %v5555_v47  ;;  %v4575_v38 = vadd.f32 %v2747_v63, %v1667_v20  ;;  %v1669_v10 = vmul.f32 %v4148_v11, %v5560_v22 }
 0x4f8   :  { %v2749_v59 = vpop.f32.mrf.mxu1 }
 0x4f9   :  { %5556 = vst [vmem:[#allocation34_spill] sm:$0xff] %v4573_v21  ;;  %v1892_v30 = vmul.f32 0.25, %v4575_v38  ;;  %v2750_v12 = vadd.f32 %v2749_v59, %v2748_v48  ;;  %v5561_v21 = vld [vmem:[#allocation36_spill] sm:$0xff]  ;;  %v5563_v48 = vld [vmem:[#allocation95_spill] sm:$0xff] }
 0x4fa   :  { %v2751_v24 = vpop.f32.mrf.mxu1 }
 0x4fb   :  { %v4583_v49 = vadd.f32 %v1892_v30, %v5558_v1  ;;  %v4585_v41 = vadd.f32 %v2750_v12, %v1668_v2  ;;  %v1670_v30 = vmul.f32 %v4159_v6, %v5563_v48  ;;  %v5570_v48 = vld [vmem:[#allocation11_spill] sm:$0xff] }
 0x4fc   :  { %v2752_v47 = vpop.f32.mrf.mxu1 }
 0x4fd   :  { %5559 = vst [vmem:[#allocation105_spill] sm:$0xff] %v4583_v49  ;;  %v1893_v20 = vmul.f32 0.25, %v4585_v41  ;;  %v2753_v63 = vadd.f32 %v2752_v47, %v2751_v24 }
 0x4fe   :  { %v2754_v44 = vpop.f32.mrf.mxu1 }
 0x4ff   :  { %v4591_v16 = vadd.f32 %v1893_v20, %v5561_v21  ;;  %v4593_v53 = vadd.f32 %v2753_v63, %v1669_v10  ;;  %v5566_v20 = vld [vmem:[#allocation96_spill] sm:$0xff] }
 0x500   :  { %v2755_v0 = vpop.f32.mrf.mxu1  ;;  %v1671_v10 = vmul.f32 %v4168_v56, %v5566_v20 }
 0x501   :  { %5562 = vst [vmem:[#allocation43_spill] sm:$0xff] %v4591_v16  ;;  %v1894_v59 = vmul.f32 0.25, %v4593_v53  ;;  %v2756_v2 = vadd.f32 %v2755_v0, %v2754_v44  ;;  %v5567_v16 = vld [vmem:[#allocation94_spill] sm:$0xff]  ;;  %v5569_v0 = vld [vmem:[#allocation91_spill] sm:$0xff] }
 0x502   :  { %v2757_v12 = vpop.f32.mrf.mxu1 }
 0x503   :  { %v4601_v11 = vadd.f32 %v1894_v59, %v5564_v40  ;;  %v4603_v24 = vadd.f32 %v2756_v2, %v1670_v30  ;;  %v1672_v59 = vmul.f32 %v4179_v3, %v5569_v0  ;;  %v5576_v0 = vld [vmem:[#allocation22_spill] sm:$0xff] }
 0x504   :  { %v2758_v21 = vpop.f32.mrf.mxu1 }
 0x505   :  { %5565 = vst [vmem:[#allocation38_spill] sm:$0xff] %v4601_v11  ;;  %v1895_v47 = vmul.f32 0.25, %v4603_v24  ;;  %v2759_v63 = vadd.f32 %v2758_v21, %v2757_v12 }
 0x506   :  { %v2760_v22 = vpop.f32.mrf.mxu1 }
 0x507   :  { %v4609_v1 = vadd.f32 %v1895_v47, %v5567_v16  ;;  %v4611_v49 = vadd.f32 %v2759_v63, %v1671_v10  ;;  %v5572_v47 = vld [vmem:[#allocation92_spill] sm:$0xff] }
 0x508   :  { %v2761_v6 = vpop.f32.mrf.mxu1  ;;  %v1673_v10 = vmul.f32 %v4188_v9, %v5572_v47 }
 0x509   :  { %5568 = vst [vmem:[#allocation106_spill] sm:$0xff] %v4609_v1  ;;  %v1896_v44 = vmul.f32 0.25, %v4611_v49  ;;  %v2762_v30 = vadd.f32 %v2761_v6, %v2760_v22  ;;  %v5573_v1 = vld [vmem:[#allocation93_spill] sm:$0xff]  ;;  %v5575_v6 = vld [vmem:[#allocation87_spill] sm:$0xff] }
 0x50a   :  { %v2763_v2 = vpop.f32.mrf.mxu1 }
 0x50b   :  { %v4619_v56 = vadd.f32 %v1896_v44, %v5570_v48  ;;  %v4621_v12 = vadd.f32 %v2762_v30, %v1672_v59  ;;  %v1674_v44 = vmul.f32 %v4199_v51, %v5575_v6  ;;  %v5582_v6 = vld [vmem:[#allocation24_spill] sm:$0xff] }
 0x50c   :  { %v2764_v16 = vpop.f32.mrf.mxu1 }
 0x50d   :  { %5571 = vst [vmem:[#allocation40_spill] sm:$0xff] %v4619_v56  ;;  %v1897_v21 = vmul.f32 0.25, %v4621_v12  ;;  %v2765_v63 = vadd.f32 %v2764_v16, %v2763_v2 }
 0x50e   :  { %v2766_v20 = vpop.f32.mrf.mxu1 }
 0x50f   :  { %v4627_v40 = vadd.f32 %v1897_v21, %v5573_v1  ;;  %v4629_v11 = vadd.f32 %v2765_v63, %v1673_v10  ;;  %v5578_v21 = vld [vmem:[#allocation88_spill] sm:$0xff] }
 0x510   :  { %v2767_v3 = vpop.f32.mrf.mxu1  ;;  %v1675_v10 = vmul.f32 %v4208_v5, %v5578_v21 }
 0x511   :  { %5574 = vst [vmem:[#allocation107_spill] sm:$0xff] %v4627_v40  ;;  %v1898_v22 = vmul.f32 0.25, %v4629_v11  ;;  %v2768_v59 = vadd.f32 %v2767_v3, %v2766_v20  ;;  %v5579_v40 = vld [vmem:[#allocation31_spill] sm:$0xff] }
 0x512   :  { %v2769_v30 = vpop.f32.mrf.mxu1  ;;  %v5581_v3 = vld [vmem:[#allocation83_spill] sm:$0xff] }
 0x513   :  { %v4637_v9 = vadd.f32 %v1898_v22, %v5576_v0  ;;  %v4639_v2 = vadd.f32 %v2768_v59, %v1674_v44  ;;  %v1676_v22 = vmul.f32 %v4219_v35, %v5581_v3  ;;  %v5588_v3 = vld [vmem:[#allocation19_spill] sm:$0xff] }
 0x514   :  { %v2770_v1 = vpop.f32.mrf.mxu1 }
 0x515   :  { %5577 = vst [vmem:[#allocation42_spill] sm:$0xff] %v4637_v9  ;;  %v1899_v16 = vmul.f32 0.25, %v4639_v2  ;;  %v2771_v63 = vadd.f32 %v2770_v1, %v2769_v30 }
 0x516   :  { %v2772_v47 = vpop.f32.mrf.mxu1 }
 0x517   :  { %v4645_v48 = vadd.f32 %v1899_v16, %v5579_v40  ;;  %v4647_v56 = vadd.f32 %v2771_v63, %v1675_v10  ;;  %v5584_v16 = vld [vmem:[#allocation84_spill] sm:$0xff] }
 0x518   :  { %v2773_v51 = vpop.f32.mrf.mxu1  ;;  %v1677_v10 = vmul.f32 %v4228_v19, %v5584_v16 }
 0x519   :  { %5580 = vst [vmem:[#allocation50_spill] sm:$0xff] %v4645_v48  ;;  %v1900_v20 = vmul.f32 0.25, %v4647_v56  ;;  %v2774_v44 = vadd.f32 %v2773_v51, %v2772_v47  ;;  %v5585_v48 = vld [vmem:[#allocation15_spill] sm:$0xff]  ;;  %v5587_v51 = vld [vmem:[#allocation16_spill] sm:$0xff] }
 0x51a   :  { %v2775_v59 = vpop.f32.mrf.mxu1 }
 0x51b   :  { %v4655_v5 = vadd.f32 %v1900_v20, %v5582_v6  ;;  %v4657_v30 = vadd.f32 %v2774_v44, %v1676_v22  ;;  %v1678_v20 = vmul.f32 %v4239_v36, %v5587_v51  ;;  %v5594_v51 = vld [vmem:[#allocation23_spill] sm:$0xff] }
 0x51c   :  { %v2776_v40 = vpop.f32.mrf.mxu1 }
 0x51d   :  { %5583 = vst [vmem:[#allocation46_spill] sm:$0xff] %v4655_v5  ;;  %v1901_v1 = vmul.f32 0.25, %v4657_v30  ;;  %v2777_v63 = vadd.f32 %v2776_v40, %v2775_v59 }
 0x51e   :  { %v2778_v21 = vpop.f32.mrf.mxu1 }
 0x51f   :  { %v4663_v0 = vadd.f32 %v1901_v1, %v5585_v48  ;;  %v4665_v9 = vadd.f32 %v2777_v63, %v1677_v10  ;;  %v5590_v1 = vld [vmem:[#allocation80_spill] sm:$0xff] }
 0x520   :  { %v2779_v35 = vpop.f32.mrf.mxu1  ;;  %v1679_v10 = vmul.f32 %v4248_v46, %v5590_v1 }
 0x521   :  { %5586 = vst [vmem:[#allocation48_spill] sm:$0xff] %v4663_v0  ;;  %v1902_v47 = vmul.f32 0.25, %v4665_v9  ;;  %v2780_v22 = vadd.f32 %v2779_v35, %v2778_v21  ;;  %v5591_v0 = vld [vmem:[#allocation21_spill] sm:$0xff]  ;;  %v5593_v35 = vld [vmem:[#allocation72_spill] sm:$0xff] }
 0x522   :  { %v2781_v44 = vpop.f32.mrf.mxu1 }
 0x523   :  { %v4673_v19 = vadd.f32 %v1902_v47, %v5588_v3  ;;  %v4675_v59 = vadd.f32 %v2780_v22, %v1678_v20  ;;  %v1680_v47 = vmul.f32 %v4259_v45, %v5593_v35 }
 0x524   :  { %v2782_v48 = vpop.f32.mrf.mxu1 }
 0x525   :  { %5589 = vst [vmem:[#allocation33_spill] sm:$0xff] %v4673_v19  ;;  %v1903_v40 = vmul.f32 0.25, %v4675_v59  ;;  %v2783_v63 = vadd.f32 %v2782_v48, %v2781_v44 }
 0x526   :  { %v2784_v16 = vpop.f32.mrf.mxu1 }
 0x527   :  { %v4681_v6 = vadd.f32 %v1903_v40, %v5591_v0  ;;  %v4683_v5 = vadd.f32 %v2783_v63, %v1679_v10  ;;  %v5595_v40 = vld [vmem:[#allocation76_spill] sm:$0xff] }
 0x528   :  { %v2785_v36 = vpop.f32.mrf.mxu1  ;;  %v1681_v10 = vmul.f32 %v4268_v8, %v5595_v40  ;;  %v5599_v40 = vld [vmem:[#allocation17_spill] sm:$0xff] }
 0x529   :  { %5592 = vst [vmem:[#allocation36_spill] sm:$0xff] %v4681_v6  ;;  %v1904_v21 = vmul.f32 0.25, %v4683_v5  ;;  %v2786_v20 = vadd.f32 %v2785_v36, %v2784_v16  ;;  %v5596_v6 = vld [vmem:[#allocation18_spill] sm:$0xff]  ;;  %v1682_v36 = vmul.f32 %v4279_v62, %v5475_v52 }
 0x52a   :  { %v2787_v22 = vpop.f32.mrf.mxu1 }
 0x52b   :  { %v4691_v46 = vadd.f32 %v1904_v21, %v5594_v51  ;;  %v4693_v44 = vadd.f32 %v2786_v20, %v1680_v47 }
 0x52c   :  { %v2788_v0 = vpop.f32.mrf.mxu1 }
 0x52d   :  { %v1905_v48 = vmul.f32 0.25, %v4693_v44  ;;  %v2789_v63 = vadd.f32 %v2788_v0, %v2787_v22  ;;  %v5598_v0 = vld [vmem:[#allocation102_spill] sm:$0xff] }
 0x52e   :  { %v2790_v1 = vpop.f32.mrf.mxu1 }
 0x52f   :  { %v4699_v3 = vadd.f32 %v1905_v48, %v5596_v6  ;;  %v4701_v19 = vadd.f32 %v2789_v63, %v1681_v10  ;;  %v1683_v48 = vmul.f32 %v4288_v13, %v5598_v0 }
 0x530   :  { %v2791_v45 = vpop.f32.mrf.mxu1 }
 0x531   :  { %5597 = vst [vmem:[#allocation29_spill] sm:$0xff] %v4699_v3  ;;  %v1906_v16 = vmul.f32 0.25, %v4701_v19  ;;  %v2792_v21 = vadd.f32 %v2791_v45, %v2790_v1 }
 0x532   :  { %v2793_v47 = vpop.f32.mrf.mxu1 }
 0x533   :  { %v4709_v8 = vadd.f32 %v1906_v16, %v4277_v61  ;;  %v4711_v20 = vadd.f32 %v2792_v21, %v1682_v36  ;;  %v1684_v61 = vmul.f32 %v4299_v18, %v5480_v34  ;;  %v5600_v21 = vld [vmem:[#allocation52_spill] sm:$0xff] }
 0x534   :  { %v2794_v6 = vpop.f32.mrf.mxu1 }
 0x535   :  { %v1907_v22 = vmul.f32 0.25, %v4711_v20  ;;  %v2795_v10 = vadd.f32 %v2794_v6, %v2793_v47 }
 0x536   :  { %v2796_v63 = vpop.f32.mrf.mxu1 }
 0x537   :  { %v4717_v51 = vadd.f32 %v1907_v22, %v5599_v40  ;;  %v4719_v3 = vadd.f32 %v2795_v10, %v1683_v48  ;;  %v1685_v22 = vmul.f32 %v4308_v4, %v5483_v37 }
 0x538   :  { %v2797_v62 = vpop.f32.mrf.mxu1 }
 0x539   :  { %v1908_v1 = vmul.f32 0.25, %v4719_v3  ;;  %v2798_v45 = vadd.f32 %v2797_v62, %v2796_v63 }
 0x53a   :  { %v2799_v36 = vpop.f32.mrf.mxu1 }
 0x53b   :  { %v4727_v13 = vadd.f32 %v1908_v1, %v5600_v21  ;;  %v4729_v47 = vadd.f32 %v2798_v45, %v1684_v61  ;;  %v1686_v1 = vmul.f32 %v4319_v26, %v5388_v58 }
 0x53c   :  { %v2800_v40 = vpop.f32.mrf.mxu1 }
 0x53d   :  { %v1909_v6 = vmul.f32 0.25, %v4729_v47  ;;  %v2801_v48 = vadd.f32 %v2800_v40, %v2799_v36 }
 0x53e   :  { %v2802_v10 = vpop.f32.mrf.mxu1 }
 0x53f   :  { %v4735_v18 = vadd.f32 %v1909_v6, %v4306_v15  ;;  %v4737_v63 = vadd.f32 %v2801_v48, %v1685_v22  ;;  %v1687_v6 = vmul.f32 %v4328_v60, %v5386_v25 }
 0x540   :  { %v2803_v62 = vpop.f32.mrf.mxu1 }
 0x541   :  { %v1910_v16 = vmul.f32 0.25, %v4737_v63  ;;  %v2804_v61 = vadd.f32 %v2803_v62, %v2802_v10 }
 0x542   :  { %v2805_v21 = vpop.f32.mrf.mxu1 }
 0x543   :  { %v4745_v4 = vadd.f32 %v1910_v16, %v4317_v17  ;;  %v4747_v36 = vadd.f32 %v2804_v61, %v1686_v1  ;;  %v1688_v17 = vmul.f32 %v4339_v42, %v5383_v23  ;;  %v5610_v23 = vld [vmem:[#allocation55_spill] sm:$0xff] }
 0x544   :  { %v2806_v15 = vpop.f32.mrf.mxu1 }
 0x545   :  { %v1911_v40 = vmul.f32 0.25, %v4747_v36  ;;  %v2807_v22 = vadd.f32 %v2806_v15, %v2805_v21 }
 0x546   :  { %v2808_v48 = vpop.f32.mrf.mxu1 }
 0x547   :  { %v4753_v26 = vadd.f32 %v1911_v40, %v4326_v32  ;;  %v4755_v10 = vadd.f32 %v2807_v22, %v1687_v6  ;;  %v1689_v40 = vmul.f32 %v4348_v29, %v5381_v54 }
 0x548   :  { %v2809_v62 = vpop.f32.mrf.mxu1 }
 0x549   :  { %v1912_v45 = vmul.f32 0.25, %v4755_v10  ;;  %v2810_v16 = vadd.f32 %v2809_v62, %v2808_v48 }
 0x54a   :  { %v2811_v61 = vpop.f32.mrf.mxu1 }
 0x54b   :  { %v4763_v60 = vadd.f32 %v1912_v45, %v4337_v14  ;;  %v4765_v21 = vadd.f32 %v2810_v16, %v1688_v17  ;;  %v1690_v14 = vmul.f32 %v4359_v28, %v5378_v33 }
 0x54c   :  { %v2812_v32 = vpop.f32.mrf.mxu1 }
 0x54d   :  { %5601 = vst [vmem:[#allocation94_spill] sm:$0xff] %v4763_v60  ;;  %v1913_v15 = vmul.f32 0.25, %v4765_v21  ;;  %v2813_v6 = vadd.f32 %v2812_v32, %v2811_v61  ;;  %v5614_v60 = vld [vmem:[#allocation57_spill] sm:$0xff] }
 0x54e   :  { %v2814_v22 = vpop.f32.mrf.mxu1 }
 0x54f   :  { %v4771_v42 = vadd.f32 %v1913_v15, %v4346_v27  ;;  %v4773_v48 = vadd.f32 %v2813_v6, %v1689_v40  ;;  %v5604_v15 = vld [vmem:[#allocation54_spill] sm:$0xff] }
 0x550   :  { %v2815_v62 = vpop.f32.mrf.mxu1  ;;  %v1691_v40 = vmul.f32 %v5604_v15, %v5376_v31 }
 0x551   :  { %5602 = vst [vmem:[#allocation11_spill] sm:$0xff] %v4771_v42  ;;  %v1914_v1 = vmul.f32 0.25, %v4773_v48  ;;  %v2816_v45 = vadd.f32 %v2815_v62, %v2814_v22  ;;  %v5605_v42 = vld [vmem:[#allocation53_spill] sm:$0xff] }
 0x552   :  { %v2817_v16 = vpop.f32.mrf.mxu1 }
 0x553   :  { %v4781_v29 = vadd.f32 %v1914_v1, %v4357_v39  ;;  %v4783_v61 = vadd.f32 %v2816_v45, %v1690_v14  ;;  %v5608_v39 = vld [vmem:[#allocation81_spill] sm:$0xff]  ;;  %v5609_v1 = vld [vmem:[#allocation56_spill] sm:$0xff] }
 0x554   :  { %v2818_v27 = vpop.f32.mrf.mxu1  ;;  %v1692_v14 = vmul.f32 %v5609_v1, %v5608_v39 }
 0x555   :  { %5603 = vst [vmem:[#allocation93_spill] sm:$0xff] %v4781_v29  ;;  %v1915_v32 = vmul.f32 0.25, %v4783_v61  ;;  %v2819_v6 = vadd.f32 %v2818_v27, %v2817_v16 }
 0x556   :  { %v2820_v54 = vpop.f32.mrf.mxu1 }
 0x557   :  { %v4789_v28 = vadd.f32 %v1915_v32, %v5605_v42  ;;  %v4791_v22 = vadd.f32 %v2819_v6, %v1691_v40  ;;  %v5612_v32 = vld [vmem:[#allocation82_spill] sm:$0xff] }
 0x558   :  { %v2821_v62 = vpop.f32.mrf.mxu1  ;;  %v5613_v40 = vld [vmem:[#allocation58_spill] sm:$0xff] }
 0x559   :  { %5606 = vst [vmem:[#allocation22_spill] sm:$0xff] %v4789_v28  ;;  %5607 = vst [vmem:[#allocation31_spill] sm:$0xff] %v4791_v22  ;;  %v1916_v17 = vmul.f32 0.25, %v4791_v22  ;;  %v2822_v45 = vadd.f32 %v2821_v62, %v2820_v54  ;;  %v1999_v33 = vpack.c.bf16 %v4791_v22, %v4783_v61  ;;  %v1693_v6 = vmul.f32 %v5613_v40, %v5612_v32  ;;  %v5617_v22 = vld [vmem:[#allocation59_spill] sm:$0xff] }
 0x55a   :  { %v2823_v29 = vpop.f32.mrf.mxu1 }
 0x55b   :  { %v4799_v15 = vadd.f32 %v1916_v17, %v5610_v23  ;;  %v4801_v16 = vadd.f32 %v2822_v45, %v1692_v14  ;;  %v5616_v23 = vld [vmem:[#allocation78_spill] sm:$0xff] }
 0x55c   :  { %v2824_v42 = vpop.f32.mrf.mxu1  ;;  %v1694_v17 = vmul.f32 %v4399_v50, %v5616_v23 }
 0x55d   :  { %5611 = vst [vmem:[#allocation24_spill] sm:$0xff] %v4799_v15  ;;  %v1917_v27 = vmul.f32 0.25, %v4801_v16  ;;  %v2825_v31 = vadd.f32 %v2824_v42, %v2823_v29  ;;  %v5619_v42 = vld [vmem:[#allocation79_spill] sm:$0xff] }
 0x55e   :  { %v2826_v28 = vpop.f32.mrf.mxu1 }
 0x55f   :  { %v4807_v1 = vadd.f32 %v1917_v27, %v5614_v60  ;;  %v4809_v54 = vadd.f32 %v2825_v31, %v1693_v6  ;;  %v1695_v27 = vmul.f32 %v4408_v55, %v5619_v42  ;;  %v5625_v42 = vld [vmem:[#allocation61_spill] sm:$0xff] }
 0x560   :  { %v2827_v62 = vpop.f32.mrf.mxu1 }
 0x561   :  { %5615 = vst [vmem:[#allocation15_spill] sm:$0xff] %v4807_v1  ;;  %v1918_v39 = vmul.f32 0.25, %v4809_v54  ;;  %v2828_v14 = vadd.f32 %v2827_v62, %v2826_v28  ;;  %v2000_v45 = vpack.c.bf16 %v4809_v54, %v4801_v16  ;;  %v5620_v1 = vld [vmem:[#allocation60_spill] sm:$0xff] }
 0x562   :  { %v2829_v15 = vpop.f32.mrf.mxu1 }
 0x563   :  { %v4817_v40 = vadd.f32 %v1918_v39, %v5617_v22  ;;  %v4819_v29 = vadd.f32 %v2828_v14, %v1694_v17  ;;  %v5622_v22 = vld [vmem:[#allocation71_spill] sm:$0xff] }
 0x564   :  { %v2830_v60 = vpop.f32.mrf.mxu1  ;;  %v1696_v39 = vmul.f32 %v4419_v7, %v5622_v22 }
 0x565   :  { %5618 = vst [vmem:[#allocation19_spill] sm:$0xff] %v4817_v40  ;;  %v1919_v31 = vmul.f32 0.25, %v4819_v29  ;;  %v2831_v6 = vadd.f32 %v2830_v60, %v2829_v15 }
 0x566   :  { %v2832_v32 = vpop.f32.mrf.mxu1 }
 0x567   :  { %v4825_v50 = vadd.f32 %v1919_v31, %v5620_v1  ;;  %v4827_v28 = vadd.f32 %v2831_v6, %v1695_v27  ;;  %v5624_v31 = vld [vmem:[#allocation62_spill] sm:$0xff] }
 0x568   :  { %v2833_v62 = vpop.f32.mrf.mxu1  ;;  %v1697_v27 = vmul.f32 %v5624_v31, %v5502_v57  ;;  %v5639_v31 = vpack.c.bf16 %v4593_v53, %v4585_v41 }
 0x569   :  { %5621 = vst [vmem:[#allocation21_spill] sm:$0xff] %v4825_v50  ;;  %v1920_v23 = vmul.f32 0.25, %v4827_v28  ;;  %v2834_v17 = vadd.f32 %v2833_v62, %v2832_v32  ;;  %v2001_v14 = vpack.c.bf16 %v4827_v28, %v4819_v29 }
 0x56a   :  { %v2835_v40 = vpop.f32.mrf.mxu1 }
 0x56b   :  { %v4835_v55 = vadd.f32 %v1920_v23, %v4417_v43  ;;  %v4837_v15 = vadd.f32 %v2834_v17, %v1696_v39  ;;  %v5628_v23 = vld [vmem:[#allocation63_spill] sm:$0xff]  ;;  %v5630_v39 = vpack.c.bf16 %v4701_v19, %v4693_v44  ;;  %v5633_v17 = vpack.c.bf16 %v4647_v56, %v4639_v2 }
 0x56c   :  { %v2836_v1 = vpop.f32.mrf.mxu1 }
 0x56d   :  { %5623 = vst [vmem:[#allocation72_spill] sm:$0xff] %v4837_v15  ;;  %v1921_v60 = vmul.f32 0.25, %v4837_v15  ;;  %v2837_v6 = vadd.f32 %v2836_v1, %v2835_v40  ;;  %v5631_v40 = vpack.c.bf16 %v4683_v5, %v4675_v59  ;;  %v5634_v1 = vpack.c.bf16 %v4773_v48, %v4765_v21 }
 0x56f   :  { %v4843_v50 = vadd.f32 %v1921_v60, %v5625_v42  ;;  %v4845_v7 = vadd.f32 %v2837_v6, %v1697_v27  ;;  %v5632_v42 = vpack.c.bf16 %v4665_v9, %v4657_v30  ;;  %v5637_v60 = vpack.c.bf16 %v4611_v49, %v4603_v24  ;;  %v5641_v6 = vld [vmem:[#allocation98_spill] sm:$0xff] }
 0x570   :  { %v5640_v27 = vpack.c.bf16 %v4719_v3, %v4711_v20 }
 0x571   :  { %5626 = vst [vmem:[#allocation23_spill] sm:$0xff] %v4843_v50  ;;  %5627 = vst [vmem:[#allocation18_spill] sm:$0xff] %v4845_v7  ;;  %v1922_v32 = vmul.f32 0.25, %v4845_v7  ;;  %v2002_v43 = vpack.c.bf16 %v4845_v7, %v4837_v15  ;;  %v5678_v15 = vld [vmem:[#allocation99_spill] sm:$0xff] }
 0x572   :  { %v2005_v22 = vmul.f32 %v4585_v41, %v5678_v15 }
 0x573   :  { %v4851_v62 = vadd.f32 %v1922_v32, %v5628_v23  ;;  %2838 = vmatprep.subr.bf16.mxu0 %v2002_v43  ;;  %v5642_v32 = vpack.c.bf16 %v4575_v38, %v5641_v6  ;;  %v5643_v43 = vld [vmem:[#allocation64_spill] sm:$0xff]  ;;  %v5644_v23 = vld [vmem:[#allocation65_spill] sm:$0xff] }
 0x574   :  { %2839 = vmatpush3.bf16.msra.mxu0 %v5630_v39  ;;  %v5645_v39 = vld [vmem:[#allocation66_spill] sm:$0xff] }
 0x575   :  { %5629 = vst [vmem:[#allocation102_spill] sm:$0xff] %v4851_v62  ;;  %2840 = vmatprep.subr.bf16.mxu0 %v2001_v14  ;;  %v5635_v14 = vpack.c.bf16 %v4629_v11, %v4621_v12 }
 0x578   :  { %2841 = vmatpush3.bf16.msra.mxu0 %v5631_v40  ;;  %v5646_v40 = vld [vmem:[#allocation67_spill] sm:$0xff] }
 0x579   :  { %2842 = vmatprep.subr.bf16.mxu0 %v2000_v45  ;;  %v5636_v45 = vpack.c.bf16 %v4755_v10, %v4747_v36 }
 0x57c   :  { %2843 = vmatpush3.bf16.msra.mxu0 %v5632_v42  ;;  %v5647_v42 = vld [vmem:[#allocation68_spill] sm:$0xff] }
 0x57d   :  { %2844 = vmatprep.subr.bf16.mxu0 %v1999_v33  ;;  %v5638_v33 = vpack.c.bf16 %v4737_v63, %v4729_v47 }
 0x580   :  { %2845 = vmatpush3.bf16.msra.mxu0 %v5633_v17  ;;  %v5648_v17 = vld [vmem:[#allocation69_spill] sm:$0xff] }
 0x581   :  { %2846 = vmatprep.subr.bf16.mxu0 %v5634_v1  ;;  %v5649_v1 = vld [vmem:[#allocation70_spill] sm:$0xff] }
 0x584   :  { %2847 = vmatpush3.bf16.msra.mxu0 %v5635_v14  ;;  %v5650_v14 = vld [vmem:[#allocation73_spill] sm:$0xff] }
 0x585   :  { %2848 = vmatprep.subr.bf16.mxu0 %v5636_v45  ;;  %v5651_v45 = vld [vmem:[#allocation74_spill] sm:$0xff] }
 0x588   :  { %2849 = vmatpush3.bf16.msra.mxu0 %v5637_v60  ;;  %v5652_v60 = vld [vmem:[#allocation77_spill] sm:$0xff] }
 0x589   :  { %2850 = vmatprep.subr.bf16.mxu0 %v5638_v33  ;;  %v5653_v33 = vld [vmem:[#allocation20_spill] sm:$0xff] }
 0x58c   :  { %2851 = vmatpush3.bf16.msra.mxu0 %v5639_v31  ;;  %v5654_v31 = vld [vmem:[#allocation14_spill] sm:$0xff] }
 0x58d   :  { %2852 = vmatprep.subr.bf16.mxu0 %v5640_v27  ;;  %v5655_v27 = vld [vmem:[#allocation25_spill] sm:$0xff] }
 0x590   :  { %2853 = vmatpush3.bf16.msra.mxu0 %v5642_v32  ;;  %v5656_v32 = vld [vmem:[#allocation28_spill] sm:$0xff] }
 0x593   :  { %2068 = vmatmul.mubr.bf16.vlgmr.msra.gmra.mxu0 %v5643_v43  ;;  %v5657_v43 = vld [vmem:[#allocation12_spill] sm:$0xff] }
 0x594   :  { %2075 = vmatprep.mubr.bf16.mxu0 %v5644_v23  ;;  %v5658_v23 = vld [vmem:[#allocation32_spill] sm:$0xff] }
 0x59b   :  { %2076 = vmatmul.mubr.bf16.gmra.mxu0 %v5645_v39  ;;  %v5659_v39 = vld [vmem:[#allocation30_spill] sm:$0xff] }
 0x59c   :  { %2083 = vmatprep.mubr.bf16.mxu0 %v5646_v40  ;;  %v5660_v40 = vld [vmem:[#allocation37_spill] sm:$0xff] }
 0x5a3   :  { %2084 = vmatmul.mubr.bf16.gmra.mxu0 %v5647_v42  ;;  %v5661_v42 = vld [vmem:[#allocation35_spill] sm:$0xff] }
 0x5a4   :  { %2091 = vmatprep.mubr.bf16.mxu0 %v5648_v17  ;;  %v5662_v17 = vld [vmem:[#allocation51_spill] sm:$0xff] }
 0x5ab   :  { %2092 = vmatmul.mubr.bf16.gmra.mxu0 %v5649_v1  ;;  %v5663_v1 = vld [vmem:[#allocation49_spill] sm:$0xff] }
 0x5ac   :  { %2099 = vmatprep.mubr.bf16.mxu0 %v5650_v14  ;;  %v5664_v14 = vld [vmem:[#allocation47_spill] sm:$0xff] }
 0x5b3   :  { %2100 = vmatmul.mubr.bf16.gmra.mxu0 %v5651_v45  ;;  %v5665_v45 = vld [vmem:[#allocation45_spill] sm:$0xff] }
 0x5b4   :  { %2107 = vmatprep.mubr.bf16.mxu0 %v5652_v60  ;;  %v5666_v60 = vld [vmem:[#allocation44_spill] sm:$0xff] }
 0x5bb   :  { %2108 = vmatmul.mubr.bf16.gmra.mxu0 %v5653_v33  ;;  %v5667_v33 = vld [vmem:[#allocation39_spill] sm:$0xff] }
 0x5bc   :  { %2115 = vmatprep.mubr.bf16.mxu0 %v5654_v31  ;;  %v5668_v31 = vld [vmem:[#allocation41_spill] sm:$0xff] }
 0x5c3   :  { %2116 = vmatmul.mubr.bf16.gmra.mxu0 %v5655_v27  ;;  %v5669_v27 = vld [vmem:[#allocation101_spill] sm:$0xff] }
 0x5c4   :  { %2123 = vmatprep.mubr.bf16.mxu0 %v5656_v32  ;;  %v5670_v32 = vld [vmem:[#allocation27_spill] sm:$0xff] }
 0x5cb   :  { %2124 = vmatmul.mubr.bf16.gmra.mxu0 %v5657_v43  ;;  %v5671_v43 = vld [vmem:[#allocation13_spill] sm:$0xff] }
 0x5cc   :  { %2131 = vmatprep.mubr.bf16.mxu0 %v5658_v23  ;;  %v5672_v23 = vld [vmem:[#allocation97_spill] sm:$0xff] }
 0x5d3   :  { %2132 = vmatmul.mubr.bf16.gmra.mxu0 %v5659_v39  ;;  %v5673_v39 = vld [vmem:[#allocation26_spill] sm:$0xff] }
 0x5d4   :  { %2139 = vmatprep.mubr.bf16.mxu0 %v5660_v40 }
 0x5db   :  { %2140 = vmatmul.mubr.bf16.gmra.mxu0 %v5661_v42 }
 0x5dc   :  { %2147 = vmatprep.mubr.bf16.mxu0 %v5662_v17  ;;  %v5674_v17 = vld [vmem:[#allocation103_spill] sm:$0xff] }
 0x5e3   :  { %2148 = vmatmul.mubr.bf16.gmra.mxu0 %v5663_v1  ;;  %v2003_v1 = vmul.f32 %v5641_v6, %v5674_v17 }
 0x5e4   :  { %2155 = vmatprep.mubr.bf16.mxu0 %v5664_v14 }
 0x5eb   :  { %2156 = vmatmul.mubr.bf16.gmra.mxu0 %v5665_v45 }
 0x5ec   :  { %2163 = vmatprep.mubr.bf16.mxu0 %v5666_v60 }
 0x5f3   :  { %2164 = vmatmul.mubr.bf16.gmra.mxu0 %v5667_v33 }
 0x5f4   :  { %2171 = vmatprep.mubr.bf16.mxu0 %v5668_v31  ;;  %v5675_v31 = vld [vmem:[#allocation34_spill] sm:$0xff] }
 0x5fb   :  { %2172 = vmatmul.mubr.bf16.gmra.mxu0 %v5669_v27  ;;  %v5676_v27 = vld [vmem:[#allocation104_spill] sm:$0xff] }
 0x5fc   :  { %2179 = vmatprep.mubr.bf16.mxu0 %v5670_v32  ;;  %v2004_v32 = vmul.f32 %v4575_v38, %v5676_v27 }
 0x603   :  { %2180 = vmatmul.mubr.bf16.gmra.mxu0 %v5671_v43 }
 0x604   :  { %2187 = vmatprep.mubr.bf16.mxu0 %v5672_v23 }
 0x60b   :  { %2188 = vmatmul.mubr.bf16.gmra.mxu0 %v5673_v39  ;;  %v5677_v39 = vld [vmem:[#allocation105_spill] sm:$0xff] }
 0x653   :  { %v2854_v40 = vpop.f32.mrf.mxu0 }
 0x655   :  { %v2855_v42 = vpop.f32.mrf.mxu0 }
 0x656   :  { %v2856_v14 = vadd.f32 %v2855_v42, %v2854_v40 }
 0x657   :  { %v2857_v45 = vpop.f32.mrf.mxu0 }
 0x658   :  { %v2070_v60 = vadd.f32 %v2856_v14, %v2003_v1  ;;  %v5679_v1 = vld [vmem:[#allocation43_spill] sm:$0xff] }
 0x659   :  { %v2858_v33 = vpop.f32.mrf.mxu0 }
 0x65a   :  { %v2228_v62 = vadd.f32 %v2070_v60, %v5675_v31  ;;  %v2859_v7 = vadd.f32 %v2858_v33, %v2857_v45  ;;  %v5680_v60 = vld [vmem:[#allocation100_spill] sm:$0xff]  ;;  %v5681_v31 = vld [vmem:[#allocation38_spill] sm:$0xff] }
 0x65b   :  { %v2860_v43 = vpop.f32.mrf.mxu0  ;;  %v2006_v38 = vmul.f32 %v4593_v53, %v5680_v60  ;;  %v5686_v60 = vld [vmem:[#allocation91_spill] sm:$0xff] }
 0x65c   :  { %2260 = vst [vmem:[#allocation7] sm:$0xff] %v2228_v62  ;;  %v2073_v23 = vadd.f32 %v2859_v7, %v2004_v32  ;;  %v5682_v32 = vld [vmem:[#allocation95_spill] sm:$0xff] }
 0x65d   :  { %v2861_v57 = vpop.f32.mrf.mxu0  ;;  %v2007_v41 = vmul.f32 %v4603_v24, %v5682_v32  ;;  %v2009_v24 = vmul.f32 %v4621_v12, %v5686_v60 }
 0x65e   :  { %v2229_v50 = vadd.f32 %v2073_v23, %v5677_v39  ;;  %v2862_v6 = vadd.f32 %v2861_v57, %v2860_v43  ;;  %v5683_v43 = vld [vmem:[#allocation106_spill] sm:$0xff]  ;;  %v5684_v39 = vld [vmem:[#allocation96_spill] sm:$0xff] }
 0x65f   :  { %v2863_v40 = vpop.f32.mrf.mxu0  ;;  %v2008_v53 = vmul.f32 %v4611_v49, %v5684_v39 }
 0x660   :  { %2261 = vst [vmem:[#allocation7 + $0x8] sm:$0xff] %v2229_v50  ;;  %v2078_v42 = vadd.f32 %v2862_v6, %v2005_v22 }
 0x661   :  { %v2864_v17 = vpop.f32.mrf.mxu0 }
 0x662   :  { %v2230_v14 = vadd.f32 %v2078_v42, %v5679_v1  ;;  %v2865_v45 = vadd.f32 %v2864_v17, %v2863_v40  ;;  %v5685_v1 = vld [vmem:[#allocation40_spill] sm:$0xff] }
 0x663   :  { %v2866_v33 = vpop.f32.mrf.mxu0 }
 0x664   :  { %2262 = vst [vmem:[#allocation7 + $0x10] sm:$0xff] %v2230_v14  ;;  %v2081_v7 = vadd.f32 %v2865_v45, %v2006_v38 }
 0x665   :  { %v2867_v62 = vpop.f32.mrf.mxu0 }
 0x666   :  { %v2231_v27 = vadd.f32 %v2081_v7, %v5681_v31  ;;  %v2868_v57 = vadd.f32 %v2867_v62, %v2866_v33  ;;  %v5687_v62 = vld [vmem:[#allocation107_spill] sm:$0xff] }
 0x667   :  { %v2869_v15 = vpop.f32.mrf.mxu0 }
 0x668   :  { %2263 = vst [vmem:[#allocation7 + $0x18] sm:$0xff] %v2231_v27  ;;  %v2086_v50 = vadd.f32 %v2868_v57, %v2007_v41  ;;  %v5688_v27 = vld [vmem:[#allocation92_spill] sm:$0xff] }
 0x669   :  { %v2870_v22 = vpop.f32.mrf.mxu0  ;;  %v2010_v49 = vmul.f32 %v4629_v11, %v5688_v27 }
 0x66a   :  { %v2232_v23 = vadd.f32 %v2086_v50, %v5683_v43  ;;  %v2871_v6 = vadd.f32 %v2870_v22, %v2869_v15  ;;  %v5689_v50 = vld [vmem:[#allocation42_spill] sm:$0xff]  ;;  %v5690_v43 = vld [vmem:[#allocation87_spill] sm:$0xff] }
 0x66b   :  { %v2872_v40 = vpop.f32.mrf.mxu0  ;;  %v2011_v12 = vmul.f32 %v4639_v2, %v5690_v43  ;;  %v5697_v43 = vld [vmem:[#allocation33_spill] sm:$0xff] }
 0x66c   :  { %2264 = vst [vmem:[#allocation7 + $0x20] sm:$0xff] %v2232_v23  ;;  %v2089_v42 = vadd.f32 %v2871_v6, %v2008_v53 }
 0x66d   :  { %v2873_v17 = vpop.f32.mrf.mxu0 }
 0x66e   :  { %v2233_v14 = vadd.f32 %v2089_v42, %v5685_v1  ;;  %v2874_v38 = vadd.f32 %v2873_v17, %v2872_v40  ;;  %v5691_v40 = vld [vmem:[#allocation50_spill] sm:$0xff]  ;;  %v5692_v17 = vld [vmem:[#allocation88_spill] sm:$0xff] }
 0x66f   :  { %v2875_v45 = vpop.f32.mrf.mxu0  ;;  %v2012_v11 = vmul.f32 %v4647_v56, %v5692_v17 }
 0x670   :  { %2265 = vst [vmem:[#allocation7 + $0x28] sm:$0xff] %v2233_v14  ;;  %v2094_v33 = vadd.f32 %v2874_v38, %v2009_v24  ;;  %v5693_v38 = vld [vmem:[#allocation46_spill] sm:$0xff] }
 0x671   :  { %v2876_v7 = vpop.f32.mrf.mxu0 }
 0x672   :  { %v2234_v31 = vadd.f32 %v2094_v33, %v5687_v62  ;;  %v2877_v32 = vadd.f32 %v2876_v7, %v2875_v45  ;;  %v5694_v33 = vld [vmem:[#allocation83_spill] sm:$0xff] }
 0x673   :  { %v2878_v41 = vpop.f32.mrf.mxu0  ;;  %v2013_v2 = vmul.f32 %v4657_v30, %v5694_v33 }
 0x674   :  { %2266 = vst [vmem:[#allocation7 + $0x30] sm:$0xff] %v2234_v31  ;;  %v2097_v57 = vadd.f32 %v2877_v32, %v2010_v49  ;;  %v5695_v49 = vld [vmem:[#allocation48_spill] sm:$0xff] }
 0x675   :  { %v2879_v15 = vpop.f32.mrf.mxu0 }
 0x676   :  { %v2235_v22 = vadd.f32 %v2097_v57, %v5689_v50  ;;  %v2880_v23 = vadd.f32 %v2879_v15, %v2878_v41  ;;  %v5696_v41 = vld [vmem:[#allocation84_spill] sm:$0xff] }
 0x677   :  { %v2881_v39 = vpop.f32.mrf.mxu0  ;;  %v2014_v56 = vmul.f32 %v4665_v9, %v5696_v41 }
 0x678   :  { %2267 = vst [vmem:[#allocation7 + $0x38] sm:$0xff] %v2235_v22  ;;  %v2102_v53 = vadd.f32 %v2880_v23, %v2011_v12  ;;  %v5698_v23 = vld [vmem:[#allocation16_spill] sm:$0xff] }
 0x679   :  { %v2882_v6 = vpop.f32.mrf.mxu0  ;;  %v2015_v30 = vmul.f32 %v4675_v59, %v5698_v23  ;;  %v2017_v59 = vmul.f32 %v4693_v44, %v5593_v35  ;;  %v2019_v35 = vmul.f32 %v4711_v20, %v5475_v52  ;;  %v2021_v52 = vmul.f32 %v4729_v47, %v5480_v34 }
 0x67a   :  { %v2236_v42 = vadd.f32 %v2102_v53, %v5691_v40  ;;  %v2883_v1 = vadd.f32 %v2882_v6, %v2881_v39  ;;  %v2023_v34 = vmul.f32 %v4747_v36, %v5388_v58 }
 0x67b   :  { %v2884_v14 = vpop.f32.mrf.mxu0 }
 0x67c   :  { %2268 = vst [vmem:[#allocation7 + $0x40] sm:$0xff] %v2236_v42  ;;  %v2105_v60 = vadd.f32 %v2883_v1, %v2012_v11  ;;  %v5699_v42 = vld [vmem:[#allocation36_spill] sm:$0xff] }
 0x67d   :  { %v2885_v24 = vpop.f32.mrf.mxu0  ;;  %v5700_v11 = vld [vmem:[#allocation80_spill] sm:$0xff] }
 0x67e   :  { %v2237_v45 = vadd.f32 %v2105_v60, %v5693_v38  ;;  %v2886_v7 = vadd.f32 %v2885_v24, %v2884_v14  ;;  %v2016_v9 = vmul.f32 %v4683_v5, %v5700_v11 }
 0x67f   :  { %v2887_v62 = vpop.f32.mrf.mxu0 }
 0x680   :  { %2269 = vst [vmem:[#allocation7 + $0x48] sm:$0xff] %v2237_v45  ;;  %v2110_v31 = vadd.f32 %v2886_v7, %v2013_v2 }
 0x681   :  { %v2888_v27 = vpop.f32.mrf.mxu0 }
 0x682   :  { %v2238_v32 = vadd.f32 %v2110_v31, %v5695_v49  ;;  %v2889_v57 = vadd.f32 %v2888_v27, %v2887_v62  ;;  %v5701_v62 = vld [vmem:[#allocation29_spill] sm:$0xff]  ;;  %v5702_v27 = vld [vmem:[#allocation76_spill] sm:$0xff] }
 0x683   :  { %v2890_v15 = vpop.f32.mrf.mxu0  ;;  %v2018_v5 = vmul.f32 %v4701_v19, %v5702_v27  ;;  %v2020_v19 = vmul.f32 %v4719_v3, %v5598_v0  ;;  %v2022_v3 = vmul.f32 %v4737_v63, %v5483_v37  ;;  %v2024_v37 = vmul.f32 %v4755_v10, %v5386_v25 }
 0x684   :  { %2270 = vst [vmem:[#allocation7 + $0x50] sm:$0xff] %v2238_v32  ;;  %v2113_v50 = vadd.f32 %v2889_v57, %v2014_v56 }
 0x685   :  { %v2891_v22 = vpop.f32.mrf.mxu0 }
 0x686   :  { %v2239_v12 = vadd.f32 %v2113_v50, %v5697_v43  ;;  %v2892_v39 = vadd.f32 %v2891_v22, %v2890_v15 }
 0x687   :  { %v2893_v53 = vpop.f32.mrf.mxu0 }
 0x688   :  { %2271 = vst [vmem:[#allocation7 + $0x58] sm:$0xff] %v2239_v12  ;;  %v2118_v6 = vadd.f32 %v2892_v39, %v2015_v30 }
 0x689   :  { %v2894_v40 = vpop.f32.mrf.mxu0 }
 0x68a   :  { %v2240_v17 = vadd.f32 %v2118_v6, %v5699_v42  ;;  %v2895_v1 = vadd.f32 %v2894_v40, %v2893_v53 }
 0x68b   :  { %v2896_v14 = vpop.f32.mrf.mxu0 }
 0x68c   :  { %2272 = vst [vmem:[#allocation7 + $0x60] sm:$0xff] %v2240_v17  ;;  %v2121_v60 = vadd.f32 %v2895_v1, %v2016_v9 }
 0x68d   :  { %v2897_v24 = vpop.f32.mrf.mxu0 }
 0x68e   :  { %v2241_v38 = vadd.f32 %v2121_v60, %v4691_v46  ;;  %v2898_v45 = vadd.f32 %v2897_v24, %v2896_v14 }
 0x68f   :  { %v2899_v33 = vpop.f32.mrf.mxu0 }
 0x690   :  { %2273 = vst [vmem:[#allocation7 + $0x68] sm:$0xff] %v2241_v38  ;;  %v2126_v2 = vadd.f32 %v2898_v45, %v2017_v59  ;;  %v5703_v38 = vld [vmem:[#allocation94_spill] sm:$0xff]  ;;  %v5704_v59 = vld [vmem:[#allocation89_spill] sm:$0xff] }
 0x691   :  { %v2900_v7 = vpop.f32.mrf.mxu0  ;;  %v2025_v58 = vmul.f32 %v4765_v21, %v5704_v59 }
 0x692   :  { %v2242_v31 = vadd.f32 %v2126_v2, %v5701_v62  ;;  %v2901_v49 = vadd.f32 %v2900_v7, %v2899_v33  ;;  %v5705_v7 = vld [vmem:[#allocation11_spill] sm:$0xff]  ;;  %v5706_v62 = vld [vmem:[#allocation90_spill] sm:$0xff] }
 0x693   :  { %v2902_v32 = vpop.f32.mrf.mxu0  ;;  %v2026_v25 = vmul.f32 %v4773_v48, %v5706_v62 }
 0x694   :  { %2274 = vst [vmem:[#allocation7 + $0x70] sm:$0xff] %v2242_v31  ;;  %v2129_v41 = vadd.f32 %v2901_v49, %v2018_v5  ;;  %v5707_v49 = vld [vmem:[#allocation93_spill] sm:$0xff] }
 0x695   :  { %v2903_v56 = vpop.f32.mrf.mxu0 }
 0x696   :  { %v2243_v46 = vadd.f32 %v2129_v41, %v4709_v8  ;;  %v2904_v44 = vadd.f32 %v2903_v56, %v2902_v32  ;;  %v5708_v41 = vld [vmem:[#allocation85_spill] sm:$0xff] }
 0x697   :  { %v2905_v57 = vpop.f32.mrf.mxu0  ;;  %v2027_v21 = vmul.f32 %v4783_v61, %v5708_v41 }
 0x698   :  { %2275 = vst [vmem:[#allocation7 + $0x78] sm:$0xff] %v2243_v46  ;;  %v2134_v15 = vadd.f32 %v2904_v44, %v2019_v35 }
 0x699   :  { %v2906_v50 = vpop.f32.mrf.mxu0 }
 0x69a   :  { %v2244_v22 = vadd.f32 %v2134_v15, %v4717_v51  ;;  %v2907_v43 = vadd.f32 %v2906_v50, %v2905_v57  ;;  %v5709_v57 = vld [vmem:[#allocation22_spill] sm:$0xff] }
 0x69b   :  { %v2908_v12 = vpop.f32.mrf.mxu0  ;;  %v5710_v50 = vld [vmem:[#allocation86_spill] sm:$0xff] }
 0x69c   :  { %2276 = vst [vmem:[#allocation7 + $0x80] sm:$0xff] %v2244_v22  ;;  %v2137_v23 = vadd.f32 %v2907_v43, %v2020_v19  ;;  %v5711_v22 = vld [vmem:[#allocation31_spill] sm:$0xff] }
 0x69d   :  { %v2909_v30 = vpop.f32.mrf.mxu0  ;;  %v2028_v48 = vmul.f32 %v5711_v22, %v5710_v50 }
 0x69e   :  { %v2245_v8 = vadd.f32 %v2137_v23, %v4727_v13  ;;  %v2910_v20 = vadd.f32 %v2909_v30, %v2908_v12  ;;  %v5712_v30 = vld [vmem:[#allocation24_spill] sm:$0xff] }
 0x69f   :  { %v2911_v39 = vpop.f32.mrf.mxu0 }
 0x6a0   :  { %2277 = vst [vmem:[#allocation7 + $0x88] sm:$0xff] %v2245_v8  ;;  %v2142_v53 = vadd.f32 %v2910_v20, %v2021_v52  ;;  %v5713_v52 = vld [vmem:[#allocation81_spill] sm:$0xff] }
 0x6a1   :  { %v2912_v6 = vpop.f32.mrf.mxu0  ;;  %v2029_v61 = vmul.f32 %v4801_v16, %v5713_v52 }
 0x6a2   :  { %v2246_v51 = vadd.f32 %v2142_v53, %v4735_v18  ;;  %v2913_v0 = vadd.f32 %v2912_v6, %v2911_v39 }
 0x6a3   :  { %v2914_v40 = vpop.f32.mrf.mxu0 }
 0x6a4   :  { %2278 = vst [vmem:[#allocation7 + $0x90] sm:$0xff] %v2246_v51  ;;  %v2145_v42 = vadd.f32 %v2913_v0, %v2022_v3  ;;  %v5714_v51 = vld [vmem:[#allocation15_spill] sm:$0xff]  ;;  %v5715_v0 = vld [vmem:[#allocation82_spill] sm:$0xff] }
 0x6a5   :  { %v2915_v17 = vpop.f32.mrf.mxu0 }
 0x6a6   :  { %v2247_v13 = vadd.f32 %v2145_v42, %v4745_v4  ;;  %v2916_v47 = vadd.f32 %v2915_v17, %v2914_v40  ;;  %v2030_v40 = vmul.f32 %v4809_v54, %v5715_v0 }
 0x6a7   :  { %v2917_v11 = vpop.f32.mrf.mxu0 }
 0x6a8   :  { %2279 = vst [vmem:[#allocation7 + $0x98] sm:$0xff] %v2247_v13  ;;  %v2150_v9 = vadd.f32 %v2916_v47, %v2023_v34  ;;  %v5716_v47 = vld [vmem:[#allocation19_spill] sm:$0xff] }
 0x6a9   :  { %v2918_v1 = vpop.f32.mrf.mxu0 }
 0x6aa   :  { %v2248_v18 = vadd.f32 %v2150_v9, %v4753_v26  ;;  %v2919_v63 = vadd.f32 %v2918_v1, %v2917_v11  ;;  %v5717_v9 = vld [vmem:[#allocation78_spill] sm:$0xff] }
 0x6ab   :  { %v2920_v14 = vpop.f32.mrf.mxu0  ;;  %v2031_v16 = vmul.f32 %v4819_v29, %v5717_v9 }
 0x6ac   :  { %2280 = vst [vmem:[#allocation7 + $0xa0] sm:$0xff] %v2248_v18  ;;  %v2153_v60 = vadd.f32 %v2919_v63, %v2024_v37 }
 0x6ad   :  { %v2921_v24 = vpop.f32.mrf.mxu0 }
 0x6ae   :  { %v2249_v4 = vadd.f32 %v2153_v60, %v5703_v38  ;;  %v2922_v36 = vadd.f32 %v2921_v24, %v2920_v14  ;;  %v5718_v14 = vld [vmem:[#allocation21_spill] sm:$0xff]  ;;  %v5719_v24 = vld [vmem:[#allocation79_spill] sm:$0xff] }
 0x6af   :  { %v2923_v45 = vpop.f32.mrf.mxu0  ;;  %v2032_v54 = vmul.f32 %v4827_v28, %v5719_v24 }
 0x6b0   :  { %2281 = vst [vmem:[#allocation7 + $0xa8] sm:$0xff] %v2249_v4  ;;  %v2158_v33 = vadd.f32 %v2922_v36, %v2025_v58 }
 0x6b1   :  { %v2924_v2 = vpop.f32.mrf.mxu0 }
 0x6b2   :  { %v2250_v26 = vadd.f32 %v2158_v33, %v5705_v7  ;;  %v2925_v10 = vadd.f32 %v2924_v2, %v2923_v45  ;;  %v5720_v45 = vld [vmem:[#allocation71_spill] sm:$0xff]  ;;  %v5721_v33 = vld [vmem:[#allocation72_spill] sm:$0xff] }
 0x6b3   :  { %v2926_v31 = vpop.f32.mrf.mxu0  ;;  %v2033_v29 = vmul.f32 %v5721_v33, %v5720_v45 }
 0x6b4   :  { %2282 = vst [vmem:[#allocation7 + $0xb0] sm:$0xff] %v2250_v26  ;;  %v2161_v27 = vadd.f32 %v2925_v10, %v2026_v25  ;;  %v5722_v25 = vld [vmem:[#allocation23_spill] sm:$0xff] }
 0x6b5   :  { %v2927_v5 = vpop.f32.mrf.mxu0 }
 0x6b6   :  { %v2251_v32 = vadd.f32 %v2161_v27, %v5707_v49  ;;  %v2928_v56 = vadd.f32 %v2927_v5, %v2926_v31  ;;  %v5723_v31 = vld [vmem:[#allocation75_spill] sm:$0xff]  ;;  %v5724_v27 = vld [vmem:[#allocation18_spill] sm:$0xff] }
 0x6b7   :  { %v2929_v46 = vpop.f32.mrf.mxu0  ;;  %v2034_v28 = vmul.f32 %v5724_v27, %v5723_v31 }
 0x6b8   :  { %2283 = vst [vmem:[#allocation7 + $0xb8] sm:$0xff] %v2251_v32  ;;  %v2166_v35 = vadd.f32 %v2928_v56, %v2027_v21  ;;  %v5725_v32 = vld [vmem:[#allocation102_spill] sm:$0xff] }
 0x6b9   :  { %v2930_v44 = vpop.f32.mrf.mxu0 }
 0x6ba   :  { %v2252_v15 = vadd.f32 %v2166_v35, %v5709_v57  ;;  %v2931_v19 = vadd.f32 %v2930_v44, %v2929_v46 }
 0x6bb   :  { %v2932_v43 = vpop.f32.mrf.mxu0 }
 0x6bc   :  { %2284 = vst [vmem:[#allocation7 + $0xc0] sm:$0xff] %v2252_v15  ;;  %v2169_v12 = vadd.f32 %v2931_v19, %v2028_v48 }
 0x6bd   :  { %v2933_v23 = vpop.f32.mrf.mxu0 }
 0x6be   :  { %v2253_v8 = vadd.f32 %v2169_v12, %v5712_v30  ;;  %v2934_v20 = vadd.f32 %v2933_v23, %v2932_v43 }
 0x6bf   :  { %v2935_v39 = vpop.f32.mrf.mxu0 }
 0x6c0   :  { %2285 = vst [vmem:[#allocation7 + $0xc8] sm:$0xff] %v2253_v8  ;;  %v2174_v53 = vadd.f32 %v2934_v20, %v2029_v61 }
 0x6c1   :  { %v2936_v6 = vpop.f32.mrf.mxu0 }
 0x6c2   :  { %v2254_v3 = vadd.f32 %v2174_v53, %v5714_v51  ;;  %v2937_v42 = vadd.f32 %v2936_v6, %v2935_v39 }
 0x6c3   :  { %v2938_v17 = vpop.f32.mrf.mxu0 }
 0x6c4   :  { %2286 = vst [vmem:[#allocation7 + $0xd0] sm:$0xff] %v2254_v3  ;;  %v2177_v13 = vadd.f32 %v2937_v42, %v2030_v40 }
 0x6c5   :  { %v2939_v34 = vpop.f32.mrf.mxu0 }
 0x6c6   :  { %v2255_v11 = vadd.f32 %v2177_v13, %v5716_v47  ;;  %v2940_v1 = vadd.f32 %v2939_v34, %v2938_v17 }
 0x6c7   :  { %v2941_v18 = vpop.f32.mrf.mxu0 }
 0x6c8   :  { %2287 = vst [vmem:[#allocation7 + $0xd8] sm:$0xff] %v2255_v11  ;;  %v2182_v37 = vadd.f32 %v2940_v1, %v2031_v16 }
 0x6c9   :  { %v2942_v63 = vpop.f32.mrf.mxu0 }
 0x6ca   :  { %v2256_v60 = vadd.f32 %v2182_v37, %v5718_v14  ;;  %v2943_v38 = vadd.f32 %v2942_v63, %v2941_v18 }
 0x6cb   :  { %v2944_v4 = vpop.f32.mrf.mxu0 }
 0x6cc   :  { %2288 = vst [vmem:[#allocation7 + $0xe0] sm:$0xff] %v2256_v60  ;;  %v2185_v59 = vadd.f32 %v2943_v38, %v2032_v54 }
 0x6cd   :  { %v2945_v58 = vpop.f32.mrf.mxu0 }
 0x6ce   :  { %v2257_v36 = vadd.f32 %v2185_v59, %v4835_v55  ;;  %v2946_v2 = vadd.f32 %v2945_v58, %v2944_v4 }
 0x6cf   :  { %v2947_v7 = vpop.f32.mrf.mxu0 }
 0x6d0   :  { %2289 = vst [vmem:[#allocation7 + $0xe8] sm:$0xff] %v2257_v36  ;;  %v2190_v26 = vadd.f32 %v2946_v2, %v2033_v29 }
 0x6d1   :  { %v2948_v62 = vpop.f32.mrf.mxu0 }
 0x6d2   :  { %v2258_v10 = vadd.f32 %v2190_v26, %v5722_v25  ;;  %v2949_v5 = vadd.f32 %v2948_v62, %v2947_v7 }
 0x6d4   :  { %2290 = vst [vmem:[#allocation7 + $0xf0] sm:$0xff] %v2258_v10  ;;  %v2193_v49 = vadd.f32 %v2949_v5, %v2034_v28 }
 0x6d6   :  { %v2259_v55 = vadd.f32 %v2193_v49, %v5725_v32 }
 0x6d8   :  { %2291 = vst [vmem:[#allocation7 + $0xf8] sm:$0xff] %v2259_v55 }
 0x6d9   :  { %3187 = shalt.err (!%p3184_p0)
}
 0x6da   :  { %2303 = dma.vmem_to_hbm [thread:$0]  %s2298_s26, 4096, %s5026_s4, [#allocation4], %s3203_s18, %s3203_s18, %s3204_s19  }
 0x6db   :  { %3200 = dma.done.wait [#allocation4], 4096  }
 0x6dc   :  { %3201 = vsyncadd [#allocation4], 4294963200 }
 0x6dd   :  { %2307 = vsyncpa [#allocation3], 1 }
 0x6de   :  { %2308 = vsyncpa [#allocation6], 1 }
 0x6df   :  { %2309 = vsyncpa [#allocation4], 1 }

</bundles_post_ra>
